<compile_context>
chip_gen: v7x
topology: tpu7x:2x2x1
jax: 0.10.0
libtpu: 0.0.40
codegen_flags: <defaults>
</compile_context>

<pallas_src>
import jax
import jax.numpy as jnp
from jax.experimental import pallas as pl
from jax.experimental.pallas import tpu as pltpu


def _round_up(x, m):
    return ((x + m - 1) // m) * m


def _vmem_limit_bytes():
    """Scoped VMEM limit: ~3/4 of physical VMEM (leaves compiler headroom)."""
    try:
        cap = int(getattr(pltpu.get_tpu_info(), "vmem_capacity_bytes",
                          64 * 1024 * 1024))
    except Exception:
        cap = 64 * 1024 * 1024  # conservative fallback (v7x-sized)
    return (cap * 3) // 4


_VMEM_LIMIT_BYTES = _vmem_limit_bytes()


def pick_tile_m(m_total, batch, cin, cout):
    """Largest mode-tile whose 2-deep double-buffered working set fits VMEM."""
    b_pad = _round_up(batch, 8)
    in_b, out_b = 2, 4  # bf16 inputs, f32 outputs
    per_mode = ((2 * b_pad * cin + 2 * cin * cout) * in_b
                + 2 * b_pad * cout * out_b)
    budget = (_VMEM_LIMIT_BYTES * 2) // 3      # headroom inside the scoped limit
    tile = budget // (2 * per_mode)            # 2-deep double buffering
    # Keep >= 2 grid steps when possible so v7x megacore gets both TCs busy,
    # and never exceed the (padded) number of modes.
    if m_total > 8:
        tile = min(tile, _round_up(pl.cdiv(m_total, 2), 8))
    tile = min(tile, _round_up(m_total, 8))
    tile = max(8, (tile // 8) * 8)
    return int(tile)


def pack_spectral_weights(wr1, wi1, wr2, wi2, tile_m):
    """Parameter-static weight packing: call ONCE at init (not per forward).

    wrN / wiN : (Cin, Cout, modes1, modes2) float32
    Returns wr, wi of shape (M_pad, Cin, Cout) bfloat16 with the mode axis
    laid out as [top-corner modes (x*m2+y) ; bottom-corner modes], zero-padded
    to a multiple of tile_m.
    """
    cin, cout, m1, m2 = wr1.shape
    m_total = 2 * m1 * m2

    def _to_mode_major(w):
        # (Cin, Cout, m1, m2) -> (m1*m2, Cin, Cout); mode flattened as x*m2+y.
        return w.transpose(2, 3, 0, 1).reshape(m1 * m2, cin, cout)

    wr = jnp.concatenate([_to_mode_major(wr1), _to_mode_major(wr2)], axis=0)
    wi = jnp.concatenate([_to_mode_major(wi1), _to_mode_major(wi2)], axis=0)

    m_pad = pl.cdiv(m_total, tile_m) * tile_m
    if m_pad != m_total:
        pad = ((0, m_pad - m_total), (0, 0), (0, 0))
        wr = jnp.pad(wr, pad)
        wi = jnp.pad(wi, pad)
    return wr.astype(jnp.bfloat16), wi.astype(jnp.bfloat16)


def _spectral_matmul_kernel(xr_ref, xi_ref, wr_ref, wi_ref, or_ref, oi_ref):
    """Per-mode complex channel mix on the MXU over a tile of retained modes.

    xr_ref/xi_ref : (TM, B_pad, Cin)  bf16   real / imag activations
    wr_ref/wi_ref : (TM, Cin,  Cout)  bf16   real / imag weights
    or_ref/oi_ref : (TM, B_pad, Cout) f32    real / imag outputs
    """
    xr = xr_ref[...]
    xi = xi_ref[...]
    wr = wr_ref[...]
    wi = wi_ref[...]

    rr = jnp.einsum("mbi,mio->mbo", xr, wr, preferred_element_type=jnp.float32)
    ii = jnp.einsum("mbi,mio->mbo", xi, wi, preferred_element_type=jnp.float32)
    ri = jnp.einsum("mbi,mio->mbo", xr, wi, preferred_element_type=jnp.float32)
    ir = jnp.einsum("mbi,mio->mbo", xi, wr, preferred_element_type=jnp.float32)

    or_ref[...] = rr - ii
    oi_ref[...] = ri + ir


def _spectral_mul(xr, xi, wr, wi, tile_m):
    """Pallas wrapper: mode-tiled, double-buffered, single parallel grid axis."""
    m_pad, b_pad, cin = xr.shape
    cout = wr.shape[-1]
    grid = (m_pad // tile_m,)

    x_spec = pl.BlockSpec((tile_m, b_pad, cin), lambda i: (i, 0, 0))
    w_spec = pl.BlockSpec((tile_m, cin, cout), lambda i: (i, 0, 0))
    o_spec = pl.BlockSpec((tile_m, b_pad, cout), lambda i: (i, 0, 0))
    out_struct = jax.ShapeDtypeStruct((m_pad, b_pad, cout), jnp.float32)

    return pl.pallas_call(
        _spectral_matmul_kernel,
        out_shape=(out_struct, out_struct),
        grid_spec=pltpu.PrefetchScalarGridSpec(
            num_scalar_prefetch=0,
            grid=grid,
            in_specs=[x_spec, x_spec, w_spec, w_spec],
            out_specs=[o_spec, o_spec],
        ),
        compiler_params=pltpu.CompilerParams(
            dimension_semantics=("parallel",),
            vmem_limit_bytes=_VMEM_LIMIT_BYTES,
        ),
    )(xr, xi, wr, wi)


def spectral_conv2d(x, wr_packed, wi_packed, modes1, modes2, tile_m):
    """Forward pass equivalent to the PyTorch SpectralConv2d.forward.

    x                    : (B, Cin, H, W) float32
    wr_packed, wi_packed : (M_pad, Cin, Cout) bfloat16 (from pack_spectral_weights)
    """
    B, Cin, H, W = x.shape
    m_pad, _, Cout = wr_packed.shape
    Wf = W // 2 + 1
    m1, m2 = modes1, modes2
    m_total = 2 * m1 * m2
    # Behavioral restriction vs PyTorch (which lets overlapping corner writes
    # silently win): fail loudly instead.
    assert 2 * m1 <= H and m2 <= Wf
    assert m_pad % tile_m == 0 and m_pad >= m_total

    # FFT (plain JAX glue).
    x_ft = jnp.fft.rfft2(x.astype(jnp.float32), axes=(-2, -1))  # (B, Cin, H, Wf) c64

    # Both retained corners, mode-major layout (M, B, Cin); mode = X*m2 + y
    # with X in [0, 2*m1): X < m1 -> top corner, X >= m1 -> bottom corner.
    corners = jnp.concatenate(
        [x_ft[:, :, :m1, :m2], x_ft[:, :, H - m1:, :m2]], axis=2)  # (B,Cin,2*m1,m2)
    modes = corners.transpose(2, 3, 0, 1).reshape(m_total, B, Cin)

    b_pad = _round_up(B, 8)
    pad = ((0, m_pad - m_total), (0, b_pad - B), (0, 0))
    xr = jnp.pad(jnp.real(modes), pad).astype(jnp.bfloat16)
    xi = jnp.pad(jnp.imag(modes), pad).astype(jnp.bfloat16)

    # Pallas MXU channel mix (both corners fused via the flattened mode axis).
    out_r, out_i = _spectral_mul(xr, xi, wr_packed, wi_packed, tile_m)

    out_c = jax.lax.complex(out_r[:m_total, :B], out_i[:m_total, :B])  # (M,B,Cout)
    out_c = out_c.reshape(2 * m1, m2, B, Cout).transpose(2, 3, 0, 1)   # (B,Cout,2*m1,m2)

    out_ft = jnp.zeros((B, Cout, H, Wf), dtype=jnp.complex64)
    out_ft = out_ft.at[:, :, :m1, :m2].set(out_c[:, :, :m1])
    out_ft = out_ft.at[:, :, H - m1:, :m2].set(out_c[:, :, m1:])

    # Inverse FFT (plain JAX glue).
    return jnp.fft.irfft2(out_ft, s=(H, W), axes=(-2, -1))


def _reference(x, wr1, wi1, wr2, wi2, modes1, modes2):
    """Pure-JAX reference mirroring the PyTorch module exactly."""
    B, Cin, H, W = x.shape
    Cout = wr1.shape[1]
    Wf = W // 2 + 1
    w1 = wr1 + 1j * wi1
    w2 = wr2 + 1j * wi2
    x_ft = jnp.fft.rfft2(x, axes=(-2, -1))
    out_ft = jnp.zeros((B, Cout, H, Wf), dtype=jnp.complex64)
    out_ft = out_ft.at[:, :, :modes1, :modes2].set(
        jnp.einsum("bixy,ioxy->boxy", x_ft[:, :, :modes1, :modes2], w1))
    out_ft = out_ft.at[:, :, H - modes1:, :modes2].set(
        jnp.einsum("bixy,ioxy->boxy", x_ft[:, :, H - modes1:, :modes2], w2))
    return jnp.fft.irfft2(out_ft, s=(H, W), axes=(-2, -1))


if __name__ == "__main__":
    # Small shapes consistent with the module.
    B, Cin, Cout = 2, 4, 4
    H = W = 16
    modes1 = modes2 = 6  # modes2 <= W//2 + 1 = 9, 2*modes1 <= H

    key = jax.random.PRNGKey(0)
    kx, k1r, k1i, k2r, k2i = jax.random.split(key, 5)

    x = jax.random.normal(kx, (B, Cin, H, W), dtype=jnp.float32)

    # Deterministic weight init: scale * U[0,1) for real and imag parts,
    # matching torch.rand(..., dtype=torch.cfloat) semantics.
    scale = 1.0 / (Cin * Cout)
    wshape = (Cin, Cout, modes1, modes2)
    wr1 = scale * jax.random.uniform(k1r, wshape, dtype=jnp.float32)
    wi1 = scale * jax.random.uniform(k1i, wshape, dtype=jnp.float32)
    wr2 = scale * jax.random.uniform(k2r, wshape, dtype=jnp.float32)
    wi2 = scale * jax.random.uniform(k2i, wshape, dtype=jnp.float32)

    # Parameter-static packing: done ONCE at init, not inside the forward.
    tile_m = pick_tile_m(2 * modes1 * modes2, B, Cin, Cout)
    wr_p, wi_p = pack_spectral_weights(wr1, wi1, wr2, wi2, tile_m)

    fwd = jax.jit(spectral_conv2d, static_argnums=(3, 4, 5))
    out = jax.block_until_ready(fwd(x, wr_p, wi_p, modes1, modes2, tile_m))

    ref = _reference(x, wr1, wi1, wr2, wi2, modes1, modes2)
    assert out.shape == (B, Cout, H, W)
    # bf16 MXU inputs (f32 accumulation) -> looser tolerance than pure f32.
    max_err = float(jnp.max(jnp.abs(out - ref)))
    assert jnp.allclose(out, ref, rtol=3e-2, atol=3e-2), (
        f"mismatch vs reference, max abs err = {max_err}")

    print("KERNEL_OK")
</pallas_src>

<mosaic_0001>
module attributes {stable_mosaic.version = 11 : i64} {
  func.func @_spectral_matmul_kernel(%arg0: i32, %arg1: memref<40x8x4xbf16, #tpu.memory_space<vmem>>, %arg2: memref<40x8x4xbf16, #tpu.memory_space<vmem>>, %arg3: memref<40x4x4xbf16, #tpu.memory_space<vmem>>, %arg4: memref<40x4x4xbf16, #tpu.memory_space<vmem>>, %arg5: memref<40x8x4xf32, #tpu.memory_space<vmem>>, %arg6: memref<40x8x4xf32, #tpu.memory_space<vmem>>) attributes {dimension_semantics = [#tpu.dimension_semantics<parallel>], iteration_bounds = array<i64: 2>, scalar_prefetch = 0 : i64, scratch_operands = 0 : i64, tpu.core_type = #tpu.core_type<tc>, window_params = [{transform_indices = @transform_0, window_bounds = array<i64: 40, 8, 4>}, {transform_indices = @transform_1, window_bounds = array<i64: 40, 8, 4>}, {transform_indices = @transform_2, window_bounds = array<i64: 40, 4, 4>}, {transform_indices = @transform_3, window_bounds = array<i64: 40, 4, 4>}, {transform_indices = @transform_4, window_bounds = array<i64: 40, 8, 4>}, {transform_indices = @transform_5, window_bounds = array<i64: 40, 8, 4>}]} {
    %c0 = arith.constant 0 : index
    %c0_0 = arith.constant 0 : index
    %c0_1 = arith.constant 0 : index
    %0 = vector.load %arg1[%c0, %c0_0, %c0_1] : memref<40x8x4xbf16, #tpu.memory_space<vmem>>, vector<40x8x4xbf16>
    %c0_2 = arith.constant 0 : index
    %c0_3 = arith.constant 0 : index
    %c0_4 = arith.constant 0 : index
    %1 = vector.load %arg2[%c0_2, %c0_3, %c0_4] : memref<40x8x4xbf16, #tpu.memory_space<vmem>>, vector<40x8x4xbf16>
    %c0_5 = arith.constant 0 : index
    %c0_6 = arith.constant 0 : index
    %c0_7 = arith.constant 0 : index
    %2 = vector.load %arg3[%c0_5, %c0_6, %c0_7] : memref<40x4x4xbf16, #tpu.memory_space<vmem>>, vector<40x4x4xbf16>
    %c0_8 = arith.constant 0 : index
    %c0_9 = arith.constant 0 : index
    %c0_10 = arith.constant 0 : index
    %3 = vector.load %arg4[%c0_8, %c0_9, %c0_10] : memref<40x4x4xbf16, #tpu.memory_space<vmem>>, vector<40x4x4xbf16>
    "tpu.trace_start"() <{level = 10 : i32, message = "mbi,mio->mbo"}> : () -> ()
    %cst = arith.constant dense<0.000000e+00> : vector<40x8x4xf32>
    %4 = tpu.matmul %0, %2, %cst {dimension_numbers = #tpu.dot_dimension_numbers<[2], [1], [1], [2], [0, 0, 0, 1, 1, 2], [0], [0]>} : vector<40x8x4xbf16>, vector<40x4x4xbf16>, vector<40x8x4xf32> -> vector<40x8x4xf32>
    %cst_11 = arith.constant dense<0.000000e+00> : vector<40x8x4xf32>
    %5 = tpu.matmul %1, %3, %cst_11 {dimension_numbers = #tpu.dot_dimension_numbers<[2], [1], [1], [2], [0, 0, 0, 1, 1, 2], [0], [0]>} : vector<40x8x4xbf16>, vector<40x4x4xbf16>, vector<40x8x4xf32> -> vector<40x8x4xf32>
    %cst_12 = arith.constant dense<0.000000e+00> : vector<40x8x4xf32>
    %6 = tpu.matmul %0, %3, %cst_12 {dimension_numbers = #tpu.dot_dimension_numbers<[2], [1], [1], [2], [0, 0, 0, 1, 1, 2], [0], [0]>} : vector<40x8x4xbf16>, vector<40x4x4xbf16>, vector<40x8x4xf32> -> vector<40x8x4xf32>
    %cst_13 = arith.constant dense<0.000000e+00> : vector<40x8x4xf32>
    %7 = tpu.matmul %1, %2, %cst_13 {dimension_numbers = #tpu.dot_dimension_numbers<[2], [1], [1], [2], [0, 0, 0, 1, 1, 2], [0], [0]>} : vector<40x8x4xbf16>, vector<40x4x4xbf16>, vector<40x8x4xf32> -> vector<40x8x4xf32>
    "tpu.trace_stop"() : () -> ()
    %8 = arith.subf %4, %5 : vector<40x8x4xf32>
    %c0_14 = arith.constant 0 : index
    %c0_15 = arith.constant 0 : index
    %c0_16 = arith.constant 0 : index
    %9 = vector.load %arg5[%c0_14, %c0_15, %c0_16] : memref<40x8x4xf32, #tpu.memory_space<vmem>>, vector<40x8x4xf32>
    tpu.vector_store %arg5[%c0_14, %c0_15, %c0_16], %8 {strides = array<i32>} : memref<40x8x4xf32, #tpu.memory_space<vmem>>, vector<40x8x4xf32>,
    %10 = arith.addf %6, %7 : vector<40x8x4xf32>
    %c0_17 = arith.constant 0 : index
    %c0_18 = arith.constant 0 : index
    %c0_19 = arith.constant 0 : index
    %11 = vector.load %arg6[%c0_17, %c0_18, %c0_19] : memref<40x8x4xf32, #tpu.memory_space<vmem>>, vector<40x8x4xf32>
    tpu.vector_store %arg6[%c0_17, %c0_18, %c0_19], %10 {strides = array<i32>} : memref<40x8x4xf32, #tpu.memory_space<vmem>>, vector<40x8x4xf32>,
    return
  }
  func.func @transform_0(%arg0: i32) -> (i32, i32, i32) {
    %c0_i32 = arith.constant 0 : i32
    %c0_i32_0 = arith.constant 0 : i32
    %c0_i32_1 = arith.constant 0 : i32
    return %arg0, %c0_i32, %c0_i32_0 : i32, i32, i32
  }
  func.func @transform_1(%arg0: i32) -> (i32, i32, i32) {
    %c0_i32 = arith.constant 0 : i32
    %c0_i32_0 = arith.constant 0 : i32
    %c0_i32_1 = arith.constant 0 : i32
    return %arg0, %c0_i32, %c0_i32_0 : i32, i32, i32
  }
  func.func @transform_2(%arg0: i32) -> (i32, i32, i32) {
    %c0_i32 = arith.constant 0 : i32
    %c0_i32_0 = arith.constant 0 : i32
    %c0_i32_1 = arith.constant 0 : i32
    return %arg0, %c0_i32, %c0_i32_0 : i32, i32, i32
  }
  func.func @transform_3(%arg0: i32) -> (i32, i32, i32) {
    %c0_i32 = arith.constant 0 : i32
    %c0_i32_0 = arith.constant 0 : i32
    %c0_i32_1 = arith.constant 0 : i32
    return %arg0, %c0_i32, %c0_i32_0 : i32, i32, i32
  }
  func.func @transform_4(%arg0: i32) -> (i32, i32, i32) {
    %c0_i32 = arith.constant 0 : i32
    %c0_i32_0 = arith.constant 0 : i32
    %c0_i32_1 = arith.constant 0 : i32
    return %arg0, %c0_i32, %c0_i32_0 : i32, i32, i32
  }
  func.func @transform_5(%arg0: i32) -> (i32, i32, i32) {
    %c0_i32 = arith.constant 0 : i32
    %c0_i32_0 = arith.constant 0 : i32
    %c0_i32_1 = arith.constant 0 : i32
    return %arg0, %c0_i32, %c0_i32_0 : i32, i32, i32
  }
}

</mosaic_0001>

<bundles_post_ra>
// kernel: reverse.1
= control target key start
LH: loop header
LB: loop body
LE: loop exit
PB: predicated region body
PF: predicated region fallthrough
CT: control target
= control target key end

     0   :  { %v71_v3 = vlaneseq  ;;  %v64_v9 = vld [vmem:[#allocation0 + $0x7] ss:$-1 sm:$0xff]  ;;  %v78_v12 = vld [vmem:[#allocation0 + $0x17] ss:$-1 sm:$0xff]  ;;  %s329_s0 = inlined_call_operand.vmem [shape: f32[2,4,16,7], index: 0, kind: input, shape index: {}]   ;;  %s330_s1 = inlined_call_operand.vmem [shape: f32[2,4,16,7], index: 1, kind: output, shape index: {}]  }
   0x1   :  { %v44_v0 = vld [vmem:[%s329_s0] sm:$0xff]  ;;  %v46_v1 = vld [vmem:[%s329_s0 + $0x8] sm:$0xff]  ;;  %v48_v2 = vld [vmem:[%s329_s0 + $0x10] sm:$0xff]  ;;  %v65_v10 = vrot.slane %v64_v9, 1  ;;  %v79_v14 = vrot.slane %v78_v12, 1 }
   0x2   :  { %45 = vst [vmem:[#allocation0 + $0x8] sm:$0xff] %v44_v0  ;;  %47 = vst [vmem:[#allocation0 + $0x18] sm:$0xff] %v46_v1  ;;  %v50_v4 = vld [vmem:[%s329_s0 + $0x18] sm:$0xff]  ;;  %v52_v5 = vld [vmem:[%s329_s0 + $0x20] sm:$0xff]  ;;  %v72_v11 = vshrl.u32 %v71_v3, 7 }
   0x3   :  { %49 = vst [vmem:[#allocation0 + $0x28] sm:$0xff] %v48_v2  ;;  %v54_v6 = vld [vmem:[%s329_s0 + $0x28] sm:$0xff]  ;;  %51 = vst [vmem:[#allocation0 + $0x38] sm:$0xff] %v50_v4  ;;  %v56_v7 = vld [vmem:[%s329_s0 + $0x30] sm:$0xff] }
   0x4   :  { %53 = vst [vmem:[#allocation0 + $0x48] sm:$0xff] %v52_v5  ;;  %55 = vst [vmem:[#allocation0 + $0x58] sm:$0xff] %v54_v6  ;;  %v58_v8 = vld [vmem:[%s329_s0 + $0x38] sm:$0xff]  ;;  %v92_v13 = vld [vmem:[#allocation0 + $0x27] ss:$-1 sm:$0xff]  ;;  %vm73_vm0 = vcmp.lt.s32.totalorder %v72_v11, 7 }
   0x5   :  { %57 = vst [vmem:[#allocation0 + $0x68] sm:$0xff] %v56_v7  ;;  %59 = vst [vmem:[#allocation0 + $0x78] sm:$0xff] %v58_v8  ;;  %v93_v15 = vrot.slane %v92_v13, 1  ;;  %v106_v16 = vld [vmem:[#allocation0 + $0x37] ss:$-1 sm:$0xff] }
   0x6   :  { %66 = vst [vmem:[#allocation1] sm:$0xff] %v65_v10  ;;  %v107_v17 = vrot.slane %v106_v16, 1  ;;  %v120_v18 = vld [vmem:[#allocation0 + $0x47] ss:$-1 sm:$0xff]  ;;  %v134_v19 = vld [vmem:[#allocation0 + $0x57] ss:$-1 sm:$0xff] }
   0x7   :  { %80 = vst [vmem:[#allocation1 + $0x8] sm:$0xff] %v79_v14  ;;  %94 = vst [vmem:[#allocation1 + $0x10] sm:$0xff] %v93_v15  ;;  %v121_v20 = vrot.slane %v120_v18, 1  ;;  %v135_v21 = vrot.slane %v134_v19, 1  ;;  %v148_v22 = vld [vmem:[#allocation0 + $0x67] ss:$-1 sm:$0xff] }
   0x8   :  { %v162_v23 = vld [vmem:[#allocation0 + $0x77] ss:$-1 sm:$0xff]  ;;  %108 = vst [vmem:[#allocation1 + $0x18] sm:$0xff] %v107_v17  ;;  %v149_v24 = vrot.slane %v148_v22, 1 }
   0x9   :  { %v163_v25 = vrot.slane %v162_v23, 1  ;;  %v69_v26 = vld [vmem:[#allocation0 + $0xf] ss:$-1 sm:$0xff]  ;;  %v83_v27 = vld [vmem:[#allocation0 + $0x1f] ss:$-1 sm:$0xff]  ;;  %122 = vst [vmem:[#allocation1 + $0x20] sm:$0xff] %v121_v20 }
   0xa   :  { %v97_v28 = vld [vmem:[#allocation0 + $0x2f] ss:$-1 sm:$0xff]  ;;  %136 = vst [vmem:[#allocation1 + $0x28] sm:$0xff] %v135_v21  ;;  %v70_v29 = vrot.slane %v69_v26, 1  ;;  %v84_v30 = vrot.slane %v83_v27, 1  ;;  %150 = vst [vmem:[#allocation1 + $0x30] sm:$0xff] %v149_v24 }
   0xb   :  { %v98_v31 = vrot.slane %v97_v28, 1  ;;  %v111_v32 = vld [vmem:[#allocation0 + $0x3f] ss:$-1 sm:$0xff]  ;;  %164 = vst [vmem:[#allocation1 + $0x38] sm:$0xff] %v163_v25  ;;  %v125_v34 = vld [vmem:[#allocation0 + $0x4f] ss:$-1 sm:$0xff] }
   0xc   :  { %v112_v33 = vrot.slane %v111_v32, 1  ;;  %v139_v35 = vld [vmem:[#allocation0 + $0x5f] ss:$-1 sm:$0xff]  ;;  %74 = vst.msk [vmem:[#allocation1] sm:$0xff] %vm73_vm0, %v70_v29  ;;  %88 = vst.msk [vmem:[#allocation1 + $0x8] sm:$0xff] %vm73_vm0, %v84_v30  ;;  %v126_v36 = vrot.slane %v125_v34, 1 }
   0xd   :  { %102 = vst.msk [vmem:[#allocation1 + $0x10] sm:$0xff] %vm73_vm0, %v98_v31  ;;  %v140_v37 = vrot.slane %v139_v35, 1  ;;  %v153_v38 = vld [vmem:[#allocation0 + $0x6f] ss:$-1 sm:$0xff]  ;;  %v167_v39 = vld [vmem:[#allocation0 + $0x7f] ss:$-1 sm:$0xff] }
   0xe   :  { %116 = vst.msk [vmem:[#allocation1 + $0x18] sm:$0xff] %vm73_vm0, %v112_v33  ;;  %v154_v40 = vrot.slane %v153_v38, 1  ;;  %v168_v41 = vrot.slane %v167_v39, 1  ;;  %130 = vst.msk [vmem:[#allocation1 + $0x20] sm:$0xff] %vm73_vm0, %v126_v36 }
   0xf   :  { %144 = vst.msk [vmem:[#allocation1 + $0x28] sm:$0xff] %vm73_vm0, %v140_v37 }
  0x10   :  { %158 = vst.msk [vmem:[#allocation1 + $0x30] sm:$0xff] %vm73_vm0, %v154_v40  ;;  %172 = vst.msk [vmem:[#allocation1 + $0x38] sm:$0xff] %vm73_vm0, %v168_v41 }
  0x13   :  { %v214_v42 = vld [vmem:[#allocation1] sm:$0xff]  ;;  %v216_v43 = vld [vmem:[#allocation1 + $0x8] sm:$0xff] }
  0x14   :  { %v218_v44 = vld [vmem:[#allocation1 + $0x10] sm:$0xff]  ;;  %215 = vst [vmem:[%s330_s1] sm:$0xff] %v214_v42  ;;  %217 = vst [vmem:[%s330_s1 + $0x8] sm:$0xff] %v216_v43 }
  0x15   :  { %219 = vst [vmem:[%s330_s1 + $0x10] sm:$0xff] %v218_v44  ;;  %v220_v45 = vld [vmem:[#allocation1 + $0x18] sm:$0xff]  ;;  %v222_v46 = vld [vmem:[#allocation1 + $0x20] sm:$0xff] }
  0x16   :  { %221 = vst [vmem:[%s330_s1 + $0x18] sm:$0xff] %v220_v45  ;;  %v224_v47 = vld [vmem:[#allocation1 + $0x28] sm:$0xff]  ;;  %223 = vst [vmem:[%s330_s1 + $0x20] sm:$0xff] %v222_v46 }
  0x17   :  { %225 = vst [vmem:[%s330_s1 + $0x28] sm:$0xff] %v224_v47  ;;  %v226_v48 = vld [vmem:[#allocation1 + $0x30] sm:$0xff]  ;;  %v228_v49 = vld [vmem:[#allocation1 + $0x38] sm:$0xff] }
  0x18   :  { %227 = vst [vmem:[%s330_s1 + $0x30] sm:$0xff] %v226_v48  ;;  %229 = vst [vmem:[%s330_s1 + $0x38] sm:$0xff] %v228_v49 }

// kernel: spectral_conv2d.1
= control target key start
LH: loop header
LB: loop body
LE: loop exit
PB: predicated region body
PF: predicated region fallthrough
CT: control target
= control target key end

     0   :  { %s9300_s18 = smov 0   ;;  %s11038_s0 = inlined_call_operand.vmem [shape: bf16[80,8,4], index: 0, kind: input, shape index: {}]   ;;  %s11039_s1 = inlined_call_operand.vmem [shape: bf16[80,8,4], index: 1, kind: input, shape index: {}]   ;;  %s11040_s2 = inlined_call_operand.vmem [shape: bf16[80,4,4], index: 2, kind: input, shape index: {}]   ;;  %s11041_s3 = inlined_call_operand.vmem [shape: bf16[80,4,4], index: 3, kind: input, shape index: {}]   ;;  %s11042_s4 = inlined_call_operand.vmem [shape: f32[80,8,4], index: 4, kind: output, shape index: {0}]   ;;  %s11043_s5 = inlined_call_operand.vmem [shape: f32[80,8,4], index: 5, kind: output, shape index: {1}]  }
   0x1 LB: > { %s7597_s19 = sadd.s32 4294967295, %s9266_s18   ;;  %p7601_p0 = scmp.ge.s32.totalorder %s9266_s18, 1  ;;  %s9266_s18 = sphi %s9300_s18, %s16_s18  }
   0x2   : > { %p224_p1 = scmp.lt.s32.totalorder %s9266_s18, 3 }
   0x4   : > { %p225_p2 = pnand %p7601_p0, %p224_p1 }
   0x6   : > { %228 = sbr.rel (%p225_p2) target bundleno = 872 (0x368), region = 36 }
   0xd   : > { %s272_s20 = smul.u32 40, %s7597_s19  ;;  %v9268_v0 = vmov 0.0   ;;  %vm9269_vm0 = vmmov 0   ;;  %vm473_vm1 = vcmask 1041408   ;;  %vm469_vm2 = vcmask 31744  }
   0xe   : > { %8090 = vmatprep.subr.bf16.mxu0 %v9268_v0  ;;  %8096 = vmatprep.subr.bf16.mxu1 %v9268_v0 }
   0xf   : > { %p273_p3 = scmp.lt.s32.totalorder %s272_s20, 79  ;;  %8092 = vmatprep.mubr.msk.bf16.mxu0 %vm9269_vm0, %v9268_v0  ;;  %8098 = vmatprep.mubr.msk.bf16.mxu1 %vm9269_vm0, %v9268_v0 }
  0x11   : > { %s11296_s20 = smov (!%p273_p3, %s272_s20), 79 }
  0x12   : > { %s7604_s21 = sshll.u32 %s11296_s20, 1  ;;  %s7602_s22 = sshll.u32 %s11296_s20, 2 }
  0x13   : > { %s9323_s25 = scalar_lea.vmem %s11040_s2, %s7604_s21  ;;  %s9332_s28 = scalar_lea.vmem %s11038_s0, %s7602_s22 }
  0x14   : > { %v389_v1 = vld [vmem:[%s9323_s25] sm:$0x3]  ;;  %v390_v2 = vld [vmem:[%s9323_s25 + $0x2] sm:$0x3]  ;;  %v391_v3 = vld [vmem:[%s9323_s25 + $0x4] sm:$0x3]  ;;  %s9719_s6 = scalar_lea.vmem %s11041_s3, %s7604_s21  ;;  %s9750_s9 = scalar_lea.vmem %s11039_s1, %s7602_s22 }
  0x15   : > { %v9336_v4 = vsel %vm473_vm1, %v389_v1, 0  ;;  %v9339_v5 = vsel %vm473_vm1, %v390_v2, 0  ;;  %v309_v6 = vld [vmem:[%s9332_s28] sm:$0xf]  ;;  %v310_v7 = vld [vmem:[%s9332_s28 + $0x4] sm:$0xf] }
  0x16   : > { %8091 = vmatpush3.bf16.msra.mxu0 %v9336_v4  ;;  %8097 = vmatpush3.bf16.msra.mxu1 %v9339_v5  ;;  %v392_v8 = vld [vmem:[%s9323_s25 + $0x6] sm:$0x3]  ;;  %v9349_v9 = vsel %vm473_vm1, %v391_v3, 0  ;;  %v393_v11 = vld [vmem:[%s9323_s25 + $0x8] sm:$0x3]  ;;  %s7606_s10 = sshll.u32 %s11296_s20, 3 }
  0x17   : > { %8102 = vmatprep.subr.bf16.mxu0 %v9268_v0  ;;  %8108 = vmatprep.subr.bf16.mxu1 %v9268_v0  ;;  %v9352_v10 = vsel %vm473_vm1, %v392_v8, 0  ;;  %v394_v12 = vld [vmem:[%s9323_s25 + $0xa] sm:$0x3]  ;;  %v312_v14 = vld [vmem:[%s9332_s28 + $0xc] sm:$0xf]  ;;  %v9369_v15 = vsel %vm473_vm1, %v393_v11, 0  ;;  %s10438_s13 = scalar_lea.vmem %s11042_s4, %s7606_s10  ;;  %s10953_s16 = scalar_lea.vmem %s11043_s5, %s7606_s10 }
  0x18   : > { %v311_v13 = vld [vmem:[%s9332_s28 + $0x8] sm:$0xf]  ;;  %v9372_v16 = vsel %vm473_vm1, %v394_v12, 0  ;;  %v395_v17 = vld [vmem:[%s9323_s25 + $0xc] sm:$0x3] }
  0x19   : > { %8093 = vmatmul.mubr.msk.bf16.vlgmr.msra.gmra.mrb[0].mxu0 %vm469_vm2, %v309_v6  ;;  %8099 = vmatmul.mubr.msk.bf16.vlgmr.msra.gmra.mrb[0].mxu1 %vm469_vm2, %v310_v7  ;;  %v396_v18 = vld [vmem:[%s9323_s25 + $0xe] sm:$0x3]  ;;  %v313_v19 = vld [vmem:[%s9332_s28 + $0x10] sm:$0xf]  ;;  %v314_v20 = vld [vmem:[%s9332_s28 + $0x14] sm:$0xf] }
  0x1a   : > { %8103 = vmatpush3.bf16.msra.mxu0 %v9349_v9  ;;  %8109 = vmatpush3.bf16.msra.mxu1 %v9352_v10  ;;  %v9389_v21 = vsel %vm473_vm1, %v395_v17, 0  ;;  %v9392_v22 = vsel %vm473_vm1, %v396_v18, 0  ;;  %v397_v23 = vld [vmem:[%s9323_s25 + $0x10] sm:$0x3]  ;;  %v398_v24 = vld [vmem:[%s9323_s25 + $0x12] sm:$0x3] }
  0x1b   : > { %8104 = vmatprep.mubr.msk.bf16.mxu0 %vm9269_vm0, %v9268_v0  ;;  %8110 = vmatprep.mubr.msk.bf16.mxu1 %vm9269_vm0, %v9268_v0  ;;  %v315_v25 = vld [vmem:[%s9332_s28 + $0x18] sm:$0xf]  ;;  %v316_v26 = vld [vmem:[%s9332_s28 + $0x1c] sm:$0xf]  ;;  %v9409_v27 = vsel %vm473_vm1, %v397_v23, 0  ;;  %v9412_v28 = vsel %vm473_vm1, %v398_v24, 0 }
  0x1c   : > { %8114 = vmatprep.subr.bf16.mxu0 %v9268_v0  ;;  %8120 = vmatprep.subr.bf16.mxu1 %v9268_v0  ;;  %v399_v29 = vld [vmem:[%s9323_s25 + $0x14] sm:$0x3]  ;;  %v400_v30 = vld [vmem:[%s9323_s25 + $0x16] sm:$0x3]  ;;  %v317_v31 = vld [vmem:[%s9332_s28 + $0x20] sm:$0xf] }
  0x1d   : > { %v318_v32 = vld [vmem:[%s9332_s28 + $0x24] sm:$0xf]  ;;  %v9429_v33 = vsel %vm473_vm1, %v399_v29, 0  ;;  %v9432_v34 = vsel %vm473_vm1, %v400_v30, 0  ;;  %v401_v35 = vld [vmem:[%s9323_s25 + $0x18] sm:$0x3] }
  0x1e   : > { %v402_v36 = vld [vmem:[%s9323_s25 + $0x1a] sm:$0x3]  ;;  %v319_v37 = vld [vmem:[%s9332_s28 + $0x28] sm:$0xf]  ;;  %v320_v38 = vld [vmem:[%s9332_s28 + $0x2c] sm:$0xf] }
  0x1f   : > { %v9449_v39 = vsel %vm473_vm1, %v401_v35, 0  ;;  %v9452_v40 = vsel %vm473_vm1, %v402_v36, 0  ;;  %v403_v41 = vld [vmem:[%s9323_s25 + $0x1c] sm:$0x3]  ;;  %v404_v42 = vld [vmem:[%s9323_s25 + $0x1e] sm:$0x3] }
  0x20   : > { %v321_v43 = vld [vmem:[%s9332_s28 + $0x30] sm:$0xf]  ;;  %v322_v44 = vld [vmem:[%s9332_s28 + $0x34] sm:$0xf]  ;;  %v9469_v45 = vsel %vm473_vm1, %v403_v41, 0  ;;  %v9472_v46 = vsel %vm473_vm1, %v404_v42, 0 }
  0x21   : > { %8105 = vmatmul.mubr.msk.bf16.vlgmr.msra.gmra.mrb[4].mxu0 %vm469_vm2, %v311_v13  ;;  %8111 = vmatmul.mubr.msk.bf16.vlgmr.msra.gmra.mrb[4].mxu1 %vm469_vm2, %v312_v14  ;;  %v405_v47 = vld [vmem:[%s9323_s25 + $0x20] sm:$0x3]  ;;  %v406_v48 = vld [vmem:[%s9323_s25 + $0x22] sm:$0x3]  ;;  %v323_v49 = vld [vmem:[%s9332_s28 + $0x38] sm:$0xf] }
  0x22   : > { %8115 = vmatpush3.bf16.msra.mxu0 %v9369_v15  ;;  %8121 = vmatpush3.bf16.msra.mxu1 %v9372_v16  ;;  %v324_v50 = vld [vmem:[%s9332_s28 + $0x3c] sm:$0xf]  ;;  %v9489_v51 = vsel %vm473_vm1, %v405_v47, 0  ;;  %v9492_v52 = vsel %vm473_vm1, %v406_v48, 0  ;;  %v407_v53 = vld [vmem:[%s9323_s25 + $0x24] sm:$0x3] }
  0x23   : > { %8116 = vmatprep.mubr.msk.bf16.mxu0 %vm9269_vm0, %v9268_v0  ;;  %8122 = vmatprep.mubr.msk.bf16.mxu1 %vm9269_vm0, %v9268_v0  ;;  %v408_v54 = vld [vmem:[%s9323_s25 + $0x26] sm:$0x3]  ;;  %v325_v55 = vld [vmem:[%s9332_s28 + $0x40] sm:$0xf]  ;;  %v9509_v57 = vsel %vm473_vm1, %v407_v53, 0 }
  0x24   : > { %8126 = vmatprep.subr.bf16.mxu0 %v9268_v0  ;;  %8132 = vmatprep.subr.bf16.mxu1 %v9268_v0  ;;  %v326_v56 = vld [vmem:[%s9332_s28 + $0x44] sm:$0xf]  ;;  %v9512_v58 = vsel %vm473_vm1, %v408_v54, 0  ;;  %v409_v59 = vld [vmem:[%s9323_s25 + $0x28] sm:$0x3] }
  0x25   : > { %v410_v60 = vld [vmem:[%s9323_s25 + $0x2a] sm:$0x3]  ;;  %v328_v62 = vld [vmem:[%s9332_s28 + $0x4c] sm:$0xf]  ;;  %v9529_v63 = vsel %vm473_vm1, %v409_v59, 0 }
  0x26   : > { %v327_v61 = vld [vmem:[%s9332_s28 + $0x48] sm:$0xf]  ;;  %v9532_v1 = vsel %vm473_vm1, %v410_v60, 0  ;;  %v411_v2 = vld [vmem:[%s9323_s25 + $0x2c] sm:$0x3] }
  0x27   : > { %v412_v3 = vld [vmem:[%s9323_s25 + $0x2e] sm:$0x3]  ;;  %v329_v6 = vld [vmem:[%s9332_s28 + $0x50] sm:$0xf]  ;;  %v330_v7 = vld [vmem:[%s9332_s28 + $0x54] sm:$0xf] }
  0x28   : > { %v9549_v8 = vsel %vm473_vm1, %v411_v2, 0  ;;  %v9552_v11 = vsel %vm473_vm1, %v412_v3, 0  ;;  %v413_v12 = vld [vmem:[%s9323_s25 + $0x30] sm:$0x3]  ;;  %v414_v13 = vld [vmem:[%s9323_s25 + $0x32] sm:$0x3] }
  0x29   : > { %8117 = vmatmul.mubr.msk.bf16.vlgmr.msra.gmra.mrb[8].mxu0 %vm469_vm2, %v313_v19  ;;  %8123 = vmatmul.mubr.msk.bf16.vlgmr.msra.gmra.mrb[8].mxu1 %vm469_vm2, %v314_v20  ;;  %11117 = vst [vmem:[#allocation2_spill] sm:$0xff] %v9549_v8  ;;  %11118 = vst [vmem:[#allocation3_spill] sm:$0xff] %v9552_v11  ;;  %v331_v14 = vld [vmem:[%s9332_s28 + $0x58] sm:$0xf]  ;;  %v332_v17 = vld [vmem:[%s9332_s28 + $0x5c] sm:$0xf] }
  0x2a   : > { %8127 = vmatpush3.bf16.msra.mxu0 %v9389_v21  ;;  %8133 = vmatpush3.bf16.msra.mxu1 %v9392_v22  ;;  %v9569_v18 = vsel %vm473_vm1, %v413_v12, 0  ;;  %v9572_v19 = vsel %vm473_vm1, %v414_v13, 0  ;;  %v415_v20 = vld [vmem:[%s9323_s25 + $0x34] sm:$0x3]  ;;  %v416_v23 = vld [vmem:[%s9323_s25 + $0x36] sm:$0x3] }
  0x2b   : > { %8128 = vmatprep.mubr.msk.bf16.mxu0 %vm9269_vm0, %v9268_v0  ;;  %8134 = vmatprep.mubr.msk.bf16.mxu1 %vm9269_vm0, %v9268_v0  ;;  %11119 = vst [vmem:[#allocation4_spill] sm:$0xff] %v9569_v18  ;;  %11120 = vst [vmem:[#allocation5_spill] sm:$0xff] %v9572_v19  ;;  %v333_v24 = vld [vmem:[%s9332_s28 + $0x60] sm:$0xf]  ;;  %v9592_v29 = vsel %vm473_vm1, %v416_v23, 0 }
  0x2c   : > { %8138 = vmatprep.subr.bf16.mxu0 %v9268_v0  ;;  %8144 = vmatprep.subr.bf16.mxu1 %v9268_v0  ;;  %11122 = vst [vmem:[#allocation7_spill] sm:$0xff] %v9592_v29  ;;  %v417_v30 = vld [vmem:[%s9323_s25 + $0x38] sm:$0x3]  ;;  %v336_v35 = vld [vmem:[%s9332_s28 + $0x6c] sm:$0xf] }
  0x2d   : > { %v9609_v36 = vsel %vm473_vm1, %v417_v30, 0  ;;  %v420_v41 = vld [vmem:[%s9323_s25 + $0x3e] sm:$0x3]  ;;  %v337_v42 = vld [vmem:[%s9332_s28 + $0x70] sm:$0xf] }
  0x2e   : > { %11123 = vst [vmem:[#allocation8_spill] sm:$0xff] %v9609_v36  ;;  %v9632_v47 = vsel %vm473_vm1, %v420_v41, 0  ;;  %v421_v48 = vld [vmem:[%s9323_s25 + $0x40] sm:$0x3]  ;;  %v340_v53 = vld [vmem:[%s9332_s28 + $0x7c] sm:$0xf] }
  0x2f   : > { %11126 = vst [vmem:[#allocation11_spill] sm:$0xff] %v9632_v47  ;;  %v9649_v54 = vsel %vm473_vm1, %v421_v48, 0  ;;  %v424_v59 = vld [vmem:[%s9323_s25 + $0x46] sm:$0x3]  ;;  %v341_v60 = vld [vmem:[%s9332_s28 + $0x80] sm:$0xf] }
  0x30   : > { %11127 = vst [vmem:[#allocation12_spill] sm:$0xff] %v9649_v54  ;;  %v9672_v2 = vsel %vm473_vm1, %v424_v59, 0  ;;  %v425_v3 = vld [vmem:[%s9323_s25 + $0x48] sm:$0x3]  ;;  %v344_v12 = vld [vmem:[%s9332_s28 + $0x8c] sm:$0xf] }
  0x31   : > { %8129 = vmatmul.mubr.msk.bf16.vlgmr.msra.gmra.mrb[12].mxu0 %vm469_vm2, %v315_v25  ;;  %8135 = vmatmul.mubr.msk.bf16.vlgmr.msra.gmra.mrb[12].mxu1 %vm469_vm2, %v316_v26  ;;  %v334_v25 = vld [vmem:[%s9332_s28 + $0x64] sm:$0xf]  ;;  %v9589_v26 = vsel %vm473_vm1, %v415_v20, 0  ;;  %11130 = vst [vmem:[#allocation15_spill] sm:$0xff] %v9672_v2  ;;  %v9689_v13 = vsel %vm473_vm1, %v425_v3, 0 }
  0x32   : > { %8139 = vmatpush3.bf16.msra.mxu0 %v9409_v27  ;;  %8145 = vmatpush3.bf16.msra.mxu1 %v9412_v28  ;;  %11121 = vst [vmem:[#allocation6_spill] sm:$0xff] %v9589_v26  ;;  %11131 = vst [vmem:[#allocation16_spill] sm:$0xff] %v9689_v13  ;;  %v428_v20 = vld [vmem:[%s9323_s25 + $0x4e] sm:$0x3]  ;;  %v345_v23 = vld [vmem:[%s9332_s28 + $0x90] sm:$0xf] }
  0x33   : > { %8140 = vmatprep.mubr.msk.bf16.mxu0 %vm9269_vm0, %v9268_v0  ;;  %8146 = vmatprep.mubr.msk.bf16.mxu1 %vm9269_vm0, %v9268_v0  ;;  %v9712_v30 = vsel %vm473_vm1, %v428_v20, 0  ;;  %v432_v48 = vld [vmem:[%s9719_s6 + $0x6] sm:$0x3]  ;;  %v433_v59 = vld [vmem:[%s9719_s6 + $0x8] sm:$0x3] }
  0x34   : > { %8150 = vmatprep.subr.bf16.mxu0 %v9268_v0  ;;  %8156 = vmatprep.subr.bf16.mxu1 %v9268_v0  ;;  %11134 = vst [vmem:[#allocation19_spill] sm:$0xff] %v9712_v30  ;;  %v9790_v3 = vld [vmem:[%s9750_s9 + $0xc] sm:$0xf]  ;;  %v9813_v20 = vld [vmem:[%s9750_s9 + $0x10] sm:$0xf] }
  0x39   : > { %8141 = vmatmul.mubr.msk.bf16.vlgmr.msra.gmra.mrb[16].mxu0 %vm469_vm2, %v317_v31  ;;  %8147 = vmatmul.mubr.msk.bf16.vlgmr.msra.gmra.mrb[16].mxu1 %vm469_vm2, %v318_v32  ;;  %v418_v31 = vld [vmem:[%s9323_s25 + $0x3a] sm:$0x3]  ;;  %v335_v32 = vld [vmem:[%s9332_s28 + $0x68] sm:$0xf] }
  0x3a   : > { %8151 = vmatpush3.bf16.msra.mxu0 %v9429_v33  ;;  %8157 = vmatpush3.bf16.msra.mxu1 %v9432_v34 }
  0x3b   : > { %8152 = vmatprep.mubr.msk.bf16.mxu0 %vm9269_vm0, %v9268_v0  ;;  %8158 = vmatprep.mubr.msk.bf16.mxu1 %vm9269_vm0, %v9268_v0 }
  0x3c   : > { %8162 = vmatprep.subr.bf16.mxu0 %v9268_v0  ;;  %8168 = vmatprep.subr.bf16.mxu1 %v9268_v0 }
  0x41   : > { %8153 = vmatmul.mubr.msk.bf16.vlgmr.msra.gmra.mrb[20].mxu0 %vm469_vm2, %v319_v37  ;;  %8159 = vmatmul.mubr.msk.bf16.vlgmr.msra.gmra.mrb[20].mxu1 %vm469_vm2, %v320_v38  ;;  %v9612_v37 = vsel %vm473_vm1, %v418_v31, 0  ;;  %v419_v38 = vld [vmem:[%s9323_s25 + $0x3c] sm:$0x3]  ;;  %v429_v31 = vld [vmem:[%s9719_s6] sm:$0x3] }
  0x42   : > { %8163 = vmatpush3.bf16.msra.mxu0 %v9449_v39  ;;  %8169 = vmatpush3.bf16.msra.mxu1 %v9452_v40  ;;  %11124 = vst [vmem:[#allocation9_spill] sm:$0xff] %v9612_v37  ;;  %v9736_v41 = vsel %vm473_vm1, %v429_v31, 0 }
  0x43   : > { %8164 = vmatprep.mubr.msk.bf16.mxu0 %vm9269_vm0, %v9268_v0  ;;  %8170 = vmatprep.mubr.msk.bf16.mxu1 %vm9269_vm0, %v9268_v0  ;;  %11135 = vst [vmem:[#allocation20_spill] sm:$0xff] %v9736_v41 }
  0x44   : > { %8174 = vmatprep.subr.bf16.mxu0 %v9268_v0  ;;  %8180 = vmatprep.subr.bf16.mxu1 %v9268_v0 }
  0x49   : > { %8165 = vmatmul.mubr.msk.bf16.vlgmr.msra.gmra.mrb[24].mxu0 %vm469_vm2, %v321_v43  ;;  %8171 = vmatmul.mubr.msk.bf16.vlgmr.msra.gmra.mrb[24].mxu1 %vm469_vm2, %v322_v44  ;;  %v338_v43 = vld [vmem:[%s9332_s28 + $0x74] sm:$0xf]  ;;  %v9629_v44 = vsel %vm473_vm1, %v419_v38, 0  ;;  %v348_v38 = vld [vmem:[%s9332_s28 + $0x9c] sm:$0xf] }
  0x4a   : > { %8175 = vmatpush3.bf16.msra.mxu0 %v9469_v45  ;;  %8181 = vmatpush3.bf16.msra.mxu1 %v9472_v46  ;;  %11125 = vst [vmem:[#allocation10_spill] sm:$0xff] %v9629_v44 }
  0x4b   : > { %8176 = vmatprep.mubr.msk.bf16.mxu0 %vm9269_vm0, %v9268_v0  ;;  %8182 = vmatprep.mubr.msk.bf16.mxu1 %vm9269_vm0, %v9268_v0 }
  0x4c   : > { %8186 = vmatprep.subr.bf16.mxu0 %v9268_v0  ;;  %8192 = vmatprep.subr.bf16.mxu1 %v9268_v0 }
  0x51   : > { %8177 = vmatmul.mubr.msk.bf16.vlgmr.msra.gmra.mrb[28].mxu0 %vm469_vm2, %v323_v49  ;;  %8183 = vmatmul.mubr.msk.bf16.vlgmr.msra.gmra.mrb[28].mxu1 %vm469_vm2, %v324_v50  ;;  %v422_v49 = vld [vmem:[%s9323_s25 + $0x42] sm:$0x3]  ;;  %v339_v50 = vld [vmem:[%s9332_s28 + $0x78] sm:$0xf] }
  0x52   : > { %8187 = vmatpush3.bf16.msra.mxu0 %v9489_v51  ;;  %8193 = vmatpush3.bf16.msra.mxu1 %v9492_v52 }
  0x53   : > { %8188 = vmatprep.mubr.msk.bf16.mxu0 %vm9269_vm0, %v9268_v0  ;;  %8194 = vmatprep.mubr.msk.bf16.mxu1 %vm9269_vm0, %v9268_v0 }
  0x54   : > { %8198 = vmatprep.subr.bf16.mxu0 %v9268_v0  ;;  %8204 = vmatprep.subr.bf16.mxu1 %v9268_v0 }
  0x59   : > { %8189 = vmatmul.mubr.msk.bf16.vlgmr.msra.gmra.mrb[32].mxu0 %vm469_vm2, %v325_v55  ;;  %8195 = vmatmul.mubr.msk.bf16.vlgmr.msra.gmra.mrb[32].mxu1 %vm469_vm2, %v326_v56  ;;  %v9652_v55 = vsel %vm473_vm1, %v422_v49, 0  ;;  %v423_v56 = vld [vmem:[%s9323_s25 + $0x44] sm:$0x3]  ;;  %v9761_v49 = vld [vmem:[%s9750_s9] sm:$0xf] }
  0x5a   : > { %8199 = vmatpush3.bf16.msra.mxu0 %v9509_v57  ;;  %8205 = vmatpush3.bf16.msra.mxu1 %v9512_v58  ;;  %11128 = vst [vmem:[#allocation13_spill] sm:$0xff] %v9652_v55 }
  0x5b   : > { %8200 = vmatprep.mubr.msk.bf16.mxu0 %vm9269_vm0, %v9268_v0  ;;  %8206 = vmatprep.mubr.msk.bf16.mxu1 %vm9269_vm0, %v9268_v0 }
  0x5c   : > { %8210 = vmatprep.subr.bf16.mxu0 %v9268_v0  ;;  %8216 = vmatprep.subr.bf16.mxu1 %v9268_v0 }
  0x61   : > { %8201 = vmatmul.mubr.msk.bf16.vlgmr.msra.gmra.mrb[36].mxu0 %vm469_vm2, %v327_v61  ;;  %8207 = vmatmul.mubr.msk.bf16.vlgmr.msra.gmra.mrb[36].mxu1 %vm469_vm2, %v328_v62  ;;  %v342_v61 = vld [vmem:[%s9332_s28 + $0x84] sm:$0xf]  ;;  %v9669_v62 = vsel %vm473_vm1, %v423_v56, 0  ;;  %v9770_v56 = vsel %vm473_vm1, %v432_v48, 0 }
  0x62   : > { %8211 = vmatpush3.bf16.msra.mxu0 %v9529_v63  ;;  %8217 = vmatpush3.bf16.msra.mxu1 %v9532_v1  ;;  %11129 = vst [vmem:[#allocation14_spill] sm:$0xff] %v9669_v62  ;;  %11138 = vst [vmem:[#allocation23_spill] sm:$0xff] %v9770_v56 }
  0x63   : > { %8212 = vmatprep.mubr.msk.bf16.mxu0 %vm9269_vm0, %v9268_v0  ;;  %8218 = vmatprep.mubr.msk.bf16.mxu1 %vm9269_vm0, %v9268_v0 }
  0x64   : > { %8222 = vmatprep.subr.bf16.mxu0 %v9268_v0  ;;  %8228 = vmatprep.subr.bf16.mxu1 %v9268_v0 }
  0x69   : > { %8213 = vmatmul.mubr.msk.bf16.vlgmr.msra.gmra.mrb[40].mxu0 %vm469_vm2, %v329_v6  ;;  %8219 = vmatmul.mubr.msk.bf16.vlgmr.msra.gmra.mrb[40].mxu1 %vm469_vm2, %v330_v7  ;;  %v426_v6 = vld [vmem:[%s9323_s25 + $0x4a] sm:$0x3] }
  0x6a   : > { %8223 = vmatpush3.bf16.msra.mxu0 %v9549_v8  ;;  %8229 = vmatpush3.bf16.msra.mxu1 %v9552_v11  ;;  %v343_v7 = vld [vmem:[%s9332_s28 + $0x88] sm:$0xf] }
  0x6b   : > { %8224 = vmatprep.mubr.msk.bf16.mxu0 %vm9269_vm0, %v9268_v0  ;;  %8230 = vmatprep.mubr.msk.bf16.mxu1 %vm9269_vm0, %v9268_v0 }
  0x6c   : > { %8234 = vmatprep.subr.bf16.mxu0 %v9268_v0  ;;  %8240 = vmatprep.subr.bf16.mxu1 %v9268_v0 }
  0x71   : > { %8225 = vmatmul.mubr.msk.bf16.vlgmr.msra.gmra.mrb[44].mxu0 %vm469_vm2, %v331_v14  ;;  %8231 = vmatmul.mubr.msk.bf16.vlgmr.msra.gmra.mrb[44].mxu1 %vm469_vm2, %v332_v17  ;;  %v9692_v14 = vsel %vm473_vm1, %v426_v6, 0  ;;  %v427_v17 = vld [vmem:[%s9323_s25 + $0x4c] sm:$0x3]  ;;  %v9793_v6 = vsel %vm473_vm1, %v433_v59, 0 }
  0x72   : > { %8235 = vmatpush3.bf16.msra.mxu0 %v9569_v18  ;;  %8241 = vmatpush3.bf16.msra.mxu1 %v9572_v19  ;;  %11132 = vst [vmem:[#allocation17_spill] sm:$0xff] %v9692_v14  ;;  %11139 = vst [vmem:[#allocation24_spill] sm:$0xff] %v9793_v6 }
  0x73   : > { %8236 = vmatprep.mubr.msk.bf16.mxu0 %vm9269_vm0, %v9268_v0  ;;  %8242 = vmatprep.mubr.msk.bf16.mxu1 %vm9269_vm0, %v9268_v0 }
  0x74   : > { %8246 = vmatprep.subr.bf16.mxu0 %v9268_v0  ;;  %8252 = vmatprep.subr.bf16.mxu1 %v9268_v0 }
  0x79   : > { %8237 = vmatmul.mubr.msk.bf16.vlgmr.msra.gmra.mrb[48].mxu0 %vm469_vm2, %v333_v24  ;;  %8243 = vmatmul.mubr.msk.bf16.vlgmr.msra.gmra.mrb[48].mxu1 %vm469_vm2, %v334_v25  ;;  %v346_v24 = vld [vmem:[%s9332_s28 + $0x94] sm:$0xf]  ;;  %v9709_v25 = vsel %vm473_vm1, %v427_v17, 0  ;;  %v436_v17 = vld [vmem:[%s9719_s6 + $0xe] sm:$0x3] }
  0x7a   : > { %8247 = vmatpush3.bf16.msra.mxu0 %v9589_v26  ;;  %8253 = vmatpush3.bf16.msra.mxu1 %v9592_v29  ;;  %11133 = vst [vmem:[#allocation18_spill] sm:$0xff] %v9709_v25  ;;  %v9822_v31 = vsel %vm473_vm1, %v436_v17, 0  ;;  %v9865_v17 = vld [vmem:[%s9750_s9 + $0x20] sm:$0xf] }
  0x7b   : > { %8248 = vmatprep.mubr.msk.bf16.mxu0 %vm9269_vm0, %v9268_v0  ;;  %8254 = vmatprep.mubr.msk.bf16.mxu1 %vm9269_vm0, %v9268_v0  ;;  %11142 = vst [vmem:[#allocation27_spill] sm:$0xff] %v9822_v31 }
  0x7c   : > { %8258 = vmatprep.subr.bf16.mxu0 %v9268_v0  ;;  %8264 = vmatprep.subr.bf16.mxu1 %v9268_v0 }
  0x81   : > { %8249 = vmatmul.mubr.msk.bf16.vlgmr.msra.gmra.mrb[52].mxu0 %vm469_vm2, %v335_v32  ;;  %8255 = vmatmul.mubr.msk.bf16.vlgmr.msra.gmra.mrb[52].mxu1 %vm469_vm2, %v336_v35  ;;  %v430_v32 = vld [vmem:[%s9719_s6 + $0x2] sm:$0x3]  ;;  %v347_v35 = vld [vmem:[%s9332_s28 + $0x98] sm:$0xf] }
  0x82   : > { %8259 = vmatpush3.bf16.msra.mxu0 %v9609_v36  ;;  %8265 = vmatpush3.bf16.msra.mxu1 %v9612_v37 }
  0x83   : > { %8260 = vmatprep.mubr.msk.bf16.mxu0 %vm9269_vm0, %v9268_v0  ;;  %8266 = vmatprep.mubr.msk.bf16.mxu1 %vm9269_vm0, %v9268_v0 }
  0x84   : > { %8270 = vmatprep.subr.bf16.mxu0 %v9268_v0  ;;  %8276 = vmatprep.subr.bf16.mxu1 %v9268_v0 }
  0x89   : > { %8261 = vmatmul.mubr.msk.bf16.vlgmr.msra.gmra.mrb[56].mxu0 %vm469_vm2, %v337_v42  ;;  %8267 = vmatmul.mubr.msk.bf16.vlgmr.msra.gmra.mrb[56].mxu1 %vm469_vm2, %v338_v43  ;;  %v9739_v42 = vsel %vm473_vm1, %v430_v32, 0  ;;  %v431_v43 = vld [vmem:[%s9719_s6 + $0x4] sm:$0x3]  ;;  %v437_v32 = vld [vmem:[%s9719_s6 + $0x10] sm:$0x3] }
  0x8a   : > { %8271 = vmatpush3.bf16.msra.mxu0 %v9629_v44  ;;  %8277 = vmatpush3.bf16.msra.mxu1 %v9632_v47  ;;  %11136 = vst [vmem:[#allocation21_spill] sm:$0xff] %v9739_v42  ;;  %v9845_v48 = vsel %vm473_vm1, %v437_v32, 0  ;;  %v9868_v32 = vld [vmem:[%s9750_s9 + $0x24] sm:$0xf] }
  0x8b   : > { %8272 = vmatprep.mubr.msk.bf16.mxu0 %vm9269_vm0, %v9268_v0  ;;  %8278 = vmatprep.mubr.msk.bf16.mxu1 %vm9269_vm0, %v9268_v0  ;;  %11143 = vst [vmem:[#allocation28_spill] sm:$0xff] %v9845_v48 }
  0x8c   : > { %8282 = vmatprep.subr.bf16.mxu0 %v9268_v0  ;;  %8288 = vmatprep.subr.bf16.mxu1 %v9268_v0 }
  0x91   : > { %8273 = vmatmul.mubr.msk.bf16.vlgmr.msra.gmra.mrb[60].mxu0 %vm469_vm2, %v339_v50  ;;  %8279 = vmatmul.mubr.msk.bf16.vlgmr.msra.gmra.mrb[60].mxu1 %vm469_vm2, %v340_v53  ;;  %v9764_v50 = vld [vmem:[%s9750_s9 + $0x4] sm:$0xf]  ;;  %v9767_v53 = vsel %vm473_vm1, %v431_v43, 0  ;;  %v9842_v43 = vld [vmem:[%s9750_s9 + $0x1c] sm:$0xf] }
  0x92   : > { %8283 = vmatpush3.bf16.msra.mxu0 %v9649_v54  ;;  %8289 = vmatpush3.bf16.msra.mxu1 %v9652_v55  ;;  %11137 = vst [vmem:[#allocation22_spill] sm:$0xff] %v9767_v53 }
  0x93   : > { %8284 = vmatprep.mubr.msk.bf16.mxu0 %vm9269_vm0, %v9268_v0  ;;  %8290 = vmatprep.mubr.msk.bf16.mxu1 %vm9269_vm0, %v9268_v0 }
  0x94   : > { %8294 = vmatprep.subr.bf16.mxu0 %v9268_v0  ;;  %8300 = vmatprep.subr.bf16.mxu1 %v9268_v0 }
  0x99   : > { %8285 = vmatmul.mubr.msk.bf16.vlgmr.msra.gmra.mrb[64].mxu0 %vm469_vm2, %v341_v60  ;;  %8291 = vmatmul.mubr.msk.bf16.vlgmr.msra.gmra.mrb[64].mxu1 %vm469_vm2, %v342_v61  ;;  %v434_v60 = vld [vmem:[%s9719_s6 + $0xa] sm:$0x3] }
  0x9a   : > { %8295 = vmatpush3.bf16.msra.mxu0 %v9669_v62  ;;  %8301 = vmatpush3.bf16.msra.mxu1 %v9672_v2  ;;  %v9787_v61 = vld [vmem:[%s9750_s9 + $0x8] sm:$0xf] }
  0x9b   : > { %8296 = vmatprep.mubr.msk.bf16.mxu0 %vm9269_vm0, %v9268_v0  ;;  %8302 = vmatprep.mubr.msk.bf16.mxu1 %vm9269_vm0, %v9268_v0 }
  0x9c   : > { %8306 = vmatprep.subr.bf16.mxu0 %v9268_v0  ;;  %8312 = vmatprep.subr.bf16.mxu1 %v9268_v0 }
  0xa1   : > { %8297 = vmatmul.mubr.msk.bf16.vlgmr.msra.gmra.mrb[68].mxu0 %vm469_vm2, %v343_v7  ;;  %8303 = vmatmul.mubr.msk.bf16.vlgmr.msra.gmra.mrb[68].mxu1 %vm469_vm2, %v344_v12  ;;  %v9796_v7 = vsel %vm473_vm1, %v434_v60, 0  ;;  %v435_v12 = vld [vmem:[%s9719_s6 + $0xc] sm:$0x3]  ;;  %v439_v60 = vld [vmem:[%s9719_s6 + $0x14] sm:$0x3] }
  0xa2   : > { %8307 = vmatpush3.bf16.msra.mxu0 %v9689_v13  ;;  %8313 = vmatpush3.bf16.msra.mxu1 %v9692_v14  ;;  %11140 = vst [vmem:[#allocation25_spill] sm:$0xff] %v9796_v7 }
  0xa3   : > { %8308 = vmatprep.mubr.msk.bf16.mxu0 %vm9269_vm0, %v9268_v0  ;;  %8314 = vmatprep.mubr.msk.bf16.mxu1 %vm9269_vm0, %v9268_v0 }
  0xa4   : > { %8318 = vmatprep.subr.bf16.mxu0 %v9268_v0  ;;  %8324 = vmatprep.subr.bf16.mxu1 %v9268_v0 }
  0xa9   : > { %8309 = vmatmul.mubr.msk.bf16.vlgmr.msra.gmra.mrb[72].mxu0 %vm469_vm2, %v345_v23  ;;  %8315 = vmatmul.mubr.msk.bf16.vlgmr.msra.gmra.mrb[72].mxu1 %vm469_vm2, %v346_v24  ;;  %v9816_v23 = vld [vmem:[%s9750_s9 + $0x14] sm:$0xf]  ;;  %v9819_v24 = vsel %vm473_vm1, %v435_v12, 0 }
  0xaa   : > { %8319 = vmatpush3.bf16.msra.mxu0 %v9709_v25  ;;  %8325 = vmatpush3.bf16.msra.mxu1 %v9712_v30  ;;  %11141 = vst [vmem:[#allocation26_spill] sm:$0xff] %v9819_v24  ;;  %v440_v12 = vld [vmem:[%s9719_s6 + $0x16] sm:$0x3]  ;;  %v9950_v30 = vld [vmem:[%s9750_s9 + $0x3c] sm:$0xf] }
  0xab   : > { %8320 = vmatprep.mubr.msk.bf16.mxu0 %vm9269_vm0, %v9268_v0  ;;  %8326 = vmatprep.mubr.msk.bf16.mxu1 %vm9269_vm0, %v9268_v0 }
  0xac   : > { %8330 = vmatprep.subr.bf16.mxu0 %v9268_v0  ;;  %8336 = vmatprep.subr.bf16.mxu1 %v9268_v0 }
  0xb1   : > { %8321 = vmatmul.mubr.msk.bf16.vlgmr.msra.gmra.mrb[76].mxu0 %vm469_vm2, %v347_v35  ;;  %8327 = vmatmul.mubr.msk.bf16.vlgmr.msra.gmra.mrb[76].mxu1 %vm469_vm2, %v348_v38  ;;  %v438_v35 = vld [vmem:[%s9719_s6 + $0x12] sm:$0x3]  ;;  %v9839_v38 = vld [vmem:[%s9750_s9 + $0x18] sm:$0xf] }
  0xb2   : > { %8331 = vmatpush3.bf16.msra.mxu0 %v9736_v41  ;;  %8337 = vmatpush3.bf16.msra.mxu1 %v9739_v42  ;;  %v9848_v59 = vsel %vm473_vm1, %v438_v35, 0  ;;  %v9871_v35 = vsel %vm473_vm1, %v439_v60, 0  ;;  %v441_v60 = vld [vmem:[%s9719_s6 + $0x18] sm:$0x3] }
  0xb3   : > { %8332 = vmatprep.mubr.msk.bf16.mxu0 %vm9269_vm0, %v9268_v0  ;;  %8338 = vmatprep.mubr.msk.bf16.mxu1 %vm9269_vm0, %v9268_v0  ;;  %11144 = vst [vmem:[#allocation29_spill] sm:$0xff] %v9848_v59  ;;  %11145 = vst [vmem:[#allocation30_spill] sm:$0xff] %v9871_v35  ;;  %v9947_v41 = vld [vmem:[%s9750_s9 + $0x38] sm:$0xf] }
  0xb4   : > { %8342 = vmatprep.subr.bf16.mxu0 %v9268_v0  ;;  %8348 = vmatprep.subr.bf16.mxu1 %v9268_v0 }
  0xb9   : > { %8333 = vmatmul.mubr.msk.bf16.vlgmr.msra.gmra.mrb[80].mxu0 %vm469_vm2, %v9761_v49  ;;  %8339 = vmatmul.mubr.msk.bf16.vlgmr.msra.gmra.mrb[80].mxu1 %vm469_vm2, %v9764_v50 }
  0xba   : > { %8343 = vmatpush3.bf16.msra.mxu0 %v9767_v53  ;;  %8349 = vmatpush3.bf16.msra.mxu1 %v9770_v56  ;;  %v446_v56 = vld [vmem:[%s9719_s6 + $0x22] sm:$0x3] }
  0xbb   : > { %8344 = vmatprep.mubr.msk.bf16.mxu0 %vm9269_vm0, %v9268_v0  ;;  %8350 = vmatprep.mubr.msk.bf16.mxu1 %vm9269_vm0, %v9268_v0  ;;  %v9956_v2 = vsel %vm473_vm1, %v446_v56, 0 }
  0xbc   : > { %8354 = vmatprep.subr.bf16.mxu0 %v9268_v0  ;;  %8360 = vmatprep.subr.bf16.mxu1 %v9268_v0  ;;  %11152 = vst [vmem:[#allocation37_spill] sm:$0xff] %v9956_v2 }
  0xc1   : > { %8345 = vmatmul.mubr.msk.bf16.vlgmr.msra.gmra.mrb[84].mxu0 %vm469_vm2, %v9787_v61  ;;  %8351 = vmatmul.mubr.msk.bf16.vlgmr.msra.gmra.mrb[84].mxu1 %vm469_vm2, %v9790_v3 }
  0xc2   : > { %8355 = vmatpush3.bf16.msra.mxu0 %v9793_v6  ;;  %8361 = vmatpush3.bf16.msra.mxu1 %v9796_v7  ;;  %v9920_v7 = vld [vmem:[%s9750_s9 + $0x34] sm:$0xf]  ;;  %v445_v6 = vld [vmem:[%s9719_s6 + $0x20] sm:$0x3] }
  0xc3   : > { %8356 = vmatprep.mubr.msk.bf16.mxu0 %vm9269_vm0, %v9268_v0  ;;  %8362 = vmatprep.mubr.msk.bf16.mxu1 %vm9269_vm0, %v9268_v0  ;;  %v9953_v13 = vsel %vm473_vm1, %v445_v6, 0 }
  0xc4   : > { %8366 = vmatprep.subr.bf16.mxu0 %v9268_v0  ;;  %8372 = vmatprep.subr.bf16.mxu1 %v9268_v0  ;;  %11151 = vst [vmem:[#allocation36_spill] sm:$0xff] %v9953_v13 }
  0xc9   : > { %8357 = vmatmul.mubr.msk.bf16.vlgmr.msra.gmra.mrb[88].mxu0 %vm469_vm2, %v9813_v20  ;;  %8363 = vmatmul.mubr.msk.bf16.vlgmr.msra.gmra.mrb[88].mxu1 %vm469_vm2, %v9816_v23 }
  0xca   : > { %8367 = vmatpush3.bf16.msra.mxu0 %v9819_v24  ;;  %8373 = vmatpush3.bf16.msra.mxu1 %v9822_v31  ;;  %v9917_v24 = vld [vmem:[%s9750_s9 + $0x30] sm:$0xf] }
  0xcb   : > { %8368 = vmatprep.mubr.msk.bf16.mxu0 %vm9269_vm0, %v9268_v0  ;;  %8374 = vmatprep.mubr.msk.bf16.mxu1 %vm9269_vm0, %v9268_v0 }
  0xcc   : > { %8378 = vmatprep.subr.bf16.mxu0 %v9268_v0  ;;  %8384 = vmatprep.subr.bf16.mxu1 %v9268_v0 }
  0xd1   : > { %8369 = vmatmul.mubr.msk.bf16.vlgmr.msra.gmra.mrb[92].mxu0 %vm469_vm2, %v9839_v38  ;;  %8375 = vmatmul.mubr.msk.bf16.vlgmr.msra.gmra.mrb[92].mxu1 %vm469_vm2, %v9842_v43 }
  0xd2   : > { %8379 = vmatpush3.bf16.msra.mxu0 %v9845_v48  ;;  %8385 = vmatpush3.bf16.msra.mxu1 %v9848_v59  ;;  %v9874_v59 = vsel %vm473_vm1, %v440_v12, 0  ;;  %v442_v12 = vld [vmem:[%s9719_s6 + $0x1a] sm:$0x3]  ;;  %v9891_v48 = vld [vmem:[%s9750_s9 + $0x28] sm:$0xf] }
  0xd3   : > { %8380 = vmatprep.mubr.msk.bf16.mxu0 %vm9269_vm0, %v9268_v0  ;;  %8386 = vmatprep.mubr.msk.bf16.mxu1 %vm9269_vm0, %v9268_v0  ;;  %11146 = vst [vmem:[#allocation31_spill] sm:$0xff] %v9874_v59  ;;  %v9900_v31 = vsel %vm473_vm1, %v442_v12, 0  ;;  %v444_v12 = vld [vmem:[%s9719_s6 + $0x1e] sm:$0x3] }
  0xd4   : > { %8390 = vmatprep.subr.bf16.mxu0 %v9268_v0  ;;  %8396 = vmatprep.subr.bf16.mxu1 %v9268_v0  ;;  %11148 = vst [vmem:[#allocation33_spill] sm:$0xff] %v9900_v31 }
  0xd9   : > { %8381 = vmatmul.mubr.msk.bf16.vlgmr.msra.gmra.mrb[96].mxu0 %vm469_vm2, %v9865_v17  ;;  %8387 = vmatmul.mubr.msk.bf16.vlgmr.msra.gmra.mrb[96].mxu1 %vm469_vm2, %v9868_v32 }
  0xda   : > { %8391 = vmatpush3.bf16.msra.mxu0 %v9871_v35  ;;  %8397 = vmatpush3.bf16.msra.mxu1 %v9874_v59  ;;  %v9894_v35 = vld [vmem:[%s9750_s9 + $0x2c] sm:$0xf]  ;;  %v9897_v59 = vsel %vm473_vm1, %v441_v60, 0  ;;  %v443_v60 = vld [vmem:[%s9719_s6 + $0x1c] sm:$0x3] }
  0xdb   : > { %8392 = vmatprep.mubr.msk.bf16.mxu0 %vm9269_vm0, %v9268_v0  ;;  %8398 = vmatprep.mubr.msk.bf16.mxu1 %vm9269_vm0, %v9268_v0  ;;  %11147 = vst [vmem:[#allocation32_spill] sm:$0xff] %v9897_v59 }
  0xdc   : > { %8402 = vmatprep.subr.bf16.mxu0 %v9268_v0  ;;  %8408 = vmatprep.subr.bf16.mxu1 %v9268_v0 }
  0xe1   : > { %8393 = vmatmul.mubr.msk.bf16.vlgmr.msra.gmra.mrb[100].mxu0 %vm469_vm2, %v9891_v48  ;;  %8399 = vmatmul.mubr.msk.bf16.vlgmr.msra.gmra.mrb[100].mxu1 %vm469_vm2, %v9894_v35 }
  0xe2   : > { %8403 = vmatpush3.bf16.msra.mxu0 %v9897_v59  ;;  %8409 = vmatpush3.bf16.msra.mxu1 %v9900_v31  ;;  %v9923_v31 = vsel %vm473_vm1, %v443_v60, 0  ;;  %v9926_v59 = vsel %vm473_vm1, %v444_v12, 0 }
  0xe3   : > { %8404 = vmatprep.mubr.msk.bf16.mxu0 %vm9269_vm0, %v9268_v0  ;;  %8410 = vmatprep.mubr.msk.bf16.mxu1 %vm9269_vm0, %v9268_v0  ;;  %11149 = vst [vmem:[#allocation34_spill] sm:$0xff] %v9923_v31  ;;  %11150 = vst [vmem:[#allocation35_spill] sm:$0xff] %v9926_v59 }
  0xe4   : > { %8414 = vmatprep.subr.bf16.mxu0 %v9268_v0  ;;  %8420 = vmatprep.subr.bf16.mxu1 %v9268_v0 }
  0xe9   : > { %8405 = vmatmul.mubr.msk.bf16.vlgmr.msra.gmra.mrb[104].mxu0 %vm469_vm2, %v9917_v24  ;;  %8411 = vmatmul.mubr.msk.bf16.vlgmr.msra.gmra.mrb[104].mxu1 %vm469_vm2, %v9920_v7 }
  0xea   : > { %8415 = vmatpush3.bf16.msra.mxu0 %v9923_v31  ;;  %8421 = vmatpush3.bf16.msra.mxu1 %v9926_v59 }
  0xeb   : > { %8416 = vmatprep.mubr.msk.bf16.mxu0 %vm9269_vm0, %v9268_v0  ;;  %8422 = vmatprep.mubr.msk.bf16.mxu1 %vm9269_vm0, %v9268_v0 }
  0xec   : > { %v9938_v60 = vpop.f32.mrb[0].mxu0  ;;  %v9940_v12 = vpop.f32.mrb[0].mxu1  ;;  %8426 = vmatprep.subr.bf16.mxu0 %v9268_v0  ;;  %8432 = vmatprep.subr.bf16.mxu1 %v9268_v0 }
  0xed   : > { %v8094_v53 = vpop.f32.mrb[1].mxu0  ;;  %v8100_v31 = vpop.f32.mrb[1].mxu1 }
  0xee   : > { %v514_v42 = vpop.f32.mrb[2].mxu0  ;;  %v560_v59 = vpop.f32.mrb[2].mxu1  ;;  %v448_v53 = vld [vmem:[%s9719_s6 + $0x26] sm:$0x3] }
  0xef   : > { %v8095_v25 = vpop.f32.mrb[3].mxu0  ;;  %v8101_v14 = vpop.f32.mrb[3].mxu1  ;;  %v447_v42 = vld [vmem:[%s9719_s6 + $0x24] sm:$0x3]  ;;  %v9986_v47 = vsel %vm473_vm1, %v448_v53, 0 }
  0xf0   : > { %v9983_v54 = vsel %vm473_vm1, %v447_v42, 0  ;;  %11154 = vst [vmem:[#allocation39_spill] sm:$0xff] %v9986_v47  ;;  %v449_v42 = vld [vmem:[%s9719_s6 + $0x28] sm:$0x3]  ;;  %v450_v53 = vld [vmem:[%s9719_s6 + $0x2a] sm:$0x3] }
  0xf1   : > { %8417 = vmatmul.mubr.msk.bf16.vlgmr.msra.gmra.mrb[108].mxu0 %vm469_vm2, %v9947_v41  ;;  %8423 = vmatmul.mubr.msk.bf16.vlgmr.msra.gmra.mrb[108].mxu1 %vm469_vm2, %v9950_v30  ;;  %11153 = vst [vmem:[#allocation38_spill] sm:$0xff] %v9983_v54  ;;  %v10013_v36 = vsel %vm473_vm1, %v449_v42, 0  ;;  %v10016_v29 = vsel %vm473_vm1, %v450_v53, 0  ;;  %v451_v42 = vld [vmem:[%s9719_s6 + $0x2c] sm:$0x3] }
  0xf2   : > { %8427 = vmatpush3.bf16.msra.mxu0 %v9953_v13  ;;  %8433 = vmatpush3.bf16.msra.mxu1 %v9956_v2  ;;  %v9977_v2 = vld [vmem:[%s9750_s9 + $0x40] sm:$0xf]  ;;  %v9980_v13 = vld [vmem:[%s9750_s9 + $0x44] sm:$0xf]  ;;  %11155 = vst [vmem:[#allocation40_spill] sm:$0xff] %v10013_v36  ;;  %11156 = vst [vmem:[#allocation41_spill] sm:$0xff] %v10016_v29 }
  0xf3   : > { %8428 = vmatprep.mubr.msk.bf16.mxu0 %vm9269_vm0, %v9268_v0  ;;  %8434 = vmatprep.mubr.msk.bf16.mxu1 %vm9269_vm0, %v9268_v0  ;;  %v452_v53 = vld [vmem:[%s9719_s6 + $0x2e] sm:$0x3]  ;;  %v10043_v18 = vsel %vm473_vm1, %v451_v42, 0  ;;  %v453_v42 = vld [vmem:[%s9719_s6 + $0x30] sm:$0x3] }
  0xf4   : > { %v9968_v14 = vpop.f32.mrb[4].mxu0  ;;  %v9970_v25 = vpop.f32.mrb[4].mxu1  ;;  %8438 = vmatprep.subr.bf16.mxu0 %v9268_v0  ;;  %8444 = vmatprep.subr.bf16.mxu1 %v9268_v0  ;;  %11158 = vst [vmem:[#allocation43_spill] sm:$0xff] %v10043_v18  ;;  %v10046_v11 = vsel %vm473_vm1, %v452_v53, 0  ;;  %v454_v53 = vld [vmem:[%s9719_s6 + $0x32] sm:$0x3] }
  0xf5   : > { %v8106_v56 = vpop.f32.mrb[5].mxu0  ;;  %v8112_v6 = vpop.f32.mrb[5].mxu1  ;;  %11159 = vst [vmem:[#allocation44_spill] sm:$0xff] %v10046_v11 }
  0xf6   : > { %v606_v31 = vpop.f32.mrb[6].mxu0  ;;  %v652_v59 = vpop.f32.mrb[6].mxu1 }
  0xf7   : > { %v8107_v62 = vpop.f32.mrb[7].mxu0  ;;  %v8113_v55 = vpop.f32.mrb[7].mxu1 }
  0xf9   : > { %8429 = vmatmul.mubr.msk.bf16.vlgmr.msra.gmra.mrb[112].mxu0 %vm469_vm2, %v9977_v2  ;;  %8435 = vmatmul.mubr.msk.bf16.vlgmr.msra.gmra.mrb[112].mxu1 %vm469_vm2, %v9980_v13 }
  0xfa   : > { %8439 = vmatpush3.bf16.msra.mxu0 %v9983_v54  ;;  %8445 = vmatpush3.bf16.msra.mxu1 %v9986_v47  ;;  %v10007_v47 = vld [vmem:[%s9750_s9 + $0x48] sm:$0xf]  ;;  %v10010_v54 = vld [vmem:[%s9750_s9 + $0x4c] sm:$0xf] }
  0xfb   : > { %8440 = vmatprep.mubr.msk.bf16.mxu0 %vm9269_vm0, %v9268_v0  ;;  %8446 = vmatprep.mubr.msk.bf16.mxu1 %vm9269_vm0, %v9268_v0 }
  0xfc   : > { %v9998_v55 = vpop.f32.mrb[8].mxu0  ;;  %v10000_v62 = vpop.f32.mrb[8].mxu1  ;;  %8450 = vmatprep.subr.bf16.mxu0 %v9268_v0  ;;  %8456 = vmatprep.subr.bf16.mxu1 %v9268_v0 }
  0xfd   : > { %v8118_v56 = vpop.f32.mrb[9].mxu0  ;;  %v8124_v6 = vpop.f32.mrb[9].mxu1 }
  0xfe   : > { %v698_v31 = vpop.f32.mrb[10].mxu0  ;;  %v744_v59 = vpop.f32.mrb[10].mxu1 }
  0xff   : > { %v8119_v44 = vpop.f32.mrb[11].mxu0  ;;  %v8125_v37 = vpop.f32.mrb[11].mxu1 }
 0x101   : > { %8441 = vmatmul.mubr.msk.bf16.vlgmr.msra.gmra.mrb[116].mxu0 %vm469_vm2, %v10007_v47  ;;  %8447 = vmatmul.mubr.msk.bf16.vlgmr.msra.gmra.mrb[116].mxu1 %vm469_vm2, %v10010_v54 }
 0x102   : > { %8451 = vmatpush3.bf16.msra.mxu0 %v10013_v36  ;;  %8457 = vmatpush3.bf16.msra.mxu1 %v10016_v29  ;;  %v10037_v29 = vld [vmem:[%s9750_s9 + $0x50] sm:$0xf]  ;;  %v10040_v36 = vld [vmem:[%s9750_s9 + $0x54] sm:$0xf] }
 0x103   : > { %8452 = vmatprep.mubr.msk.bf16.mxu0 %vm9269_vm0, %v9268_v0  ;;  %8458 = vmatprep.mubr.msk.bf16.mxu1 %vm9269_vm0, %v9268_v0  ;;  %11157 = vst [vmem:[#allocation42_spill] sm:$0xff] %v10040_v36 }
 0x104   : > { %v10028_v37 = vpop.f32.mrb[12].mxu0  ;;  %v10030_v44 = vpop.f32.mrb[12].mxu1  ;;  %8462 = vmatprep.subr.bf16.mxu0 %v9268_v0  ;;  %8468 = vmatprep.subr.bf16.mxu1 %v9268_v0 }
 0x105   : > { %v8130_v56 = vpop.f32.mrb[13].mxu0  ;;  %v8136_v6 = vpop.f32.mrb[13].mxu1 }
 0x106   : > { %v790_v31 = vpop.f32.mrb[14].mxu0  ;;  %v836_v59 = vpop.f32.mrb[14].mxu1 }
 0x107   : > { %v8131_v26 = vpop.f32.mrb[15].mxu0  ;;  %v8137_v19 = vpop.f32.mrb[15].mxu1 }
 0x109   : > { %8453 = vmatmul.mubr.msk.bf16.vlgmr.msra.gmra.mrb[120].mxu0 %vm469_vm2, %v10037_v29  ;;  %8459 = vmatmul.mubr.msk.bf16.vlgmr.msra.gmra.mrb[120].mxu1 %vm469_vm2, %v10040_v36  ;;  %v10076_v36 = vsel %vm473_vm1, %v454_v53, 0  ;;  %v456_v53 = vld [vmem:[%s9719_s6 + $0x36] sm:$0x3] }
 0x10a   : > { %8463 = vmatpush3.bf16.msra.mxu0 %v10043_v18  ;;  %8469 = vmatpush3.bf16.msra.mxu1 %v10046_v11  ;;  %v10067_v11 = vld [vmem:[%s9750_s9 + $0x58] sm:$0xf]  ;;  %v10070_v18 = vld [vmem:[%s9750_s9 + $0x5c] sm:$0xf]  ;;  %11165 = vst [vmem:[#allocation50_spill] sm:$0xff] %v10076_v36 }
 0x10b   : > { %8464 = vmatprep.mubr.msk.bf16.mxu0 %vm9269_vm0, %v9268_v0  ;;  %8470 = vmatprep.mubr.msk.bf16.mxu1 %vm9269_vm0, %v9268_v0  ;;  %11162 = vst [vmem:[#allocation47_spill] sm:$0xff] %v10067_v11  ;;  %11163 = vst [vmem:[#allocation48_spill] sm:$0xff] %v10070_v18 }
 0x10c   : > { %v10058_v19 = vpop.f32.mrb[16].mxu0  ;;  %v10060_v26 = vpop.f32.mrb[16].mxu1  ;;  %8474 = vmatprep.subr.bf16.mxu0 %v9268_v0  ;;  %8480 = vmatprep.subr.bf16.mxu1 %v9268_v0 }
 0x10d   : > { %11160 = vst [vmem:[#allocation45_spill] sm:$0xff] %v10058_v19  ;;  %11161 = vst [vmem:[#allocation46_spill] sm:$0xff] %v10060_v26  ;;  %v8142_v56 = vpop.f32.mrb[17].mxu0  ;;  %v8148_v6 = vpop.f32.mrb[17].mxu1  ;;  %v10073_v26 = vsel %vm473_vm1, %v453_v42, 0 }
 0x10e   : > { %v882_v31 = vpop.f32.mrb[18].mxu0  ;;  %v928_v59 = vpop.f32.mrb[18].mxu1  ;;  %11164 = vst [vmem:[#allocation49_spill] sm:$0xff] %v10073_v26  ;;  %v455_v42 = vld [vmem:[%s9719_s6 + $0x34] sm:$0x3] }
 0x10f   : > { %v8143_v8 = vpop.f32.mrb[19].mxu0  ;;  %v8149_v19 = vpop.f32.mrb[19].mxu1 }
 0x111   : > { %8465 = vmatmul.mubr.msk.bf16.vlgmr.msra.gmra.mrb[124].mxu0 %vm469_vm2, %v10067_v11  ;;  %8471 = vmatmul.mubr.msk.bf16.vlgmr.msra.gmra.mrb[124].mxu1 %vm469_vm2, %v10070_v18  ;;  %v10106_v11 = vsel %vm473_vm1, %v456_v53, 0  ;;  %v458_v53 = vld [vmem:[%s9719_s6 + $0x3a] sm:$0x3] }
 0x112   : > { %8475 = vmatpush3.bf16.msra.mxu0 %v10073_v26  ;;  %8481 = vmatpush3.bf16.msra.mxu1 %v10076_v36  ;;  %v10097_v36 = vld [vmem:[%s9750_s9 + $0x60] sm:$0xf]  ;;  %v10100_v26 = vld [vmem:[%s9750_s9 + $0x64] sm:$0xf]  ;;  %11171 = vst [vmem:[#allocation56_spill] sm:$0xff] %v10106_v11 }
 0x113   : > { %8476 = vmatprep.mubr.msk.bf16.mxu0 %vm9269_vm0, %v9268_v0  ;;  %8482 = vmatprep.mubr.msk.bf16.mxu1 %vm9269_vm0, %v9268_v0  ;;  %11168 = vst [vmem:[#allocation53_spill] sm:$0xff] %v10097_v36  ;;  %11169 = vst [vmem:[#allocation54_spill] sm:$0xff] %v10100_v26 }
 0x114   : > { %v10088_v8 = vpop.f32.mrb[20].mxu0  ;;  %v10090_v19 = vpop.f32.mrb[20].mxu1  ;;  %8486 = vmatprep.subr.bf16.mxu0 %v9268_v0  ;;  %8492 = vmatprep.subr.bf16.mxu1 %v9268_v0 }
 0x115   : > { %11166 = vst [vmem:[#allocation51_spill] sm:$0xff] %v10088_v8  ;;  %11167 = vst [vmem:[#allocation52_spill] sm:$0xff] %v10090_v19  ;;  %v8154_v56 = vpop.f32.mrb[21].mxu0  ;;  %v8160_v6 = vpop.f32.mrb[21].mxu1  ;;  %v10103_v19 = vsel %vm473_vm1, %v455_v42, 0 }
 0x116   : > { %v974_v31 = vpop.f32.mrb[22].mxu0  ;;  %v1020_v59 = vpop.f32.mrb[22].mxu1  ;;  %11170 = vst [vmem:[#allocation55_spill] sm:$0xff] %v10103_v19  ;;  %v457_v42 = vld [vmem:[%s9719_s6 + $0x38] sm:$0x3] }
 0x117   : > { %v8155_v18 = vpop.f32.mrb[23].mxu0  ;;  %v8161_v8 = vpop.f32.mrb[23].mxu1 }
 0x119   : > { %8477 = vmatmul.mubr.msk.bf16.vlgmr.msra.gmra.mrb[128].mxu0 %vm469_vm2, %v10097_v36  ;;  %8483 = vmatmul.mubr.msk.bf16.vlgmr.msra.gmra.mrb[128].mxu1 %vm469_vm2, %v10100_v26  ;;  %v10136_v36 = vsel %vm473_vm1, %v458_v53, 0  ;;  %v460_v53 = vld [vmem:[%s9719_s6 + $0x3e] sm:$0x3] }
 0x11a   : > { %8487 = vmatpush3.bf16.msra.mxu0 %v10103_v19  ;;  %8493 = vmatpush3.bf16.msra.mxu1 %v10106_v11  ;;  %v10127_v11 = vld [vmem:[%s9750_s9 + $0x68] sm:$0xf]  ;;  %v10130_v19 = vld [vmem:[%s9750_s9 + $0x6c] sm:$0xf]  ;;  %11177 = vst [vmem:[#allocation62_spill] sm:$0xff] %v10136_v36 }
 0x11b   : > { %8488 = vmatprep.mubr.msk.bf16.mxu0 %vm9269_vm0, %v9268_v0  ;;  %8494 = vmatprep.mubr.msk.bf16.mxu1 %vm9269_vm0, %v9268_v0  ;;  %11174 = vst [vmem:[#allocation59_spill] sm:$0xff] %v10127_v11  ;;  %11175 = vst [vmem:[#allocation60_spill] sm:$0xff] %v10130_v19 }
 0x11c   : > { %v10118_v18 = vpop.f32.mrb[24].mxu0  ;;  %v10120_v8 = vpop.f32.mrb[24].mxu1  ;;  %8498 = vmatprep.subr.bf16.mxu0 %v9268_v0  ;;  %8504 = vmatprep.subr.bf16.mxu1 %v9268_v0 }
 0x11d   : > { %11172 = vst [vmem:[#allocation57_spill] sm:$0xff] %v10118_v18  ;;  %11173 = vst [vmem:[#allocation58_spill] sm:$0xff] %v10120_v8  ;;  %v8166_v56 = vpop.f32.mrb[25].mxu0  ;;  %v8172_v6 = vpop.f32.mrb[25].mxu1  ;;  %v10133_v8 = vsel %vm473_vm1, %v457_v42, 0 }
 0x11e   : > { %v1066_v31 = vpop.f32.mrb[26].mxu0  ;;  %v1112_v59 = vpop.f32.mrb[26].mxu1  ;;  %11176 = vst [vmem:[#allocation61_spill] sm:$0xff] %v10133_v8  ;;  %v459_v42 = vld [vmem:[%s9719_s6 + $0x3c] sm:$0x3] }
 0x11f   : > { %v8167_v26 = vpop.f32.mrb[27].mxu0  ;;  %v8173_v18 = vpop.f32.mrb[27].mxu1 }
 0x121   : > { %8489 = vmatmul.mubr.msk.bf16.vlgmr.msra.gmra.mrb[132].mxu0 %vm469_vm2, %v10127_v11  ;;  %8495 = vmatmul.mubr.msk.bf16.vlgmr.msra.gmra.mrb[132].mxu1 %vm469_vm2, %v10130_v19  ;;  %v10166_v11 = vsel %vm473_vm1, %v460_v53, 0  ;;  %v462_v53 = vld [vmem:[%s9719_s6 + $0x42] sm:$0x3] }
 0x122   : > { %8499 = vmatpush3.bf16.msra.mxu0 %v10133_v8  ;;  %8505 = vmatpush3.bf16.msra.mxu1 %v10136_v36  ;;  %v10157_v36 = vld [vmem:[%s9750_s9 + $0x70] sm:$0xf]  ;;  %v10160_v8 = vld [vmem:[%s9750_s9 + $0x74] sm:$0xf]  ;;  %11183 = vst [vmem:[#allocation68_spill] sm:$0xff] %v10166_v11 }
 0x123   : > { %8500 = vmatprep.mubr.msk.bf16.mxu0 %vm9269_vm0, %v9268_v0  ;;  %8506 = vmatprep.mubr.msk.bf16.mxu1 %vm9269_vm0, %v9268_v0  ;;  %11180 = vst [vmem:[#allocation65_spill] sm:$0xff] %v10157_v36  ;;  %11181 = vst [vmem:[#allocation66_spill] sm:$0xff] %v10160_v8 }
 0x124   : > { %v10148_v26 = vpop.f32.mrb[28].mxu0  ;;  %v10150_v18 = vpop.f32.mrb[28].mxu1  ;;  %8510 = vmatprep.subr.bf16.mxu0 %v9268_v0  ;;  %8516 = vmatprep.subr.bf16.mxu1 %v9268_v0 }
 0x125   : > { %11178 = vst [vmem:[#allocation63_spill] sm:$0xff] %v10148_v26  ;;  %11179 = vst [vmem:[#allocation64_spill] sm:$0xff] %v10150_v18  ;;  %v8178_v56 = vpop.f32.mrb[29].mxu0  ;;  %v8184_v6 = vpop.f32.mrb[29].mxu1  ;;  %v10163_v18 = vsel %vm473_vm1, %v459_v42, 0 }
 0x126   : > { %v1158_v31 = vpop.f32.mrb[30].mxu0  ;;  %v1204_v59 = vpop.f32.mrb[30].mxu1  ;;  %11182 = vst [vmem:[#allocation67_spill] sm:$0xff] %v10163_v18  ;;  %v461_v42 = vld [vmem:[%s9719_s6 + $0x40] sm:$0x3] }
 0x127   : > { %v8179_v19 = vpop.f32.mrb[31].mxu0  ;;  %v8185_v26 = vpop.f32.mrb[31].mxu1 }
 0x129   : > { %8501 = vmatmul.mubr.msk.bf16.vlgmr.msra.gmra.mrb[136].mxu0 %vm469_vm2, %v10157_v36  ;;  %8507 = vmatmul.mubr.msk.bf16.vlgmr.msra.gmra.mrb[136].mxu1 %vm469_vm2, %v10160_v8  ;;  %v10196_v36 = vsel %vm473_vm1, %v462_v53, 0  ;;  %v464_v53 = vld [vmem:[%s9719_s6 + $0x46] sm:$0x3] }
 0x12a   : > { %8511 = vmatpush3.bf16.msra.mxu0 %v10163_v18  ;;  %8517 = vmatpush3.bf16.msra.mxu1 %v10166_v11  ;;  %v10187_v11 = vld [vmem:[%s9750_s9 + $0x78] sm:$0xf]  ;;  %v10190_v18 = vld [vmem:[%s9750_s9 + $0x7c] sm:$0xf]  ;;  %11189 = vst [vmem:[#allocation74_spill] sm:$0xff] %v10196_v36 }
 0x12b   : > { %8512 = vmatprep.mubr.msk.bf16.mxu0 %vm9269_vm0, %v9268_v0  ;;  %8518 = vmatprep.mubr.msk.bf16.mxu1 %vm9269_vm0, %v9268_v0  ;;  %11186 = vst [vmem:[#allocation71_spill] sm:$0xff] %v10187_v11  ;;  %11187 = vst [vmem:[#allocation72_spill] sm:$0xff] %v10190_v18 }
 0x12c   : > { %v10178_v19 = vpop.f32.mrb[32].mxu0  ;;  %v10180_v26 = vpop.f32.mrb[32].mxu1  ;;  %8522 = vmatprep.subr.bf16.mxu0 %v9268_v0  ;;  %8528 = vmatprep.subr.bf16.mxu1 %v9268_v0 }
 0x12d   : > { %11184 = vst [vmem:[#allocation69_spill] sm:$0xff] %v10178_v19  ;;  %11185 = vst [vmem:[#allocation70_spill] sm:$0xff] %v10180_v26  ;;  %v8190_v56 = vpop.f32.mrb[33].mxu0  ;;  %v8196_v6 = vpop.f32.mrb[33].mxu1  ;;  %v10193_v26 = vsel %vm473_vm1, %v461_v42, 0 }
 0x12e   : > { %v1250_v31 = vpop.f32.mrb[34].mxu0  ;;  %v1296_v59 = vpop.f32.mrb[34].mxu1  ;;  %11188 = vst [vmem:[#allocation73_spill] sm:$0xff] %v10193_v26  ;;  %v463_v42 = vld [vmem:[%s9719_s6 + $0x44] sm:$0x3] }
 0x12f   : > { %v8191_v8 = vpop.f32.mrb[35].mxu0  ;;  %v8197_v19 = vpop.f32.mrb[35].mxu1 }
 0x131   : > { %8513 = vmatmul.mubr.msk.bf16.vlgmr.msra.gmra.mrb[140].mxu0 %vm469_vm2, %v10187_v11  ;;  %8519 = vmatmul.mubr.msk.bf16.vlgmr.msra.gmra.mrb[140].mxu1 %vm469_vm2, %v10190_v18  ;;  %v10226_v11 = vsel %vm473_vm1, %v464_v53, 0  ;;  %v466_v53 = vld [vmem:[%s9719_s6 + $0x4a] sm:$0x3] }
 0x132   : > { %8523 = vmatpush3.bf16.msra.mxu0 %v10193_v26  ;;  %8529 = vmatpush3.bf16.msra.mxu1 %v10196_v36  ;;  %v10217_v36 = vld [vmem:[%s9750_s9 + $0x80] sm:$0xf]  ;;  %v10220_v26 = vld [vmem:[%s9750_s9 + $0x84] sm:$0xf]  ;;  %11195 = vst [vmem:[#allocation80_spill] sm:$0xff] %v10226_v11 }
 0x133   : > { %8524 = vmatprep.mubr.msk.bf16.mxu0 %vm9269_vm0, %v9268_v0  ;;  %8530 = vmatprep.mubr.msk.bf16.mxu1 %vm9269_vm0, %v9268_v0  ;;  %11192 = vst [vmem:[#allocation77_spill] sm:$0xff] %v10217_v36  ;;  %11193 = vst [vmem:[#allocation78_spill] sm:$0xff] %v10220_v26 }
 0x134   : > { %v10208_v8 = vpop.f32.mrb[36].mxu0  ;;  %v10210_v19 = vpop.f32.mrb[36].mxu1  ;;  %8534 = vmatprep.subr.bf16.mxu0 %v9268_v0  ;;  %8540 = vmatprep.subr.bf16.mxu1 %v9268_v0 }
 0x135   : > { %11190 = vst [vmem:[#allocation75_spill] sm:$0xff] %v10208_v8  ;;  %11191 = vst [vmem:[#allocation76_spill] sm:$0xff] %v10210_v19  ;;  %v8202_v56 = vpop.f32.mrb[37].mxu0  ;;  %v8208_v6 = vpop.f32.mrb[37].mxu1  ;;  %v10223_v19 = vsel %vm473_vm1, %v463_v42, 0 }
 0x136   : > { %v1342_v31 = vpop.f32.mrb[38].mxu0  ;;  %v1388_v59 = vpop.f32.mrb[38].mxu1  ;;  %11194 = vst [vmem:[#allocation79_spill] sm:$0xff] %v10223_v19  ;;  %v465_v42 = vld [vmem:[%s9719_s6 + $0x48] sm:$0x3] }
 0x137   : > { %v8203_v18 = vpop.f32.mrb[39].mxu0  ;;  %v8209_v8 = vpop.f32.mrb[39].mxu1 }
 0x139   : > { %8525 = vmatmul.mubr.msk.bf16.vlgmr.msra.gmra.mrb[144].mxu0 %vm469_vm2, %v10217_v36  ;;  %8531 = vmatmul.mubr.msk.bf16.vlgmr.msra.gmra.mrb[144].mxu1 %vm469_vm2, %v10220_v26  ;;  %v10256_v36 = vsel %vm473_vm1, %v466_v53, 0  ;;  %v468_v53 = vld [vmem:[%s9719_s6 + $0x4e] sm:$0x3] }
 0x13a   : > { %8535 = vmatpush3.bf16.msra.mxu0 %v10223_v19  ;;  %8541 = vmatpush3.bf16.msra.mxu1 %v10226_v11  ;;  %v10247_v11 = vld [vmem:[%s9750_s9 + $0x88] sm:$0xf]  ;;  %v10250_v19 = vld [vmem:[%s9750_s9 + $0x8c] sm:$0xf]  ;;  %11201 = vst [vmem:[#allocation86_spill] sm:$0xff] %v10256_v36 }
 0x13b   : > { %8536 = vmatprep.mubr.msk.bf16.mxu0 %vm9269_vm0, %v9268_v0  ;;  %8542 = vmatprep.mubr.msk.bf16.mxu1 %vm9269_vm0, %v9268_v0  ;;  %11198 = vst [vmem:[#allocation83_spill] sm:$0xff] %v10247_v11  ;;  %11199 = vst [vmem:[#allocation84_spill] sm:$0xff] %v10250_v19 }
 0x13c   : > { %v10238_v18 = vpop.f32.mrb[40].mxu0  ;;  %v10240_v8 = vpop.f32.mrb[40].mxu1  ;;  %8546 = vmatprep.subr.bf16.mxu0 %v9268_v0  ;;  %8552 = vmatprep.subr.bf16.mxu1 %v9268_v0 }
 0x13d   : > { %11196 = vst [vmem:[#allocation81_spill] sm:$0xff] %v10238_v18  ;;  %11197 = vst [vmem:[#allocation82_spill] sm:$0xff] %v10240_v8  ;;  %v8214_v56 = vpop.f32.mrb[41].mxu0  ;;  %v8220_v6 = vpop.f32.mrb[41].mxu1  ;;  %v10253_v8 = vsel %vm473_vm1, %v465_v42, 0 }
 0x13e   : > { %v1434_v31 = vpop.f32.mrb[42].mxu0  ;;  %v1480_v59 = vpop.f32.mrb[42].mxu1  ;;  %11200 = vst [vmem:[#allocation85_spill] sm:$0xff] %v10253_v8  ;;  %v467_v42 = vld [vmem:[%s9719_s6 + $0x4c] sm:$0x3] }
 0x13f   : > { %v8215_v26 = vpop.f32.mrb[43].mxu0  ;;  %v8221_v18 = vpop.f32.mrb[43].mxu1 }
 0x141   : > { %8537 = vmatmul.mubr.msk.bf16.vlgmr.msra.gmra.mrb[148].mxu0 %vm469_vm2, %v10247_v11  ;;  %8543 = vmatmul.mubr.msk.bf16.vlgmr.msra.gmra.mrb[148].mxu1 %vm469_vm2, %v10250_v19 }
 0x142   : > { %8547 = vmatpush3.bf16.msra.mxu0 %v10253_v8  ;;  %8553 = vmatpush3.bf16.msra.mxu1 %v10256_v36  ;;  %v10277_v36 = vld [vmem:[%s9750_s9 + $0x90] sm:$0xf]  ;;  %v10280_v8 = vld [vmem:[%s9750_s9 + $0x94] sm:$0xf] }
 0x143   : > { %8548 = vmatprep.mubr.msk.bf16.mxu0 %vm9269_vm0, %v9268_v0  ;;  %8554 = vmatprep.mubr.msk.bf16.mxu1 %vm9269_vm0, %v9268_v0 }
 0x144   : > { %v10268_v26 = vpop.f32.mrb[44].mxu0  ;;  %v10270_v18 = vpop.f32.mrb[44].mxu1  ;;  %8558 = vmatprep.subr.bf16.mxu0 %v9268_v0  ;;  %8564 = vmatprep.subr.bf16.mxu1 %v9268_v0 }
 0x145   : > { %11202 = vst [vmem:[#allocation87_spill] sm:$0xff] %v10268_v26  ;;  %11203 = vst [vmem:[#allocation88_spill] sm:$0xff] %v10270_v18  ;;  %v8226_v56 = vpop.f32.mrb[45].mxu0  ;;  %v8232_v6 = vpop.f32.mrb[45].mxu1  ;;  %v10283_v26 = vsel %vm473_vm1, %v467_v42, 0  ;;  %v10286_v18 = vsel %vm473_vm1, %v468_v53, 0 }
 0x146   : > { %v1526_v31 = vpop.f32.mrb[46].mxu0  ;;  %v1572_v59 = vpop.f32.mrb[46].mxu1  ;;  %11204 = vst [vmem:[#allocation89_spill] sm:$0xff] %v10283_v26  ;;  %11205 = vst [vmem:[#allocation90_spill] sm:$0xff] %v10286_v18 }
 0x147   : > { %v8227_v19 = vpop.f32.mrb[47].mxu0  ;;  %v8233_v11 = vpop.f32.mrb[47].mxu1  ;;  %v10305_v31 = vld [vmem:[%s9750_s9 + $0x98] sm:$0xf]  ;;  %v10308_v59 = vld [vmem:[%s9750_s9 + $0x9c] sm:$0xf] }
 0x149   : > { %8549 = vmatmul.mubr.msk.bf16.vlgmr.msra.gmra.mrb[152].mxu0 %vm469_vm2, %v10277_v36  ;;  %8555 = vmatmul.mubr.msk.bf16.vlgmr.msra.gmra.mrb[152].mxu1 %vm469_vm2, %v10280_v8 }
 0x14a   : > { %8559 = vmatpush3.bf16.msra.mxu0 %v10283_v26  ;;  %8565 = vmatpush3.bf16.msra.mxu1 %v10286_v18 }
 0x14b   : > { %8560 = vmatprep.mubr.msk.bf16.mxu0 %vm9269_vm0, %v9268_v0  ;;  %8566 = vmatprep.mubr.msk.bf16.mxu1 %vm9269_vm0, %v9268_v0 }
 0x14c   : > { %v10298_v11 = vpop.f32.mrb[48].mxu0  ;;  %v10300_v19 = vpop.f32.mrb[48].mxu1  ;;  %8570 = vmatprep.subr.bf16.mxu0 %v9268_v0  ;;  %8576 = vmatprep.subr.bf16.mxu1 %v9268_v0 }
 0x14d   : > { %v8238_v42 = vpop.f32.mrb[49].mxu0  ;;  %v8244_v53 = vpop.f32.mrb[49].mxu1 }
 0x14e   : > { %v1618_v56 = vpop.f32.mrb[50].mxu0  ;;  %v1664_v6 = vpop.f32.mrb[50].mxu1 }
 0x14f   : > { %v8239_v18 = vpop.f32.mrb[51].mxu0  ;;  %v8245_v26 = vpop.f32.mrb[51].mxu1 }
 0x151   : > { %8561 = vmatmul.mubr.msk.bf16.vlgmr.msra.gmra.mrb[156].mxu0 %vm469_vm2, %v10305_v31  ;;  %8567 = vmatmul.mubr.msk.bf16.vlgmr.msra.gmra.mrb[156].mxu1 %vm469_vm2, %v10308_v59 }
 0x152   : > { %8571 = vmatpush3.bf16.msra.mxu0 %v9336_v4  ;;  %8577 = vmatpush3.bf16.msra.mxu1 %v9339_v5 }
 0x153   : > { %8572 = vmatprep.mubr.msk.bf16.mxu0 %vm9269_vm0, %v9268_v0  ;;  %8578 = vmatprep.mubr.msk.bf16.mxu1 %vm9269_vm0, %v9268_v0 }
 0x154   : > { %v10320_v42 = vpop.f32.mrb[52].mxu0  ;;  %v10322_v18 = vpop.f32.mrb[52].mxu1  ;;  %8582 = vmatprep.subr.bf16.mxu0 %v9268_v0  ;;  %8588 = vmatprep.subr.bf16.mxu1 %v9268_v0 }
 0x155   : > { %v8250_v26 = vpop.f32.mrb[53].mxu0  ;;  %v8256_v53 = vpop.f32.mrb[53].mxu1 }
 0x156   : > { %v1710_v56 = vpop.f32.mrb[54].mxu0  ;;  %v1756_v4 = vpop.f32.mrb[54].mxu1 }
 0x157   : > { %v8251_v6 = vpop.f32.mrb[55].mxu0  ;;  %v8257_v5 = vpop.f32.mrb[55].mxu1 }
 0x159   : > { %8573 = vmatmul.mubr.msk.bf16.vlgmr.msra.gmra.mrb[160].mxu0 %vm469_vm2, %v9761_v49  ;;  %8579 = vmatmul.mubr.msk.bf16.vlgmr.msra.gmra.mrb[160].mxu1 %vm469_vm2, %v9764_v50 }
 0x15a   : > { %8583 = vmatpush3.bf16.msra.mxu0 %v9349_v9  ;;  %8589 = vmatpush3.bf16.msra.mxu1 %v9352_v10 }
 0x15b   : > { %8584 = vmatprep.mubr.msk.bf16.mxu0 %vm9269_vm0, %v9268_v0  ;;  %8590 = vmatprep.mubr.msk.bf16.mxu1 %vm9269_vm0, %v9268_v0 }
 0x15c   : > { %v10336_v26 = vpop.f32.mrb[56].mxu0  ;;  %v10338_v53 = vpop.f32.mrb[56].mxu1  ;;  %8594 = vmatprep.subr.bf16.mxu0 %v9268_v0  ;;  %8600 = vmatprep.subr.bf16.mxu1 %v9268_v0 }
 0x15d   : > { %v8262_v49 = vpop.f32.mrb[57].mxu0  ;;  %v8268_v50 = vpop.f32.mrb[57].mxu1 }
 0x15e   : > { %v1802_v56 = vpop.f32.mrb[58].mxu0  ;;  %v1848_v9 = vpop.f32.mrb[58].mxu1 }
 0x15f   : > { %v8263_v4 = vpop.f32.mrb[59].mxu0  ;;  %v8269_v10 = vpop.f32.mrb[59].mxu1 }
 0x161   : > { %8585 = vmatmul.mubr.msk.bf16.vlgmr.msra.gmra.mrb[164].mxu0 %vm469_vm2, %v9787_v61  ;;  %8591 = vmatmul.mubr.msk.bf16.vlgmr.msra.gmra.mrb[164].mxu1 %vm469_vm2, %v9790_v3 }
 0x162   : > { %8595 = vmatpush3.bf16.msra.mxu0 %v9369_v15  ;;  %8601 = vmatpush3.bf16.msra.mxu1 %v9372_v16 }
 0x163   : > { %8596 = vmatprep.mubr.msk.bf16.mxu0 %vm9269_vm0, %v9268_v0  ;;  %8602 = vmatprep.mubr.msk.bf16.mxu1 %vm9269_vm0, %v9268_v0 }
 0x164   : > { %v10352_v6 = vpop.f32.mrb[60].mxu0  ;;  %v10354_v5 = vpop.f32.mrb[60].mxu1  ;;  %8606 = vmatprep.subr.bf16.mxu0 %v9268_v0  ;;  %8612 = vmatprep.subr.bf16.mxu1 %v9268_v0 }
 0x165   : > { %v8274_v61 = vpop.f32.mrb[61].mxu0  ;;  %v8280_v3 = vpop.f32.mrb[61].mxu1 }
 0x166   : > { %v1894_v49 = vpop.f32.mrb[62].mxu0  ;;  %v1940_v15 = vpop.f32.mrb[62].mxu1 }
 0x167   : > { %v8275_v50 = vpop.f32.mrb[63].mxu0  ;;  %v8281_v16 = vpop.f32.mrb[63].mxu1 }
 0x169   : > { %8597 = vmatmul.mubr.msk.bf16.vlgmr.msra.gmra.mrb[168].mxu0 %vm469_vm2, %v9813_v20  ;;  %8603 = vmatmul.mubr.msk.bf16.vlgmr.msra.gmra.mrb[168].mxu1 %vm469_vm2, %v9816_v23 }
 0x16a   : > { %8607 = vmatpush3.bf16.msra.mxu0 %v9389_v21  ;;  %8613 = vmatpush3.bf16.msra.mxu1 %v9392_v22 }
 0x16b   : > { %8608 = vmatprep.mubr.msk.bf16.mxu0 %vm9269_vm0, %v9268_v0  ;;  %8614 = vmatprep.mubr.msk.bf16.mxu1 %vm9269_vm0, %v9268_v0 }
 0x16c   : > { %v10368_v56 = vpop.f32.mrb[64].mxu0  ;;  %v10370_v9 = vpop.f32.mrb[64].mxu1  ;;  %8618 = vmatprep.subr.bf16.mxu0 %v9268_v0  ;;  %8624 = vmatprep.subr.bf16.mxu1 %v9268_v0 }
 0x16d   : > { %v8286_v20 = vpop.f32.mrb[65].mxu0  ;;  %v8292_v23 = vpop.f32.mrb[65].mxu1 }
 0x16e   : > { %v1986_v4 = vpop.f32.mrb[66].mxu0  ;;  %v2032_v21 = vpop.f32.mrb[66].mxu1 }
 0x16f   : > { %v8287_v10 = vpop.f32.mrb[67].mxu0  ;;  %v8293_v22 = vpop.f32.mrb[67].mxu1 }
 0x171   : > { %8609 = vmatmul.mubr.msk.bf16.vlgmr.msra.gmra.mrb[172].mxu0 %vm469_vm2, %v9839_v38  ;;  %8615 = vmatmul.mubr.msk.bf16.vlgmr.msra.gmra.mrb[172].mxu1 %vm469_vm2, %v9842_v43 }
 0x172   : > { %8619 = vmatpush3.bf16.msra.mxu0 %v9409_v27  ;;  %8625 = vmatpush3.bf16.msra.mxu1 %v9412_v28 }
 0x173   : > { %8620 = vmatprep.mubr.msk.bf16.mxu0 %vm9269_vm0, %v9268_v0  ;;  %8626 = vmatprep.mubr.msk.bf16.mxu1 %vm9269_vm0, %v9268_v0 }
 0x174   : > { %v10384_v61 = vpop.f32.mrb[68].mxu0  ;;  %v10386_v3 = vpop.f32.mrb[68].mxu1  ;;  %8630 = vmatprep.subr.bf16.mxu0 %v9268_v0  ;;  %8636 = vmatprep.subr.bf16.mxu1 %v9268_v0 }
 0x175   : > { %v8298_v38 = vpop.f32.mrb[69].mxu0  ;;  %v8304_v43 = vpop.f32.mrb[69].mxu1 }
 0x176   : > { %v2078_v49 = vpop.f32.mrb[70].mxu0  ;;  %v2124_v27 = vpop.f32.mrb[70].mxu1 }
 0x177   : > { %v8299_v15 = vpop.f32.mrb[71].mxu0  ;;  %v8305_v28 = vpop.f32.mrb[71].mxu1 }
 0x179   : > { %8621 = vmatmul.mubr.msk.bf16.vlgmr.msra.gmra.mrb[176].mxu0 %vm469_vm2, %v9865_v17  ;;  %8627 = vmatmul.mubr.msk.bf16.vlgmr.msra.gmra.mrb[176].mxu1 %vm469_vm2, %v9868_v32 }
 0x17a   : > { %8631 = vmatpush3.bf16.msra.mxu0 %v9429_v33  ;;  %8637 = vmatpush3.bf16.msra.mxu1 %v9432_v34 }
 0x17b   : > { %8632 = vmatprep.mubr.msk.bf16.mxu0 %vm9269_vm0, %v9268_v0  ;;  %8638 = vmatprep.mubr.msk.bf16.mxu1 %vm9269_vm0, %v9268_v0 }
 0x17c   : > { %v10400_v50 = vpop.f32.mrb[72].mxu0  ;;  %v10402_v16 = vpop.f32.mrb[72].mxu1  ;;  %8642 = vmatprep.subr.bf16.mxu0 %v9268_v0  ;;  %8648 = vmatprep.subr.bf16.mxu1 %v9268_v0 }
 0x17d   : > { %v8310_v17 = vpop.f32.mrb[73].mxu0  ;;  %v8316_v32 = vpop.f32.mrb[73].mxu1 }
 0x17e   : > { %v2170_v20 = vpop.f32.mrb[74].mxu0  ;;  %v2216_v33 = vpop.f32.mrb[74].mxu1 }
 0x17f   : > { %v8311_v23 = vpop.f32.mrb[75].mxu0  ;;  %v8317_v34 = vpop.f32.mrb[75].mxu1 }
 0x181   : > { %8633 = vmatmul.mubr.msk.bf16.vlgmr.msra.gmra.mrb[180].mxu0 %vm469_vm2, %v9891_v48  ;;  %8639 = vmatmul.mubr.msk.bf16.vlgmr.msra.gmra.mrb[180].mxu1 %vm469_vm2, %v9894_v35 }
 0x182   : > { %8643 = vmatpush3.bf16.msra.mxu0 %v9449_v39  ;;  %8649 = vmatpush3.bf16.msra.mxu1 %v9452_v40 }
 0x183   : > { %8644 = vmatprep.mubr.msk.bf16.mxu0 %vm9269_vm0, %v9268_v0  ;;  %8650 = vmatprep.mubr.msk.bf16.mxu1 %vm9269_vm0, %v9268_v0 }
 0x184   : > { %v10416_v4 = vpop.f32.mrb[76].mxu0  ;;  %v10418_v21 = vpop.f32.mrb[76].mxu1  ;;  %8654 = vmatprep.subr.bf16.mxu0 %v9268_v0  ;;  %8660 = vmatprep.subr.bf16.mxu1 %v9268_v0 }
 0x185   : > { %v8322_v48 = vpop.f32.mrb[77].mxu0  ;;  %v8328_v39 = vpop.f32.mrb[77].mxu1 }
 0x186   : > { %v2262_v35 = vpop.f32.mrb[78].mxu0  ;;  %v2308_v10 = vpop.f32.mrb[78].mxu1 }
 0x187   : > { %v8323_v40 = vpop.f32.mrb[79].mxu0  ;;  %v8329_v22 = vpop.f32.mrb[79].mxu1 }
 0x189   : > { %8645 = vmatmul.mubr.msk.bf16.vlgmr.msra.gmra.mrb[184].mxu0 %vm469_vm2, %v9917_v24  ;;  %8651 = vmatmul.mubr.msk.bf16.vlgmr.msra.gmra.mrb[184].mxu1 %vm469_vm2, %v9920_v7 }
 0x18a   : > { %8655 = vmatpush3.bf16.msra.mxu0 %v9469_v45  ;;  %8661 = vmatpush3.bf16.msra.mxu1 %v9472_v46 }
 0x18b   : > { %8656 = vmatprep.mubr.msk.bf16.mxu0 %vm9269_vm0, %v9268_v0  ;;  %8662 = vmatprep.mubr.msk.bf16.mxu1 %vm9269_vm0, %v9268_v0 }
 0x18c   : > { %v2351_v7 = vpop.f32.mrb[80].mxu0  ;;  %v2397_v24 = vpop.f32.mrb[80].mxu1  ;;  %8666 = vmatprep.subr.bf16.mxu0 %v9268_v0  ;;  %8672 = vmatprep.subr.bf16.mxu1 %v9268_v0 }
 0x18d   : > { %v5751_v45 = vsub.f32 %v9938_v60, %v2351_v7  ;;  %v5752_v46 = vsub.f32 %v9940_v12, %v2397_v24  ;;  %v8334_v38 = vpop.f32.mrb[81].mxu0  ;;  %v8340_v43 = vpop.f32.mrb[81].mxu1  ;;  %v11206_v7 = vld [vmem:[#allocation42_spill] sm:$0xff] }
 0x18e   : > { %v2354_v49 = vpop.f32.mrb[82].mxu0  ;;  %v2400_v27 = vpop.f32.mrb[82].mxu1  ;;  %v11210_v38 = vld [vmem:[#allocation46_spill] sm:$0xff] }
 0x18f   : > { %5791 = vst.msk [vmem:[%s10438_s13] sm:$0xff] %vm469_vm2, %v5751_v45  ;;  %5792 = vst.msk [vmem:[%s10438_s13 + $0x8] sm:$0xff] %vm469_vm2, %v5752_v46  ;;  %v8335_v15 = vpop.f32.mrb[83].mxu0  ;;  %v8341_v28 = vpop.f32.mrb[83].mxu1 }
 0x191   : > { %8657 = vmatmul.mubr.msk.bf16.vlgmr.msra.gmra.mrb[188].mxu0 %vm469_vm2, %v9947_v41  ;;  %8663 = vmatmul.mubr.msk.bf16.vlgmr.msra.gmra.mrb[188].mxu1 %vm469_vm2, %v9950_v30 }
 0x192   : > { %8667 = vmatpush3.bf16.msra.mxu0 %v9489_v51  ;;  %8673 = vmatpush3.bf16.msra.mxu1 %v9492_v52 }
 0x193   : > { %8668 = vmatprep.mubr.msk.bf16.mxu0 %vm9269_vm0, %v9268_v0  ;;  %8674 = vmatprep.mubr.msk.bf16.mxu1 %vm9269_vm0, %v9268_v0 }
 0x194   : > { %v2443_v60 = vpop.f32.mrb[84].mxu0  ;;  %v2489_v12 = vpop.f32.mrb[84].mxu1  ;;  %8678 = vmatprep.subr.bf16.mxu0 %v9268_v0  ;;  %8684 = vmatprep.subr.bf16.mxu1 %v9268_v0 }
 0x195   : > { %v5753_v41 = vsub.f32 %v9968_v14, %v2443_v60  ;;  %v5754_v30 = vsub.f32 %v9970_v25, %v2489_v12  ;;  %v8346_v17 = vpop.f32.mrb[85].mxu0  ;;  %v8352_v51 = vpop.f32.mrb[85].mxu1 }
 0x196   : > { %v2446_v32 = vpop.f32.mrb[86].mxu0  ;;  %v2492_v52 = vpop.f32.mrb[86].mxu1  ;;  %v11213_v17 = vld [vmem:[#allocation4_spill] sm:$0xff]  ;;  %v11214_v51 = vld [vmem:[#allocation5_spill] sm:$0xff] }
 0x197   : > { %5793 = vst.msk [vmem:[%s10438_s13 + $0x10] sm:$0xff] %vm469_vm2, %v5753_v41  ;;  %5794 = vst.msk [vmem:[%s10438_s13 + $0x18] sm:$0xff] %vm469_vm2, %v5754_v30  ;;  %v8347_v20 = vpop.f32.mrb[87].mxu0  ;;  %v8353_v33 = vpop.f32.mrb[87].mxu1  ;;  %v11211_v41 = vld [vmem:[#allocation47_spill] sm:$0xff]  ;;  %v11212_v30 = vld [vmem:[#allocation48_spill] sm:$0xff] }
 0x198   : > { %v11215_v20 = vld [vmem:[#allocation51_spill] sm:$0xff] }
 0x199   : > { %8669 = vmatmul.mubr.msk.bf16.vlgmr.msra.gmra.mrb[192].mxu0 %vm469_vm2, %v9977_v2  ;;  %8675 = vmatmul.mubr.msk.bf16.vlgmr.msra.gmra.mrb[192].mxu1 %vm469_vm2, %v9980_v13 }
 0x19a   : > { %8679 = vmatpush3.bf16.msra.mxu0 %v9509_v57  ;;  %8685 = vmatpush3.bf16.msra.mxu1 %v9512_v58 }
 0x19b   : > { %8680 = vmatprep.mubr.msk.bf16.mxu0 %vm9269_vm0, %v9268_v0  ;;  %8686 = vmatprep.mubr.msk.bf16.mxu1 %vm9269_vm0, %v9268_v0 }
 0x19c   : > { %v2535_v14 = vpop.f32.mrb[88].mxu0  ;;  %v2581_v25 = vpop.f32.mrb[88].mxu1  ;;  %8690 = vmatprep.subr.bf16.mxu0 %v9268_v0  ;;  %8696 = vmatprep.subr.bf16.mxu1 %v9268_v0 }
 0x19d   : > { %v5755_v2 = vsub.f32 %v9998_v55, %v2535_v14  ;;  %v5756_v13 = vsub.f32 %v10000_v62, %v2581_v25  ;;  %v8358_v23 = vpop.f32.mrb[89].mxu0  ;;  %v8364_v57 = vpop.f32.mrb[89].mxu1  ;;  %v11216_v14 = vld [vmem:[#allocation52_spill] sm:$0xff] }
 0x19e   : > { %v2538_v34 = vpop.f32.mrb[90].mxu0  ;;  %v2584_v58 = vpop.f32.mrb[90].mxu1 }
 0x19f   : > { %5795 = vst.msk [vmem:[%s10438_s13 + $0x20] sm:$0xff] %vm469_vm2, %v5755_v2  ;;  %5796 = vst.msk [vmem:[%s10438_s13 + $0x28] sm:$0xff] %vm469_vm2, %v5756_v13  ;;  %v8359_v48 = vpop.f32.mrb[91].mxu0  ;;  %v8365_v39 = vpop.f32.mrb[91].mxu1 }
 0x1a0   : > { %v11217_v48 = vld [vmem:[#allocation53_spill] sm:$0xff]  ;;  %v11218_v39 = vld [vmem:[#allocation54_spill] sm:$0xff] }
 0x1a1   : > { %8681 = vmatmul.mubr.msk.bf16.vlgmr.msra.gmra.mrb[196].mxu0 %vm469_vm2, %v10007_v47  ;;  %8687 = vmatmul.mubr.msk.bf16.vlgmr.msra.gmra.mrb[196].mxu1 %vm469_vm2, %v10010_v54 }
 0x1a2   : > { %8691 = vmatpush3.bf16.msra.mxu0 %v9529_v63  ;;  %8697 = vmatpush3.bf16.msra.mxu1 %v9532_v1 }
 0x1a3   : > { %8692 = vmatprep.mubr.msk.bf16.mxu0 %vm9269_vm0, %v9268_v0  ;;  %8698 = vmatprep.mubr.msk.bf16.mxu1 %vm9269_vm0, %v9268_v0 }
 0x1a4   : > { %v2627_v55 = vpop.f32.mrb[92].mxu0  ;;  %v2673_v62 = vpop.f32.mrb[92].mxu1  ;;  %8702 = vmatprep.subr.bf16.mxu0 %v9268_v0  ;;  %8708 = vmatprep.subr.bf16.mxu1 %v9268_v0 }
 0x1a5   : > { %v5757_v47 = vsub.f32 %v10028_v37, %v2627_v55  ;;  %v5758_v54 = vsub.f32 %v10030_v44, %v2673_v62  ;;  %v8370_v35 = vpop.f32.mrb[93].mxu0  ;;  %v8376_v63 = vpop.f32.mrb[93].mxu1  ;;  %v11207_v37 = vld [vmem:[#allocation2_spill] sm:$0xff]  ;;  %v11208_v44 = vld [vmem:[#allocation3_spill] sm:$0xff] }
 0x1a6   : > { %v2630_v10 = vpop.f32.mrb[94].mxu0  ;;  %v2676_v1 = vpop.f32.mrb[94].mxu1  ;;  %v11219_v55 = vld [vmem:[#allocation6_spill] sm:$0xff]  ;;  %v11220_v62 = vld [vmem:[#allocation7_spill] sm:$0xff]  ;;  %v11221_v35 = vld [vmem:[#allocation57_spill] sm:$0xff] }
 0x1a7   : > { %5797 = vst.msk [vmem:[%s10438_s13 + $0x30] sm:$0xff] %vm469_vm2, %v5757_v47  ;;  %5798 = vst.msk [vmem:[%s10438_s13 + $0x38] sm:$0xff] %vm469_vm2, %v5758_v54  ;;  %v8371_v40 = vpop.f32.mrb[95].mxu0  ;;  %v8377_v22 = vpop.f32.mrb[95].mxu1  ;;  %v11222_v10 = vld [vmem:[#allocation58_spill] sm:$0xff] }
 0x1a9   : > { %8693 = vmatmul.mubr.msk.bf16.vlgmr.msra.gmra.mrb[200].mxu0 %vm469_vm2, %v10037_v29  ;;  %8699 = vmatmul.mubr.msk.bf16.vlgmr.msra.gmra.mrb[200].mxu1 %vm469_vm2, %v11206_v7  ;;  %v11209_v29 = vld [vmem:[#allocation45_spill] sm:$0xff] }
 0x1aa   : > { %8703 = vmatpush3.bf16.msra.mxu0 %v11207_v37  ;;  %8709 = vmatpush3.bf16.msra.mxu1 %v11208_v44 }
 0x1ab   : > { %8704 = vmatprep.mubr.msk.bf16.mxu0 %vm9269_vm0, %v9268_v0  ;;  %8710 = vmatprep.mubr.msk.bf16.mxu1 %vm9269_vm0, %v9268_v0 }
 0x1ac   : > { %v2719_v24 = vpop.f32.mrb[96].mxu0  ;;  %v2765_v45 = vpop.f32.mrb[96].mxu1  ;;  %8714 = vmatprep.subr.bf16.mxu0 %v9268_v0  ;;  %8720 = vmatprep.subr.bf16.mxu1 %v9268_v0 }
 0x1ad   : > { %v5759_v46 = vsub.f32 %v11209_v29, %v2719_v24  ;;  %v5760_v43 = vsub.f32 %v11210_v38, %v2765_v45  ;;  %v8382_v49 = vpop.f32.mrb[97].mxu0  ;;  %v8388_v27 = vpop.f32.mrb[97].mxu1  ;;  %v11223_v45 = vld [vmem:[#allocation59_spill] sm:$0xff]  ;;  %v11224_v29 = vld [vmem:[#allocation60_spill] sm:$0xff]  ;;  %v11226_v38 = vld [vmem:[#allocation9_spill] sm:$0xff] }
 0x1ae   : > { %v2722_v15 = vpop.f32.mrb[98].mxu0  ;;  %v2768_v28 = vpop.f32.mrb[98].mxu1  ;;  %v11227_v27 = vld [vmem:[#allocation63_spill] sm:$0xff] }
 0x1af   : > { %5799 = vst.msk [vmem:[%s10438_s13 + $0x40] sm:$0xff] %vm469_vm2, %v5759_v46  ;;  %5800 = vst.msk [vmem:[%s10438_s13 + $0x48] sm:$0xff] %vm469_vm2, %v5760_v43  ;;  %v8383_v60 = vpop.f32.mrb[99].mxu0  ;;  %v8389_v12 = vpop.f32.mrb[99].mxu1  ;;  %v11225_v46 = vld [vmem:[#allocation8_spill] sm:$0xff] }
 0x1b0   : > { %v11228_v28 = vld [vmem:[#allocation64_spill] sm:$0xff] }
 0x1b1   : > { %8705 = vmatmul.mubr.msk.bf16.vlgmr.msra.gmra.mrb[204].mxu0 %vm469_vm2, %v11211_v41  ;;  %8711 = vmatmul.mubr.msk.bf16.vlgmr.msra.gmra.mrb[204].mxu1 %vm469_vm2, %v11212_v30 }
 0x1b2   : > { %8715 = vmatpush3.bf16.msra.mxu0 %v11213_v17  ;;  %8721 = vmatpush3.bf16.msra.mxu1 %v11214_v51 }
 0x1b3   : > { %8716 = vmatprep.mubr.msk.bf16.mxu0 %vm9269_vm0, %v9268_v0  ;;  %8722 = vmatprep.mubr.msk.bf16.mxu1 %vm9269_vm0, %v9268_v0 }
 0x1b4   : > { %v2811_v32 = vpop.f32.mrb[100].mxu0  ;;  %v2857_v52 = vpop.f32.mrb[100].mxu1  ;;  %8726 = vmatprep.subr.bf16.mxu0 %v9268_v0  ;;  %8732 = vmatprep.subr.bf16.mxu1 %v9268_v0 }
 0x1b5   : > { %v5761_v33 = vsub.f32 %v11215_v20, %v2811_v32  ;;  %v5762_v25 = vsub.f32 %v11216_v14, %v2857_v52  ;;  %v8394_v2 = vpop.f32.mrb[101].mxu0  ;;  %v8400_v13 = vpop.f32.mrb[101].mxu1  ;;  %v11229_v52 = vld [vmem:[#allocation65_spill] sm:$0xff]  ;;  %v11230_v20 = vld [vmem:[#allocation66_spill] sm:$0xff]  ;;  %v11232_v14 = vld [vmem:[#allocation11_spill] sm:$0xff] }
 0x1b6   : > { %v2814_v23 = vpop.f32.mrb[102].mxu0  ;;  %v2860_v57 = vpop.f32.mrb[102].mxu1  ;;  %v11233_v13 = vld [vmem:[#allocation69_spill] sm:$0xff] }
 0x1b7   : > { %5801 = vst.msk [vmem:[%s10438_s13 + $0x50] sm:$0xff] %vm469_vm2, %v5761_v33  ;;  %5802 = vst.msk [vmem:[%s10438_s13 + $0x58] sm:$0xff] %vm469_vm2, %v5762_v25  ;;  %v8395_v34 = vpop.f32.mrb[103].mxu0  ;;  %v8401_v58 = vpop.f32.mrb[103].mxu1  ;;  %v11231_v33 = vld [vmem:[#allocation10_spill] sm:$0xff] }
 0x1b8   : > { %v11234_v57 = vld [vmem:[#allocation70_spill] sm:$0xff] }
 0x1b9   : > { %8717 = vmatmul.mubr.msk.bf16.vlgmr.msra.gmra.mrb[208].mxu0 %vm469_vm2, %v11217_v48  ;;  %8723 = vmatmul.mubr.msk.bf16.vlgmr.msra.gmra.mrb[208].mxu1 %vm469_vm2, %v11218_v39 }
 0x1ba   : > { %8727 = vmatpush3.bf16.msra.mxu0 %v11219_v55  ;;  %8733 = vmatpush3.bf16.msra.mxu1 %v11220_v62 }
 0x1bb   : > { %8728 = vmatprep.mubr.msk.bf16.mxu0 %vm9269_vm0, %v9268_v0  ;;  %8734 = vmatprep.mubr.msk.bf16.mxu1 %vm9269_vm0, %v9268_v0 }
 0x1bc   : > { %v2903_v47 = vpop.f32.mrb[104].mxu0  ;;  %v2949_v54 = vpop.f32.mrb[104].mxu1  ;;  %8738 = vmatprep.subr.bf16.mxu0 %v9268_v0  ;;  %8744 = vmatprep.subr.bf16.mxu1 %v9268_v0 }
 0x1bd   : > { %v5763_v63 = vsub.f32 %v11221_v35, %v2903_v47  ;;  %v5764_v1 = vsub.f32 %v11222_v10, %v2949_v54  ;;  %v8406_v40 = vpop.f32.mrb[105].mxu0  ;;  %v8412_v22 = vpop.f32.mrb[105].mxu1  ;;  %v11235_v54 = vld [vmem:[#allocation71_spill] sm:$0xff]  ;;  %v11236_v35 = vld [vmem:[#allocation72_spill] sm:$0xff]  ;;  %v11238_v10 = vld [vmem:[#allocation13_spill] sm:$0xff] }
 0x1be   : > { %v2906_v7 = vpop.f32.mrb[106].mxu0  ;;  %v2952_v37 = vpop.f32.mrb[106].mxu1  ;;  %v11239_v22 = vld [vmem:[#allocation75_spill] sm:$0xff] }
 0x1bf   : > { %5803 = vst.msk [vmem:[%s10438_s13 + $0x60] sm:$0xff] %vm469_vm2, %v5763_v63  ;;  %5804 = vst.msk [vmem:[%s10438_s13 + $0x68] sm:$0xff] %vm469_vm2, %v5764_v1  ;;  %v8407_v44 = vpop.f32.mrb[107].mxu0  ;;  %v8413_v24 = vpop.f32.mrb[107].mxu1  ;;  %v11237_v63 = vld [vmem:[#allocation12_spill] sm:$0xff] }
 0x1c0   : > { %v11240_v37 = vld [vmem:[#allocation76_spill] sm:$0xff] }
 0x1c1   : > { %8729 = vmatmul.mubr.msk.bf16.vlgmr.msra.gmra.mrb[212].mxu0 %vm469_vm2, %v11223_v45  ;;  %8735 = vmatmul.mubr.msk.bf16.vlgmr.msra.gmra.mrb[212].mxu1 %vm469_vm2, %v11224_v29 }
 0x1c2   : > { %8739 = vmatpush3.bf16.msra.mxu0 %v11225_v46  ;;  %8745 = vmatpush3.bf16.msra.mxu1 %v11226_v38 }
 0x1c3   : > { %8740 = vmatprep.mubr.msk.bf16.mxu0 %vm9269_vm0, %v9268_v0  ;;  %8746 = vmatprep.mubr.msk.bf16.mxu1 %vm9269_vm0, %v9268_v0 }
 0x1c4   : > { %v2995_v43 = vpop.f32.mrb[108].mxu0  ;;  %v3041_v49 = vpop.f32.mrb[108].mxu1  ;;  %8750 = vmatprep.subr.bf16.mxu0 %v9268_v0  ;;  %8756 = vmatprep.subr.bf16.mxu1 %v9268_v0 }
 0x1c5   : > { %v5765_v15 = vsub.f32 %v11227_v27, %v2995_v43  ;;  %v5766_v60 = vsub.f32 %v11228_v28, %v3041_v49  ;;  %v8418_v12 = vpop.f32.mrb[109].mxu0  ;;  %v8424_v41 = vpop.f32.mrb[109].mxu1  ;;  %v11241_v49 = vld [vmem:[#allocation77_spill] sm:$0xff]  ;;  %v11242_v27 = vld [vmem:[#allocation78_spill] sm:$0xff]  ;;  %v11244_v28 = vld [vmem:[#allocation15_spill] sm:$0xff] }
 0x1c6   : > { %v2998_v30 = vpop.f32.mrb[110].mxu0  ;;  %v3044_v17 = vpop.f32.mrb[110].mxu1  ;;  %v11245_v41 = vld [vmem:[#allocation81_spill] sm:$0xff] }
 0x1c7   : > { %5805 = vst.msk [vmem:[%s10438_s13 + $0x70] sm:$0xff] %vm469_vm2, %v5765_v15  ;;  %5806 = vst.msk [vmem:[%s10438_s13 + $0x78] sm:$0xff] %vm469_vm2, %v5766_v60  ;;  %v8419_v51 = vpop.f32.mrb[111].mxu0  ;;  %v8425_v32 = vpop.f32.mrb[111].mxu1  ;;  %v11243_v15 = vld [vmem:[#allocation14_spill] sm:$0xff] }
 0x1c8   : > { %v11246_v17 = vld [vmem:[#allocation82_spill] sm:$0xff] }
 0x1c9   : > { %8741 = vmatmul.mubr.msk.bf16.vlgmr.msra.gmra.mrb[216].mxu0 %vm469_vm2, %v11229_v52  ;;  %8747 = vmatmul.mubr.msk.bf16.vlgmr.msra.gmra.mrb[216].mxu1 %vm469_vm2, %v11230_v20 }
 0x1ca   : > { %8751 = vmatpush3.bf16.msra.mxu0 %v11231_v33  ;;  %8757 = vmatpush3.bf16.msra.mxu1 %v11232_v14 }
 0x1cb   : > { %8752 = vmatprep.mubr.msk.bf16.mxu0 %vm9269_vm0, %v9268_v0  ;;  %8758 = vmatprep.mubr.msk.bf16.mxu1 %vm9269_vm0, %v9268_v0 }
 0x1cc   : > { %v3087_v25 = vpop.f32.mrb[112].mxu0  ;;  %v3133_v2 = vpop.f32.mrb[112].mxu1  ;;  %8762 = vmatprep.subr.bf16.mxu0 %v9268_v0  ;;  %8768 = vmatprep.subr.bf16.mxu1 %v9268_v0 }
 0x1cd   : > { %v5767_v23 = vsub.f32 %v11233_v13, %v3087_v25  ;;  %v5768_v34 = vsub.f32 %v11234_v57, %v3133_v2  ;;  %v8430_v58 = vpop.f32.mrb[113].mxu0  ;;  %v8436_v48 = vpop.f32.mrb[113].mxu1  ;;  %v11247_v2 = vld [vmem:[#allocation83_spill] sm:$0xff]  ;;  %v11248_v13 = vld [vmem:[#allocation84_spill] sm:$0xff]  ;;  %v11250_v57 = vld [vmem:[#allocation17_spill] sm:$0xff] }
 0x1ce   : > { %v3090_v39 = vpop.f32.mrb[114].mxu0  ;;  %v3136_v55 = vpop.f32.mrb[114].mxu1  ;;  %v11251_v48 = vld [vmem:[#allocation87_spill] sm:$0xff] }
 0x1cf   : > { %5807 = vst.msk [vmem:[%s10438_s13 + $0x80] sm:$0xff] %vm469_vm2, %v5767_v23  ;;  %5808 = vst.msk [vmem:[%s10438_s13 + $0x88] sm:$0xff] %vm469_vm2, %v5768_v34  ;;  %v8431_v62 = vpop.f32.mrb[115].mxu0  ;;  %v8437_v47 = vpop.f32.mrb[115].mxu1  ;;  %v11249_v23 = vld [vmem:[#allocation16_spill] sm:$0xff] }
 0x1d0   : > { %v11252_v55 = vld [vmem:[#allocation88_spill] sm:$0xff] }
 0x1d1   : > { %8753 = vmatmul.mubr.msk.bf16.vlgmr.msra.gmra.mrb[220].mxu0 %vm469_vm2, %v11235_v54  ;;  %8759 = vmatmul.mubr.msk.bf16.vlgmr.msra.gmra.mrb[220].mxu1 %vm469_vm2, %v11236_v35 }
 0x1d2   : > { %8763 = vmatpush3.bf16.msra.mxu0 %v11237_v63  ;;  %8769 = vmatpush3.bf16.msra.mxu1 %v11238_v10 }
 0x1d3   : > { %8764 = vmatprep.mubr.msk.bf16.mxu0 %vm9269_vm0, %v9268_v0  ;;  %8770 = vmatprep.mubr.msk.bf16.mxu1 %vm9269_vm0, %v9268_v0 }
 0x1d4   : > { %v3179_v1 = vpop.f32.mrb[116].mxu0  ;;  %v3225_v40 = vpop.f32.mrb[116].mxu1  ;;  %8774 = vmatprep.subr.bf16.mxu0 %v9268_v0  ;;  %8780 = vmatprep.subr.bf16.mxu1 %v9268_v0 }
 0x1d5   : > { %v5769_v7 = vsub.f32 %v11239_v22, %v3179_v1  ;;  %v5770_v44 = vsub.f32 %v11240_v37, %v3225_v40  ;;  %v8442_v24 = vpop.f32.mrb[117].mxu0  ;;  %v8448_v45 = vpop.f32.mrb[117].mxu1  ;;  %v11253_v40 = vld [vmem:[#allocation18_spill] sm:$0xff]  ;;  %v11254_v22 = vld [vmem:[#allocation19_spill] sm:$0xff] }
 0x1d6   : > { %v3182_v29 = vpop.f32.mrb[118].mxu0  ;;  %v3228_v46 = vpop.f32.mrb[118].mxu1 }
 0x1d7   : > { %5809 = vst.msk [vmem:[%s10438_s13 + $0x90] sm:$0xff] %vm469_vm2, %v5769_v7  ;;  %5810 = vst.msk [vmem:[%s10438_s13 + $0x98] sm:$0xff] %vm469_vm2, %v5770_v44  ;;  %v8443_v38 = vpop.f32.mrb[119].mxu0  ;;  %v8449_v43 = vpop.f32.mrb[119].mxu1 }
 0x1d9   : > { %8765 = vmatmul.mubr.msk.bf16.vlgmr.msra.gmra.mrb[224].mxu0 %vm469_vm2, %v11241_v49  ;;  %8771 = vmatmul.mubr.msk.bf16.vlgmr.msra.gmra.mrb[224].mxu1 %vm469_vm2, %v11242_v27 }
 0x1da   : > { %8775 = vmatpush3.bf16.msra.mxu0 %v11243_v15  ;;  %8781 = vmatpush3.bf16.msra.mxu1 %v11244_v28 }
 0x1db   : > { %8776 = vmatprep.mubr.msk.bf16.mxu0 %vm9269_vm0, %v9268_v0  ;;  %8782 = vmatprep.mubr.msk.bf16.mxu1 %vm9269_vm0, %v9268_v0 }
 0x1dc   : > { %v3271_v60 = vpop.f32.mrb[120].mxu0  ;;  %v3317_v12 = vpop.f32.mrb[120].mxu1  ;;  %8786 = vmatprep.subr.bf16.mxu0 %v9268_v0  ;;  %8792 = vmatprep.subr.bf16.mxu1 %v9268_v0 }
 0x1dd   : > { %v5771_v30 = vsub.f32 %v11245_v41, %v3271_v60  ;;  %v5772_v51 = vsub.f32 %v11246_v17, %v3317_v12  ;;  %v8454_v32 = vpop.f32.mrb[121].mxu0  ;;  %v8460_v52 = vpop.f32.mrb[121].mxu1  ;;  %v9221_v17 = vld [vmem:[%s9332_s28 + $0x4] sm:$0xf] }
 0x1de   : > { %v3274_v20 = vpop.f32.mrb[122].mxu0  ;;  %v3320_v33 = vpop.f32.mrb[122].mxu1 }
 0x1df   : > { %5811 = vst.msk [vmem:[%s10438_s13 + $0xa0] sm:$0xff] %vm469_vm2, %v5771_v30  ;;  %5812 = vst.msk [vmem:[%s10438_s13 + $0xa8] sm:$0xff] %vm469_vm2, %v5772_v51  ;;  %v8455_v14 = vpop.f32.mrb[123].mxu0  ;;  %v8461_v25 = vpop.f32.mrb[123].mxu1  ;;  %v9220_v30 = vld [vmem:[%s9332_s28] sm:$0xf] }
 0x1e1   : > { %8777 = vmatmul.mubr.msk.bf16.vlgmr.msra.gmra.mrb[228].mxu0 %vm469_vm2, %v11247_v2  ;;  %8783 = vmatmul.mubr.msk.bf16.vlgmr.msra.gmra.mrb[228].mxu1 %vm469_vm2, %v11248_v13 }
 0x1e2   : > { %8787 = vmatpush3.bf16.msra.mxu0 %v11249_v23  ;;  %8793 = vmatpush3.bf16.msra.mxu1 %v11250_v57  ;;  %v9222_v57 = vld [vmem:[%s9332_s28 + $0x8] sm:$0xf] }
 0x1e3   : > { %8788 = vmatprep.mubr.msk.bf16.mxu0 %vm9269_vm0, %v9268_v0  ;;  %8794 = vmatprep.mubr.msk.bf16.mxu1 %vm9269_vm0, %v9268_v0 }
 0x1e4   : > { %v3363_v34 = vpop.f32.mrb[124].mxu0  ;;  %v3409_v58 = vpop.f32.mrb[124].mxu1  ;;  %8798 = vmatprep.subr.bf16.mxu0 %v9268_v0  ;;  %8804 = vmatprep.subr.bf16.mxu1 %v9268_v0 }
 0x1e5   : > { %v5773_v39 = vsub.f32 %v11251_v48, %v3363_v34  ;;  %v5774_v62 = vsub.f32 %v11252_v55, %v3409_v58  ;;  %v8466_v47 = vpop.f32.mrb[125].mxu0  ;;  %v8472_v54 = vpop.f32.mrb[125].mxu1  ;;  %v9223_v34 = vld [vmem:[%s9332_s28 + $0xc] sm:$0xf] }
 0x1e6   : > { %v3366_v35 = vpop.f32.mrb[126].mxu0  ;;  %v3412_v63 = vpop.f32.mrb[126].mxu1 }
 0x1e7   : > { %5813 = vst.msk [vmem:[%s10438_s13 + $0xb0] sm:$0xff] %vm469_vm2, %v5773_v39  ;;  %5814 = vst.msk [vmem:[%s10438_s13 + $0xb8] sm:$0xff] %vm469_vm2, %v5774_v62  ;;  %v8467_v10 = vpop.f32.mrb[127].mxu0  ;;  %v8473_v1 = vpop.f32.mrb[127].mxu1 }
 0x1e8   : > { %v9224_v1 = vld [vmem:[%s9332_s28 + $0x10] sm:$0xf] }
 0x1e9   : > { %8789 = vmatmul.mubr.msk.bf16.vlgmr.msra.gmra.mrb[232].mxu0 %vm469_vm2, %v10277_v36  ;;  %8795 = vmatmul.mubr.msk.bf16.vlgmr.msra.gmra.mrb[232].mxu1 %vm469_vm2, %v10280_v8 }
 0x1ea   : > { %8799 = vmatpush3.bf16.msra.mxu0 %v11253_v40  ;;  %8805 = vmatpush3.bf16.msra.mxu1 %v11254_v22  ;;  %v9225_v40 = vld [vmem:[%s9332_s28 + $0x14] sm:$0xf] }
 0x1eb   : > { %8800 = vmatprep.mubr.msk.bf16.mxu0 %vm9269_vm0, %v9268_v0  ;;  %8806 = vmatprep.mubr.msk.bf16.mxu1 %vm9269_vm0, %v9268_v0 }
 0x1ec   : > { %v3455_v7 = vpop.f32.mrb[128].mxu0  ;;  %v3501_v37 = vpop.f32.mrb[128].mxu1  ;;  %8810 = vmatprep.subr.bf16.mxu0 %v9268_v0  ;;  %8816 = vmatprep.subr.bf16.mxu1 %v9268_v0 }
 0x1ed   : > { %v5775_v36 = vsub.f32 %v10298_v11, %v3455_v7  ;;  %v5776_v8 = vsub.f32 %v10300_v19, %v3501_v37  ;;  %v8478_v44 = vpop.f32.mrb[129].mxu0  ;;  %v8484_v24 = vpop.f32.mrb[129].mxu1  ;;  %v11255_v11 = vld [vmem:[#allocation20_spill] sm:$0xff]  ;;  %v11256_v19 = vld [vmem:[#allocation21_spill] sm:$0xff] }
 0x1ee   : > { %v3458_v45 = vpop.f32.mrb[130].mxu0  ;;  %v3504_v29 = vpop.f32.mrb[130].mxu1 }
 0x1ef   : > { %5815 = vst.msk [vmem:[%s10438_s13 + $0xc0] sm:$0xff] %vm469_vm2, %v5775_v36  ;;  %5816 = vst.msk [vmem:[%s10438_s13 + $0xc8] sm:$0xff] %vm469_vm2, %v5776_v8  ;;  %v8479_v46 = vpop.f32.mrb[131].mxu0  ;;  %v8485_v38 = vpop.f32.mrb[131].mxu1 }
 0x1f0   : > { %v9226_v38 = vld [vmem:[%s9332_s28 + $0x18] sm:$0xf] }
 0x1f1   : > { %8801 = vmatmul.mubr.msk.bf16.vlgmr.msra.gmra.mrb[236].mxu0 %vm469_vm2, %v10305_v31  ;;  %8807 = vmatmul.mubr.msk.bf16.vlgmr.msra.gmra.mrb[236].mxu1 %vm469_vm2, %v10308_v59 }
 0x1f2   : > { %8811 = vmatpush3.bf16.msra.mxu0 %v11255_v11  ;;  %8817 = vmatpush3.bf16.msra.mxu1 %v11256_v19  ;;  %v9227_v11 = vld [vmem:[%s9332_s28 + $0x1c] sm:$0xf] }
 0x1f3   : > { %8812 = vmatprep.mubr.msk.bf16.mxu0 %vm9269_vm0, %v9268_v0  ;;  %8818 = vmatprep.mubr.msk.bf16.mxu1 %vm9269_vm0, %v9268_v0 }
 0x1f4   : > { %v3547_v43 = vpop.f32.mrb[132].mxu0  ;;  %v3593_v49 = vpop.f32.mrb[132].mxu1  ;;  %8822 = vmatprep.subr.bf16.mxu0 %v9268_v0  ;;  %8828 = vmatprep.subr.bf16.mxu1 %v9268_v0 }
 0x1f5   : > { %v5777_v31 = vsub.f32 %v10320_v42, %v3547_v43  ;;  %v5778_v59 = vsub.f32 %v10322_v18, %v3593_v49  ;;  %v8490_v27 = vpop.f32.mrb[133].mxu0  ;;  %v8496_v15 = vpop.f32.mrb[133].mxu1  ;;  %v11257_v42 = vld [vmem:[#allocation22_spill] sm:$0xff]  ;;  %v11258_v18 = vld [vmem:[#allocation23_spill] sm:$0xff] }
 0x1f6   : > { %v3550_v28 = vpop.f32.mrb[134].mxu0  ;;  %v3596_v60 = vpop.f32.mrb[134].mxu1 }
 0x1f7   : > { %5817 = vst.msk [vmem:[%s10438_s13 + $0xd0] sm:$0xff] %vm469_vm2, %v5777_v31  ;;  %5818 = vst.msk [vmem:[%s10438_s13 + $0xd8] sm:$0xff] %vm469_vm2, %v5778_v59  ;;  %v8491_v12 = vpop.f32.mrb[135].mxu0  ;;  %v8497_v41 = vpop.f32.mrb[135].mxu1 }
 0x1f8   : > { %v9228_v41 = vld [vmem:[%s9332_s28 + $0x20] sm:$0xf] }
 0x1f9   : > { %8813 = vmatmul.mubr.msk.bf16.vlgmr.msra.gmra.mrb[160].mxu0 %vm469_vm2, %v9220_v30  ;;  %8819 = vmatmul.mubr.msk.bf16.vlgmr.msra.gmra.mrb[160].mxu1 %vm469_vm2, %v9221_v17  ;;  %v9229_v30 = vld [vmem:[%s9332_s28 + $0x24] sm:$0xf] }
 0x1fa   : > { %8823 = vmatpush3.bf16.msra.mxu0 %v11257_v42  ;;  %8829 = vmatpush3.bf16.msra.mxu1 %v11258_v18 }
 0x1fb   : > { %8824 = vmatprep.mubr.msk.bf16.mxu0 %vm9269_vm0, %v9268_v0  ;;  %8830 = vmatprep.mubr.msk.bf16.mxu1 %vm9269_vm0, %v9268_v0 }
 0x1fc   : > { %v3639_v51 = vpop.f32.mrb[136].mxu0  ;;  %v3685_v32 = vpop.f32.mrb[136].mxu1  ;;  %8834 = vmatprep.subr.bf16.mxu0 %v9268_v0  ;;  %8840 = vmatprep.subr.bf16.mxu1 %v9268_v0 }
 0x1fd   : > { %v5779_v52 = vsub.f32 %v10336_v26, %v3639_v51  ;;  %v5780_v20 = vsub.f32 %v10338_v53, %v3685_v32  ;;  %v8502_v33 = vpop.f32.mrb[137].mxu0  ;;  %v8508_v14 = vpop.f32.mrb[137].mxu1  ;;  %v11259_v26 = vld [vmem:[#allocation24_spill] sm:$0xff]  ;;  %v11260_v53 = vld [vmem:[#allocation25_spill] sm:$0xff] }
 0x1fe   : > { %v3642_v25 = vpop.f32.mrb[138].mxu0  ;;  %v3688_v2 = vpop.f32.mrb[138].mxu1 }
 0x1ff   : > { %5819 = vst.msk [vmem:[%s10438_s13 + $0xe0] sm:$0xff] %vm469_vm2, %v5779_v52  ;;  %5820 = vst.msk [vmem:[%s10438_s13 + $0xe8] sm:$0xff] %vm469_vm2, %v5780_v20  ;;  %v8503_v13 = vpop.f32.mrb[139].mxu0  ;;  %v8509_v23 = vpop.f32.mrb[139].mxu1  ;;  %v9230_v2 = vld [vmem:[%s9332_s28 + $0x28] sm:$0xf] }
 0x200   : > { %v9231_v13 = vld [vmem:[%s9332_s28 + $0x2c] sm:$0xf] }
 0x201   : > { %8825 = vmatmul.mubr.msk.bf16.vlgmr.msra.gmra.mrb[164].mxu0 %vm469_vm2, %v9222_v57  ;;  %8831 = vmatmul.mubr.msk.bf16.vlgmr.msra.gmra.mrb[164].mxu1 %vm469_vm2, %v9223_v34 }
 0x202   : > { %8835 = vmatpush3.bf16.msra.mxu0 %v11259_v26  ;;  %8841 = vmatpush3.bf16.msra.mxu1 %v11260_v53 }
 0x203   : > { %8836 = vmatprep.mubr.msk.bf16.mxu0 %vm9269_vm0, %v9268_v0  ;;  %8842 = vmatprep.mubr.msk.bf16.mxu1 %vm9269_vm0, %v9268_v0 }
 0x204   : > { %v3731_v58 = vpop.f32.mrb[140].mxu0  ;;  %v3777_v48 = vpop.f32.mrb[140].mxu1  ;;  %8846 = vmatprep.subr.bf16.mxu0 %v9268_v0  ;;  %8852 = vmatprep.subr.bf16.mxu1 %v9268_v0 }
 0x205   : > { %v5781_v39 = vsub.f32 %v10352_v6, %v3731_v58  ;;  %v5782_v55 = vsub.f32 %v10354_v5, %v3777_v48  ;;  %v8514_v62 = vpop.f32.mrb[141].mxu0  ;;  %v8520_v47 = vpop.f32.mrb[141].mxu1  ;;  %v11261_v6 = vld [vmem:[#allocation26_spill] sm:$0xff]  ;;  %v11262_v5 = vld [vmem:[#allocation27_spill] sm:$0xff] }
 0x206   : > { %v3734_v54 = vpop.f32.mrb[142].mxu0  ;;  %v3780_v35 = vpop.f32.mrb[142].mxu1  ;;  %v9232_v47 = vld [vmem:[%s9332_s28 + $0x30] sm:$0xf] }
 0x207   : > { %5821 = vst.msk [vmem:[%s10438_s13 + $0xf0] sm:$0xff] %vm469_vm2, %v5781_v39  ;;  %5822 = vst.msk [vmem:[%s10438_s13 + $0xf8] sm:$0xff] %vm469_vm2, %v5782_v55  ;;  %v8515_v63 = vpop.f32.mrb[143].mxu0  ;;  %v8521_v10 = vpop.f32.mrb[143].mxu1  ;;  %v9233_v54 = vld [vmem:[%s9332_s28 + $0x34] sm:$0xf] }
 0x208   : > { %v9234_v35 = vld [vmem:[%s9332_s28 + $0x38] sm:$0xf]  ;;  %v9235_v63 = vld [vmem:[%s9332_s28 + $0x3c] sm:$0xf]  ;;  %v11271_v10 = vld [vmem:[#allocation36_spill] sm:$0xff] }
 0x209   : > { %8837 = vmatmul.mubr.msk.bf16.vlgmr.msra.gmra.mrb[168].mxu0 %vm469_vm2, %v9224_v1  ;;  %8843 = vmatmul.mubr.msk.bf16.vlgmr.msra.gmra.mrb[168].mxu1 %vm469_vm2, %v9225_v40  ;;  %v11272_v1 = vld [vmem:[#allocation37_spill] sm:$0xff]  ;;  %v9236_v40 = vld [vmem:[%s9332_s28 + $0x40] sm:$0xf] }
 0x20a   : > { %8847 = vmatpush3.bf16.msra.mxu0 %v11261_v6  ;;  %8853 = vmatpush3.bf16.msra.mxu1 %v11262_v5  ;;  %v9237_v6 = vld [vmem:[%s9332_s28 + $0x44] sm:$0xf] }
 0x20b   : > { %8848 = vmatprep.mubr.msk.bf16.mxu0 %vm9269_vm0, %v9268_v0  ;;  %8854 = vmatprep.mubr.msk.bf16.mxu1 %vm9269_vm0, %v9268_v0  ;;  %v11273_v5 = vld [vmem:[#allocation38_spill] sm:$0xff] }
 0x20c   : > { %v3823_v22 = vpop.f32.mrb[144].mxu0  ;;  %v3869_v7 = vpop.f32.mrb[144].mxu1  ;;  %8858 = vmatprep.subr.bf16.mxu0 %v9268_v0  ;;  %8864 = vmatprep.subr.bf16.mxu1 %v9268_v0 }
 0x20d   : > { %v5783_v37 = vsub.f32 %v10368_v56, %v3823_v22  ;;  %v5784_v36 = vsub.f32 %v10370_v9, %v3869_v7  ;;  %v8526_v8 = vpop.f32.mrb[145].mxu0  ;;  %v8532_v44 = vpop.f32.mrb[145].mxu1  ;;  %v11263_v56 = vld [vmem:[#allocation28_spill] sm:$0xff]  ;;  %v11264_v9 = vld [vmem:[#allocation29_spill] sm:$0xff]  ;;  %v11274_v22 = vld [vmem:[#allocation39_spill] sm:$0xff] }
 0x20e   : > { %v3826_v24 = vpop.f32.mrb[146].mxu0  ;;  %v3872_v45 = vpop.f32.mrb[146].mxu1  ;;  %v9238_v7 = vld [vmem:[%s9332_s28 + $0x48] sm:$0xf]  ;;  %v11276_v8 = vld [vmem:[#allocation41_spill] sm:$0xff] }
 0x20f   : > { %5823 = vst.msk [vmem:[%s10438_s13 + $0x100] sm:$0xff] %vm469_vm2, %v5783_v37  ;;  %5824 = vst.msk [vmem:[%s10438_s13 + $0x108] sm:$0xff] %vm469_vm2, %v5784_v36  ;;  %v8527_v29 = vpop.f32.mrb[147].mxu0  ;;  %v8533_v46 = vpop.f32.mrb[147].mxu1  ;;  %v9239_v37 = vld [vmem:[%s9332_s28 + $0x4c] sm:$0xf] }
 0x210   : > { %v11275_v36 = vld [vmem:[#allocation40_spill] sm:$0xff]  ;;  %v11277_v45 = vld [vmem:[#allocation43_spill] sm:$0xff]  ;;  %v9242_v46 = vld [vmem:[%s9332_s28 + $0x58] sm:$0xf] }
 0x211   : > { %8849 = vmatmul.mubr.msk.bf16.vlgmr.msra.gmra.mrb[172].mxu0 %vm469_vm2, %v9226_v38  ;;  %8855 = vmatmul.mubr.msk.bf16.vlgmr.msra.gmra.mrb[172].mxu1 %vm469_vm2, %v9227_v11  ;;  %v9240_v44 = vld [vmem:[%s9332_s28 + $0x50] sm:$0xf]  ;;  %v9241_v24 = vld [vmem:[%s9332_s28 + $0x54] sm:$0xf]  ;;  %v9243_v38 = vld [vmem:[%s9332_s28 + $0x5c] sm:$0xf] }
 0x212   : > { %8859 = vmatpush3.bf16.msra.mxu0 %v11263_v56  ;;  %8865 = vmatpush3.bf16.msra.mxu1 %v11264_v9  ;;  %v11278_v29 = vld [vmem:[#allocation44_spill] sm:$0xff]  ;;  %v11279_v11 = vld [vmem:[#allocation49_spill] sm:$0xff]  ;;  %v11280_v56 = vld [vmem:[#allocation50_spill] sm:$0xff] }
 0x213   : > { %8860 = vmatprep.mubr.msk.bf16.mxu0 %vm9269_vm0, %v9268_v0  ;;  %8866 = vmatprep.mubr.msk.bf16.mxu1 %vm9269_vm0, %v9268_v0  ;;  %v9244_v9 = vld [vmem:[%s9332_s28 + $0x60] sm:$0xf] }
 0x214   : > { %v3915_v19 = vpop.f32.mrb[148].mxu0  ;;  %v3961_v43 = vpop.f32.mrb[148].mxu1  ;;  %8870 = vmatprep.subr.bf16.mxu0 %v9268_v0  ;;  %8876 = vmatprep.subr.bf16.mxu1 %v9268_v0 }
 0x215   : > { %v5785_v49 = vsub.f32 %v10384_v61, %v3915_v19  ;;  %v5786_v31 = vsub.f32 %v10386_v3, %v3961_v43  ;;  %v8538_v59 = vpop.f32.mrb[149].mxu0  ;;  %v8544_v27 = vpop.f32.mrb[149].mxu1  ;;  %v11265_v61 = vld [vmem:[#allocation30_spill] sm:$0xff]  ;;  %v11266_v3 = vld [vmem:[#allocation31_spill] sm:$0xff] }
 0x216   : > { %v3918_v15 = vpop.f32.mrb[150].mxu0  ;;  %v3964_v28 = vpop.f32.mrb[150].mxu1  ;;  %v9245_v19 = vld [vmem:[%s9332_s28 + $0x64] sm:$0xf]  ;;  %v11281_v43 = vld [vmem:[#allocation55_spill] sm:$0xff]  ;;  %v11283_v27 = vld [vmem:[#allocation61_spill] sm:$0xff] }
 0x217   : > { %5825 = vst.msk [vmem:[%s10438_s13 + $0x110] sm:$0xff] %vm469_vm2, %v5785_v49  ;;  %5826 = vst.msk [vmem:[%s10438_s13 + $0x118] sm:$0xff] %vm469_vm2, %v5786_v31  ;;  %v8539_v60 = vpop.f32.mrb[151].mxu0  ;;  %v8545_v12 = vpop.f32.mrb[151].mxu1  ;;  %v11282_v49 = vld [vmem:[#allocation56_spill] sm:$0xff]  ;;  %v11284_v15 = vld [vmem:[#allocation62_spill] sm:$0xff] }
 0x218   : > { %v9246_v31 = vld [vmem:[%s9332_s28 + $0x68] sm:$0xf]  ;;  %v9247_v59 = vld [vmem:[%s9332_s28 + $0x6c] sm:$0xf]  ;;  %v9248_v28 = vld [vmem:[%s9332_s28 + $0x70] sm:$0xf] }
 0x219   : > { %8861 = vmatmul.mubr.msk.bf16.vlgmr.msra.gmra.mrb[176].mxu0 %vm469_vm2, %v9228_v41  ;;  %8867 = vmatmul.mubr.msk.bf16.vlgmr.msra.gmra.mrb[176].mxu1 %vm469_vm2, %v9229_v30  ;;  %v9249_v60 = vld [vmem:[%s9332_s28 + $0x74] sm:$0xf]  ;;  %v11285_v12 = vld [vmem:[#allocation67_spill] sm:$0xff]  ;;  %v9250_v30 = vld [vmem:[%s9332_s28 + $0x78] sm:$0xf] }
 0x21a   : > { %8871 = vmatpush3.bf16.msra.mxu0 %v11265_v61  ;;  %8877 = vmatpush3.bf16.msra.mxu1 %v11266_v3  ;;  %v11286_v41 = vld [vmem:[#allocation68_spill] sm:$0xff]  ;;  %v9251_v61 = vld [vmem:[%s9332_s28 + $0x7c] sm:$0xf] }
 0x21b   : > { %8872 = vmatprep.mubr.msk.bf16.mxu0 %vm9269_vm0, %v9268_v0  ;;  %8878 = vmatprep.mubr.msk.bf16.mxu1 %vm9269_vm0, %v9268_v0  ;;  %v11287_v3 = vld [vmem:[#allocation73_spill] sm:$0xff] }
 0x21c   : > { %v4007_v17 = vpop.f32.mrb[152].mxu0  ;;  %v4053_v42 = vpop.f32.mrb[152].mxu1  ;;  %8882 = vmatprep.subr.bf16.mxu0 %v9268_v0  ;;  %8888 = vmatprep.subr.bf16.mxu1 %v9268_v0 }
 0x21d   : > { %v5787_v18 = vsub.f32 %v10400_v50, %v4007_v17  ;;  %v5788_v51 = vsub.f32 %v10402_v16, %v4053_v42  ;;  %v8550_v32 = vpop.f32.mrb[153].mxu0  ;;  %v8556_v52 = vpop.f32.mrb[153].mxu1  ;;  %v11267_v50 = vld [vmem:[#allocation32_spill] sm:$0xff]  ;;  %v11268_v16 = vld [vmem:[#allocation33_spill] sm:$0xff]  ;;  %v11288_v17 = vld [vmem:[#allocation74_spill] sm:$0xff] }
 0x21e   : > { %v4010_v20 = vpop.f32.mrb[154].mxu0  ;;  %v4056_v33 = vpop.f32.mrb[154].mxu1  ;;  %v9252_v42 = vld [vmem:[%s9332_s28 + $0x80] sm:$0xf]  ;;  %v11290_v32 = vld [vmem:[#allocation80_spill] sm:$0xff] }
 0x21f   : > { %5827 = vst.msk [vmem:[%s10438_s13 + $0x120] sm:$0xff] %vm469_vm2, %v5787_v18  ;;  %5828 = vst.msk [vmem:[%s10438_s13 + $0x128] sm:$0xff] %vm469_vm2, %v5788_v51  ;;  %v8551_v14 = vpop.f32.mrb[155].mxu0  ;;  %v8557_v25 = vpop.f32.mrb[155].mxu1  ;;  %v9253_v18 = vld [vmem:[%s9332_s28 + $0x84] sm:$0xf] }
 0x220   : > { %v11289_v51 = vld [vmem:[#allocation79_spill] sm:$0xff]  ;;  %v11291_v33 = vld [vmem:[#allocation85_spill] sm:$0xff]  ;;  %v11292_v14 = vld [vmem:[#allocation86_spill] sm:$0xff] }
 0x221   : > { %8873 = vmatmul.mubr.msk.bf16.vlgmr.msra.gmra.mrb[180].mxu0 %vm469_vm2, %v9230_v2  ;;  %8879 = vmatmul.mubr.msk.bf16.vlgmr.msra.gmra.mrb[180].mxu1 %vm469_vm2, %v9231_v13  ;;  %v9254_v52 = vld [vmem:[%s9332_s28 + $0x88] sm:$0xf]  ;;  %v9255_v20 = vld [vmem:[%s9332_s28 + $0x8c] sm:$0xf]  ;;  %v9256_v25 = vld [vmem:[%s9332_s28 + $0x90] sm:$0xf] }
 0x222   : > { %8883 = vmatpush3.bf16.msra.mxu0 %v11267_v50  ;;  %8889 = vmatpush3.bf16.msra.mxu1 %v11268_v16  ;;  %v9257_v2 = vld [vmem:[%s9332_s28 + $0x94] sm:$0xf]  ;;  %v11293_v13 = vld [vmem:[#allocation89_spill] sm:$0xff]  ;;  %v11294_v50 = vld [vmem:[#allocation90_spill] sm:$0xff] }
 0x223   : > { %8884 = vmatprep.mubr.msk.bf16.mxu0 %vm9269_vm0, %v9268_v0  ;;  %8890 = vmatprep.mubr.msk.bf16.mxu1 %vm9269_vm0, %v9268_v0  ;;  %v9258_v16 = vld [vmem:[%s9332_s28 + $0x98] sm:$0xf] }
 0x224   : > { %v4099_v23 = vpop.f32.mrb[156].mxu0  ;;  %v4145_v57 = vpop.f32.mrb[156].mxu1  ;;  %8894 = vmatprep.subr.bf16.mxu0 %v9268_v0  ;;  %8900 = vmatprep.subr.bf16.mxu1 %v9268_v0 }
 0x225   : > { %v5789_v34 = vsub.f32 %v10416_v4, %v4099_v23  ;;  %v5790_v26 = vsub.f32 %v10418_v21, %v4145_v57  ;;  %v8562_v53 = vpop.f32.mrb[157].mxu0  ;;  %v8568_v58 = vpop.f32.mrb[157].mxu1  ;;  %v11269_v4 = vld [vmem:[#allocation34_spill] sm:$0xff]  ;;  %v11270_v21 = vld [vmem:[#allocation35_spill] sm:$0xff]  ;;  %v9259_v23 = vld [vmem:[%s9332_s28 + $0x9c] sm:$0xf] }
 0x226   : > { %v4102_v48 = vpop.f32.mrb[158].mxu0  ;;  %v4148_v39 = vpop.f32.mrb[158].mxu1 }
 0x227   : > { %5829 = vst.msk [vmem:[%s10438_s13 + $0x130] sm:$0xff] %vm469_vm2, %v5789_v34  ;;  %5830 = vst.msk [vmem:[%s10438_s13 + $0x138] sm:$0xff] %vm469_vm2, %v5790_v26  ;;  %v8563_v55 = vpop.f32.mrb[159].mxu0  ;;  %v8569_v62 = vpop.f32.mrb[159].mxu1 }
 0x229   : > { %8885 = vmatmul.mubr.msk.bf16.vlgmr.msra.gmra.mrb[184].mxu0 %vm469_vm2, %v9232_v47  ;;  %8891 = vmatmul.mubr.msk.bf16.vlgmr.msra.gmra.mrb[184].mxu1 %vm469_vm2, %v9233_v54 }
 0x22a   : > { %8895 = vmatpush3.bf16.msra.mxu0 %v11269_v4  ;;  %8901 = vmatpush3.bf16.msra.mxu1 %v11270_v21 }
 0x22b   : > { %8896 = vmatprep.mubr.msk.bf16.mxu0 %vm9269_vm0, %v9268_v0  ;;  %8902 = vmatprep.mubr.msk.bf16.mxu1 %vm9269_vm0, %v9268_v0 }
 0x22c   : > { %8906 = vmatprep.subr.bf16.mxu0 %v9268_v0  ;;  %8912 = vmatprep.subr.bf16.mxu1 %v9268_v0 }
 0x231   : > { %8897 = vmatmul.mubr.msk.bf16.vlgmr.msra.gmra.mrb[188].mxu0 %vm469_vm2, %v9234_v35  ;;  %8903 = vmatmul.mubr.msk.bf16.vlgmr.msra.gmra.mrb[188].mxu1 %vm469_vm2, %v9235_v63 }
 0x232   : > { %8907 = vmatpush3.bf16.msra.mxu0 %v11271_v10  ;;  %8913 = vmatpush3.bf16.msra.mxu1 %v11272_v1 }
 0x233   : > { %8908 = vmatprep.mubr.msk.bf16.mxu0 %vm9269_vm0, %v9268_v0  ;;  %8914 = vmatprep.mubr.msk.bf16.mxu1 %vm9269_vm0, %v9268_v0 }
 0x234   : > { %8918 = vmatprep.subr.bf16.mxu0 %v9268_v0  ;;  %8924 = vmatprep.subr.bf16.mxu1 %v9268_v0 }
 0x239   : > { %8909 = vmatmul.mubr.msk.bf16.vlgmr.msra.gmra.mrb[192].mxu0 %vm469_vm2, %v9236_v40  ;;  %8915 = vmatmul.mubr.msk.bf16.vlgmr.msra.gmra.mrb[192].mxu1 %vm469_vm2, %v9237_v6 }
 0x23a   : > { %8919 = vmatpush3.bf16.msra.mxu0 %v11273_v5  ;;  %8925 = vmatpush3.bf16.msra.mxu1 %v11274_v22 }
 0x23b   : > { %8920 = vmatprep.mubr.msk.bf16.mxu0 %vm9269_vm0, %v9268_v0  ;;  %8926 = vmatprep.mubr.msk.bf16.mxu1 %vm9269_vm0, %v9268_v0 }
 0x23c   : > { %8930 = vmatprep.subr.bf16.mxu0 %v9268_v0  ;;  %8936 = vmatprep.subr.bf16.mxu1 %v9268_v0 }
 0x241   : > { %8921 = vmatmul.mubr.msk.bf16.vlgmr.msra.gmra.mrb[196].mxu0 %vm469_vm2, %v9238_v7  ;;  %8927 = vmatmul.mubr.msk.bf16.vlgmr.msra.gmra.mrb[196].mxu1 %vm469_vm2, %v9239_v37 }
 0x242   : > { %8931 = vmatpush3.bf16.msra.mxu0 %v11275_v36  ;;  %8937 = vmatpush3.bf16.msra.mxu1 %v11276_v8 }
 0x243   : > { %8932 = vmatprep.mubr.msk.bf16.mxu0 %vm9269_vm0, %v9268_v0  ;;  %8938 = vmatprep.mubr.msk.bf16.mxu1 %vm9269_vm0, %v9268_v0 }
 0x244   : > { %8942 = vmatprep.subr.bf16.mxu0 %v9268_v0  ;;  %8948 = vmatprep.subr.bf16.mxu1 %v9268_v0 }
 0x249   : > { %8933 = vmatmul.mubr.msk.bf16.vlgmr.msra.gmra.mrb[200].mxu0 %vm469_vm2, %v9240_v44  ;;  %8939 = vmatmul.mubr.msk.bf16.vlgmr.msra.gmra.mrb[200].mxu1 %vm469_vm2, %v9241_v24 }
 0x24a   : > { %8943 = vmatpush3.bf16.msra.mxu0 %v11277_v45  ;;  %8949 = vmatpush3.bf16.msra.mxu1 %v11278_v29 }
 0x24b   : > { %8944 = vmatprep.mubr.msk.bf16.mxu0 %vm9269_vm0, %v9268_v0  ;;  %8950 = vmatprep.mubr.msk.bf16.mxu1 %vm9269_vm0, %v9268_v0 }
 0x24c   : > { %8954 = vmatprep.subr.bf16.mxu0 %v9268_v0  ;;  %8960 = vmatprep.subr.bf16.mxu1 %v9268_v0 }
 0x251   : > { %8945 = vmatmul.mubr.msk.bf16.vlgmr.msra.gmra.mrb[204].mxu0 %vm469_vm2, %v9242_v46  ;;  %8951 = vmatmul.mubr.msk.bf16.vlgmr.msra.gmra.mrb[204].mxu1 %vm469_vm2, %v9243_v38 }
 0x252   : > { %8955 = vmatpush3.bf16.msra.mxu0 %v11279_v11  ;;  %8961 = vmatpush3.bf16.msra.mxu1 %v11280_v56 }
 0x253   : > { %8956 = vmatprep.mubr.msk.bf16.mxu0 %vm9269_vm0, %v9268_v0  ;;  %8962 = vmatprep.mubr.msk.bf16.mxu1 %vm9269_vm0, %v9268_v0 }
 0x254   : > { %8966 = vmatprep.subr.bf16.mxu0 %v9268_v0  ;;  %8972 = vmatprep.subr.bf16.mxu1 %v9268_v0 }
 0x259   : > { %8957 = vmatmul.mubr.msk.bf16.vlgmr.msra.gmra.mrb[208].mxu0 %vm469_vm2, %v9244_v9  ;;  %8963 = vmatmul.mubr.msk.bf16.vlgmr.msra.gmra.mrb[208].mxu1 %vm469_vm2, %v9245_v19 }
 0x25a   : > { %8967 = vmatpush3.bf16.msra.mxu0 %v11281_v43  ;;  %8973 = vmatpush3.bf16.msra.mxu1 %v11282_v49 }
 0x25b   : > { %8968 = vmatprep.mubr.msk.bf16.mxu0 %vm9269_vm0, %v9268_v0  ;;  %8974 = vmatprep.mubr.msk.bf16.mxu1 %vm9269_vm0, %v9268_v0 }
 0x25c   : > { %8978 = vmatprep.subr.bf16.mxu0 %v9268_v0  ;;  %8984 = vmatprep.subr.bf16.mxu1 %v9268_v0 }
 0x261   : > { %8969 = vmatmul.mubr.msk.bf16.vlgmr.msra.gmra.mrb[212].mxu0 %vm469_vm2, %v9246_v31  ;;  %8975 = vmatmul.mubr.msk.bf16.vlgmr.msra.gmra.mrb[212].mxu1 %vm469_vm2, %v9247_v59 }
 0x262   : > { %8979 = vmatpush3.bf16.msra.mxu0 %v11283_v27  ;;  %8985 = vmatpush3.bf16.msra.mxu1 %v11284_v15 }
 0x263   : > { %8980 = vmatprep.mubr.msk.bf16.mxu0 %vm9269_vm0, %v9268_v0  ;;  %8986 = vmatprep.mubr.msk.bf16.mxu1 %vm9269_vm0, %v9268_v0 }
 0x264   : > { %8990 = vmatprep.subr.bf16.mxu0 %v9268_v0  ;;  %8996 = vmatprep.subr.bf16.mxu1 %v9268_v0 }
 0x269   : > { %8981 = vmatmul.mubr.msk.bf16.vlgmr.msra.gmra.mrb[216].mxu0 %vm469_vm2, %v9248_v28  ;;  %8987 = vmatmul.mubr.msk.bf16.vlgmr.msra.gmra.mrb[216].mxu1 %vm469_vm2, %v9249_v60 }
 0x26a   : > { %8991 = vmatpush3.bf16.msra.mxu0 %v11285_v12  ;;  %8997 = vmatpush3.bf16.msra.mxu1 %v11286_v41 }
 0x26b   : > { %8992 = vmatprep.mubr.msk.bf16.mxu0 %vm9269_vm0, %v9268_v0  ;;  %8998 = vmatprep.mubr.msk.bf16.mxu1 %vm9269_vm0, %v9268_v0 }
 0x26c   : > { %9002 = vmatprep.subr.bf16.mxu0 %v9268_v0  ;;  %9008 = vmatprep.subr.bf16.mxu1 %v9268_v0 }
 0x271   : > { %8993 = vmatmul.mubr.msk.bf16.vlgmr.msra.gmra.mrb[220].mxu0 %vm469_vm2, %v9250_v30  ;;  %8999 = vmatmul.mubr.msk.bf16.vlgmr.msra.gmra.mrb[220].mxu1 %vm469_vm2, %v9251_v61 }
 0x272   : > { %9003 = vmatpush3.bf16.msra.mxu0 %v11287_v3  ;;  %9009 = vmatpush3.bf16.msra.mxu1 %v11288_v17 }
 0x273   : > { %9004 = vmatprep.mubr.msk.bf16.mxu0 %vm9269_vm0, %v9268_v0  ;;  %9010 = vmatprep.mubr.msk.bf16.mxu1 %vm9269_vm0, %v9268_v0 }
 0x274   : > { %9014 = vmatprep.subr.bf16.mxu0 %v9268_v0  ;;  %9020 = vmatprep.subr.bf16.mxu1 %v9268_v0 }
 0x279   : > { %9005 = vmatmul.mubr.msk.bf16.vlgmr.msra.gmra.mrb[224].mxu0 %vm469_vm2, %v9252_v42  ;;  %9011 = vmatmul.mubr.msk.bf16.vlgmr.msra.gmra.mrb[224].mxu1 %vm469_vm2, %v9253_v18 }
 0x27a   : > { %9015 = vmatpush3.bf16.msra.mxu0 %v11289_v51  ;;  %9021 = vmatpush3.bf16.msra.mxu1 %v11290_v32 }
 0x27b   : > { %9016 = vmatprep.mubr.msk.bf16.mxu0 %vm9269_vm0, %v9268_v0  ;;  %9022 = vmatprep.mubr.msk.bf16.mxu1 %vm9269_vm0, %v9268_v0 }
 0x27c   : > { %9026 = vmatprep.subr.bf16.mxu0 %v9268_v0  ;;  %9032 = vmatprep.subr.bf16.mxu1 %v9268_v0 }
 0x281   : > { %9017 = vmatmul.mubr.msk.bf16.vlgmr.msra.gmra.mrb[228].mxu0 %vm469_vm2, %v9254_v52  ;;  %9023 = vmatmul.mubr.msk.bf16.vlgmr.msra.gmra.mrb[228].mxu1 %vm469_vm2, %v9255_v20 }
 0x282   : > { %9027 = vmatpush3.bf16.msra.mxu0 %v11291_v33  ;;  %9033 = vmatpush3.bf16.msra.mxu1 %v11292_v14 }
 0x283   : > { %9028 = vmatprep.mubr.msk.bf16.mxu0 %vm9269_vm0, %v9268_v0  ;;  %9034 = vmatprep.mubr.msk.bf16.mxu1 %vm9269_vm0, %v9268_v0 }
 0x284   : > { %9038 = vmatprep.subr.bf16.mxu0 %v9268_v0  ;;  %9044 = vmatprep.subr.bf16.mxu1 %v9268_v0 }
 0x289   : > { %9029 = vmatmul.mubr.msk.bf16.vlgmr.msra.gmra.mrb[232].mxu0 %vm469_vm2, %v9256_v25  ;;  %9035 = vmatmul.mubr.msk.bf16.vlgmr.msra.gmra.mrb[232].mxu1 %vm469_vm2, %v9257_v2 }
 0x28a   : > { %9039 = vmatpush3.bf16.msra.mxu0 %v11293_v13  ;;  %9045 = vmatpush3.bf16.msra.mxu1 %v11294_v50 }
 0x28b   : > { %9040 = vmatprep.mubr.msk.bf16.mxu0 %vm9269_vm0, %v9268_v0  ;;  %9046 = vmatprep.mubr.msk.bf16.mxu1 %vm9269_vm0, %v9268_v0 }
 0x291   : > { %9041 = vmatmul.mubr.msk.bf16.vlgmr.msra.gmra.mrb[236].mxu0 %vm469_vm2, %v9258_v16  ;;  %9047 = vmatmul.mubr.msk.bf16.vlgmr.msra.gmra.mrb[236].mxu1 %vm469_vm2, %v9259_v23 }
 0x2cc   : > { %v5865_v57 = vpop.f32.mrb[160].mxu0  ;;  %v5905_v34 = vpop.f32.mrb[160].mxu1 }
 0x2cd   : > { %7431 = vst.msk [vmem:[%s10953_s16] sm:$0xff] %vm469_vm2, %v5865_v57  ;;  %7432 = vst.msk [vmem:[%s10953_s16 + $0x8] sm:$0xff] %vm469_vm2, %v5905_v34  ;;  %v8814_v0 = vpop.f32.mrb[161].mxu0  ;;  %v8820_v26 = vpop.f32.mrb[161].mxu1 }
 0x2ce   : > { %v5868_v53 = vpop.f32.mrb[162].mxu0  ;;  %v5908_v58 = vpop.f32.mrb[162].mxu1 }
 0x2cf   : > { %v8815_v48 = vpop.f32.mrb[163].mxu0  ;;  %v8821_v39 = vpop.f32.mrb[163].mxu1 }
 0x2d4   : > { %v5945_v55 = vpop.f32.mrb[164].mxu0  ;;  %v5985_v62 = vpop.f32.mrb[164].mxu1 }
 0x2d5   : > { %7433 = vst.msk [vmem:[%s10953_s16 + $0x10] sm:$0xff] %vm469_vm2, %v5945_v55  ;;  %7434 = vst.msk [vmem:[%s10953_s16 + $0x18] sm:$0xff] %vm469_vm2, %v5985_v62  ;;  %v8826_v47 = vpop.f32.mrb[165].mxu0  ;;  %v8832_v54 = vpop.f32.mrb[165].mxu1 }
 0x2d6   : > { %v5948_v4 = vpop.f32.mrb[166].mxu0  ;;  %v5988_v21 = vpop.f32.mrb[166].mxu1 }
 0x2d7   : > { %v8827_v35 = vpop.f32.mrb[167].mxu0  ;;  %v8833_v63 = vpop.f32.mrb[167].mxu1 }
 0x2dc   : > { %v6025_v10 = vpop.f32.mrb[168].mxu0  ;;  %v6065_v1 = vpop.f32.mrb[168].mxu1 }
 0x2dd   : > { %7435 = vst.msk [vmem:[%s10953_s16 + $0x20] sm:$0xff] %vm469_vm2, %v6025_v10  ;;  %7436 = vst.msk [vmem:[%s10953_s16 + $0x28] sm:$0xff] %vm469_vm2, %v6065_v1  ;;  %v8838_v40 = vpop.f32.mrb[169].mxu0  ;;  %v8844_v6 = vpop.f32.mrb[169].mxu1 }
 0x2de   : > { %v6028_v5 = vpop.f32.mrb[170].mxu0  ;;  %v6068_v22 = vpop.f32.mrb[170].mxu1 }
 0x2df   : > { %v8839_v7 = vpop.f32.mrb[171].mxu0  ;;  %v8845_v37 = vpop.f32.mrb[171].mxu1 }
 0x2e4   : > { %v6105_v36 = vpop.f32.mrb[172].mxu0  ;;  %v6145_v8 = vpop.f32.mrb[172].mxu1 }
 0x2e5   : > { %7437 = vst.msk [vmem:[%s10953_s16 + $0x30] sm:$0xff] %vm469_vm2, %v6105_v36  ;;  %7438 = vst.msk [vmem:[%s10953_s16 + $0x38] sm:$0xff] %vm469_vm2, %v6145_v8  ;;  %v8850_v44 = vpop.f32.mrb[173].mxu0  ;;  %v8856_v24 = vpop.f32.mrb[173].mxu1 }
 0x2e6   : > { %v6108_v45 = vpop.f32.mrb[174].mxu0  ;;  %v6148_v29 = vpop.f32.mrb[174].mxu1 }
 0x2e7   : > { %v8851_v46 = vpop.f32.mrb[175].mxu0  ;;  %v8857_v38 = vpop.f32.mrb[175].mxu1 }
 0x2ec   : > { %v6185_v11 = vpop.f32.mrb[176].mxu0  ;;  %v6225_v56 = vpop.f32.mrb[176].mxu1 }
 0x2ed   : > { %7439 = vst.msk [vmem:[%s10953_s16 + $0x40] sm:$0xff] %vm469_vm2, %v6185_v11  ;;  %7440 = vst.msk [vmem:[%s10953_s16 + $0x48] sm:$0xff] %vm469_vm2, %v6225_v56  ;;  %v8862_v9 = vpop.f32.mrb[177].mxu0  ;;  %v8868_v19 = vpop.f32.mrb[177].mxu1 }
 0x2ee   : > { %v6188_v43 = vpop.f32.mrb[178].mxu0  ;;  %v6228_v49 = vpop.f32.mrb[178].mxu1 }
 0x2ef   : > { %v8863_v31 = vpop.f32.mrb[179].mxu0  ;;  %v8869_v59 = vpop.f32.mrb[179].mxu1 }
 0x2f4   : > { %v6265_v27 = vpop.f32.mrb[180].mxu0  ;;  %v6305_v15 = vpop.f32.mrb[180].mxu1 }
 0x2f5   : > { %7441 = vst.msk [vmem:[%s10953_s16 + $0x50] sm:$0xff] %vm469_vm2, %v6265_v27  ;;  %7442 = vst.msk [vmem:[%s10953_s16 + $0x58] sm:$0xff] %vm469_vm2, %v6305_v15  ;;  %v8874_v28 = vpop.f32.mrb[181].mxu0  ;;  %v8880_v60 = vpop.f32.mrb[181].mxu1 }
 0x2f6   : > { %v6268_v12 = vpop.f32.mrb[182].mxu0  ;;  %v6308_v41 = vpop.f32.mrb[182].mxu1 }
 0x2f7   : > { %v8875_v30 = vpop.f32.mrb[183].mxu0  ;;  %v8881_v61 = vpop.f32.mrb[183].mxu1 }
 0x2fc   : > { %v6345_v3 = vpop.f32.mrb[184].mxu0  ;;  %v6385_v17 = vpop.f32.mrb[184].mxu1 }
 0x2fd   : > { %7443 = vst.msk [vmem:[%s10953_s16 + $0x60] sm:$0xff] %vm469_vm2, %v6345_v3  ;;  %7444 = vst.msk [vmem:[%s10953_s16 + $0x68] sm:$0xff] %vm469_vm2, %v6385_v17  ;;  %v8886_v42 = vpop.f32.mrb[185].mxu0  ;;  %v8892_v18 = vpop.f32.mrb[185].mxu1 }
 0x2fe   : > { %v6348_v51 = vpop.f32.mrb[186].mxu0  ;;  %v6388_v32 = vpop.f32.mrb[186].mxu1 }
 0x2ff   : > { %v8887_v52 = vpop.f32.mrb[187].mxu0  ;;  %v8893_v20 = vpop.f32.mrb[187].mxu1 }
 0x304   : > { %v6425_v33 = vpop.f32.mrb[188].mxu0  ;;  %v6465_v14 = vpop.f32.mrb[188].mxu1 }
 0x305   : > { %7445 = vst.msk [vmem:[%s10953_s16 + $0x70] sm:$0xff] %vm469_vm2, %v6425_v33  ;;  %7446 = vst.msk [vmem:[%s10953_s16 + $0x78] sm:$0xff] %vm469_vm2, %v6465_v14  ;;  %v8898_v25 = vpop.f32.mrb[189].mxu0  ;;  %v8904_v2 = vpop.f32.mrb[189].mxu1 }
 0x306   : > { %v6428_v13 = vpop.f32.mrb[190].mxu0  ;;  %v6468_v50 = vpop.f32.mrb[190].mxu1 }
 0x307   : > { %v8899_v16 = vpop.f32.mrb[191].mxu0  ;;  %v8905_v23 = vpop.f32.mrb[191].mxu1 }
 0x30c   : > { %v6505_v57 = vpop.f32.mrb[192].mxu0  ;;  %v6545_v34 = vpop.f32.mrb[192].mxu1 }
 0x30d   : > { %7447 = vst.msk [vmem:[%s10953_s16 + $0x80] sm:$0xff] %vm469_vm2, %v6505_v57  ;;  %7448 = vst.msk [vmem:[%s10953_s16 + $0x88] sm:$0xff] %vm469_vm2, %v6545_v34  ;;  %v8910_v0 = vpop.f32.mrb[193].mxu0  ;;  %v8916_v26 = vpop.f32.mrb[193].mxu1 }
 0x30e   : > { %v6508_v53 = vpop.f32.mrb[194].mxu0  ;;  %v6548_v58 = vpop.f32.mrb[194].mxu1 }
 0x30f   : > { %v8911_v48 = vpop.f32.mrb[195].mxu0  ;;  %v8917_v39 = vpop.f32.mrb[195].mxu1 }
 0x314   : > { %v6585_v55 = vpop.f32.mrb[196].mxu0  ;;  %v6625_v62 = vpop.f32.mrb[196].mxu1 }
 0x315   : > { %7449 = vst.msk [vmem:[%s10953_s16 + $0x90] sm:$0xff] %vm469_vm2, %v6585_v55  ;;  %7450 = vst.msk [vmem:[%s10953_s16 + $0x98] sm:$0xff] %vm469_vm2, %v6625_v62  ;;  %v8922_v47 = vpop.f32.mrb[197].mxu0  ;;  %v8928_v54 = vpop.f32.mrb[197].mxu1 }
 0x316   : > { %v6588_v4 = vpop.f32.mrb[198].mxu0  ;;  %v6628_v21 = vpop.f32.mrb[198].mxu1 }
 0x317   : > { %v8923_v35 = vpop.f32.mrb[199].mxu0  ;;  %v8929_v63 = vpop.f32.mrb[199].mxu1 }
 0x31c   : > { %v6665_v10 = vpop.f32.mrb[200].mxu0  ;;  %v6705_v1 = vpop.f32.mrb[200].mxu1 }
 0x31d   : > { %7451 = vst.msk [vmem:[%s10953_s16 + $0xa0] sm:$0xff] %vm469_vm2, %v6665_v10  ;;  %7452 = vst.msk [vmem:[%s10953_s16 + $0xa8] sm:$0xff] %vm469_vm2, %v6705_v1  ;;  %v8934_v40 = vpop.f32.mrb[201].mxu0  ;;  %v8940_v6 = vpop.f32.mrb[201].mxu1 }
 0x31e   : > { %v6668_v5 = vpop.f32.mrb[202].mxu0  ;;  %v6708_v22 = vpop.f32.mrb[202].mxu1 }
 0x31f   : > { %v8935_v7 = vpop.f32.mrb[203].mxu0  ;;  %v8941_v37 = vpop.f32.mrb[203].mxu1 }
 0x324   : > { %v6745_v36 = vpop.f32.mrb[204].mxu0  ;;  %v6785_v8 = vpop.f32.mrb[204].mxu1 }
 0x325   : > { %7453 = vst.msk [vmem:[%s10953_s16 + $0xb0] sm:$0xff] %vm469_vm2, %v6745_v36  ;;  %7454 = vst.msk [vmem:[%s10953_s16 + $0xb8] sm:$0xff] %vm469_vm2, %v6785_v8  ;;  %v8946_v44 = vpop.f32.mrb[205].mxu0  ;;  %v8952_v24 = vpop.f32.mrb[205].mxu1 }
 0x326   : > { %v6748_v45 = vpop.f32.mrb[206].mxu0  ;;  %v6788_v29 = vpop.f32.mrb[206].mxu1 }
 0x327   : > { %v8947_v46 = vpop.f32.mrb[207].mxu0  ;;  %v8953_v38 = vpop.f32.mrb[207].mxu1 }
 0x32c   : > { %v6825_v11 = vpop.f32.mrb[208].mxu0  ;;  %v6865_v56 = vpop.f32.mrb[208].mxu1 }
 0x32d   : > { %7455 = vst.msk [vmem:[%s10953_s16 + $0xc0] sm:$0xff] %vm469_vm2, %v6825_v11  ;;  %7456 = vst.msk [vmem:[%s10953_s16 + $0xc8] sm:$0xff] %vm469_vm2, %v6865_v56  ;;  %v8958_v9 = vpop.f32.mrb[209].mxu0  ;;  %v8964_v19 = vpop.f32.mrb[209].mxu1 }
 0x32e   : > { %v6828_v43 = vpop.f32.mrb[210].mxu0  ;;  %v6868_v49 = vpop.f32.mrb[210].mxu1 }
 0x32f   : > { %v8959_v31 = vpop.f32.mrb[211].mxu0  ;;  %v8965_v59 = vpop.f32.mrb[211].mxu1 }
 0x334   : > { %v6905_v27 = vpop.f32.mrb[212].mxu0  ;;  %v6945_v15 = vpop.f32.mrb[212].mxu1 }
 0x335   : > { %7457 = vst.msk [vmem:[%s10953_s16 + $0xd0] sm:$0xff] %vm469_vm2, %v6905_v27  ;;  %7458 = vst.msk [vmem:[%s10953_s16 + $0xd8] sm:$0xff] %vm469_vm2, %v6945_v15  ;;  %v8970_v28 = vpop.f32.mrb[213].mxu0  ;;  %v8976_v60 = vpop.f32.mrb[213].mxu1 }
 0x336   : > { %v6908_v12 = vpop.f32.mrb[214].mxu0  ;;  %v6948_v41 = vpop.f32.mrb[214].mxu1 }
 0x337   : > { %v8971_v30 = vpop.f32.mrb[215].mxu0  ;;  %v8977_v61 = vpop.f32.mrb[215].mxu1 }
 0x33c   : > { %v6985_v3 = vpop.f32.mrb[216].mxu0  ;;  %v7025_v17 = vpop.f32.mrb[216].mxu1 }
 0x33d   : > { %7459 = vst.msk [vmem:[%s10953_s16 + $0xe0] sm:$0xff] %vm469_vm2, %v6985_v3  ;;  %7460 = vst.msk [vmem:[%s10953_s16 + $0xe8] sm:$0xff] %vm469_vm2, %v7025_v17  ;;  %v8982_v42 = vpop.f32.mrb[217].mxu0  ;;  %v8988_v18 = vpop.f32.mrb[217].mxu1 }
 0x33e   : > { %v6988_v51 = vpop.f32.mrb[218].mxu0  ;;  %v7028_v32 = vpop.f32.mrb[218].mxu1 }
 0x33f   : > { %v8983_v52 = vpop.f32.mrb[219].mxu0  ;;  %v8989_v20 = vpop.f32.mrb[219].mxu1 }
 0x344   : > { %v7065_v33 = vpop.f32.mrb[220].mxu0  ;;  %v7105_v14 = vpop.f32.mrb[220].mxu1 }
 0x345   : > { %7461 = vst.msk [vmem:[%s10953_s16 + $0xf0] sm:$0xff] %vm469_vm2, %v7065_v33  ;;  %7462 = vst.msk [vmem:[%s10953_s16 + $0xf8] sm:$0xff] %vm469_vm2, %v7105_v14  ;;  %v8994_v25 = vpop.f32.mrb[221].mxu0  ;;  %v9000_v2 = vpop.f32.mrb[221].mxu1 }
 0x346   : > { %v7068_v13 = vpop.f32.mrb[222].mxu0  ;;  %v7108_v50 = vpop.f32.mrb[222].mxu1 }
 0x347   : > { %v8995_v16 = vpop.f32.mrb[223].mxu0  ;;  %v9001_v23 = vpop.f32.mrb[223].mxu1 }
 0x34c   : > { %v7145_v57 = vpop.f32.mrb[224].mxu0  ;;  %v7185_v34 = vpop.f32.mrb[224].mxu1 }
 0x34d   : > { %7463 = vst.msk [vmem:[%s10953_s16 + $0x100] sm:$0xff] %vm469_vm2, %v7145_v57  ;;  %7464 = vst.msk [vmem:[%s10953_s16 + $0x108] sm:$0xff] %vm469_vm2, %v7185_v34  ;;  %v9006_v0 = vpop.f32.mrb[225].mxu0  ;;  %v9012_v26 = vpop.f32.mrb[225].mxu1 }
 0x34e   : > { %v7148_v53 = vpop.f32.mrb[226].mxu0  ;;  %v7188_v58 = vpop.f32.mrb[226].mxu1 }
 0x34f   : > { %v9007_v48 = vpop.f32.mrb[227].mxu0  ;;  %v9013_v39 = vpop.f32.mrb[227].mxu1 }
 0x354   : > { %v7225_v55 = vpop.f32.mrb[228].mxu0  ;;  %v7265_v62 = vpop.f32.mrb[228].mxu1 }
 0x355   : > { %7465 = vst.msk [vmem:[%s10953_s16 + $0x110] sm:$0xff] %vm469_vm2, %v7225_v55  ;;  %7466 = vst.msk [vmem:[%s10953_s16 + $0x118] sm:$0xff] %vm469_vm2, %v7265_v62  ;;  %v9018_v47 = vpop.f32.mrb[229].mxu0  ;;  %v9024_v54 = vpop.f32.mrb[229].mxu1 }
 0x356   : > { %v7228_v4 = vpop.f32.mrb[230].mxu0  ;;  %v7268_v21 = vpop.f32.mrb[230].mxu1 }
 0x357   : > { %v9019_v35 = vpop.f32.mrb[231].mxu0  ;;  %v9025_v63 = vpop.f32.mrb[231].mxu1 }
 0x35c   : > { %v7305_v10 = vpop.f32.mrb[232].mxu0  ;;  %v7345_v1 = vpop.f32.mrb[232].mxu1 }
 0x35d   : > { %7467 = vst.msk [vmem:[%s10953_s16 + $0x120] sm:$0xff] %vm469_vm2, %v7305_v10  ;;  %7468 = vst.msk [vmem:[%s10953_s16 + $0x128] sm:$0xff] %vm469_vm2, %v7345_v1  ;;  %v9030_v40 = vpop.f32.mrb[233].mxu0  ;;  %v9036_v6 = vpop.f32.mrb[233].mxu1 }
 0x35e   : > { %v7308_v5 = vpop.f32.mrb[234].mxu0  ;;  %v7348_v22 = vpop.f32.mrb[234].mxu1 }
 0x35f   : > { %v9031_v7 = vpop.f32.mrb[235].mxu0  ;;  %v9037_v37 = vpop.f32.mrb[235].mxu1 }
 0x364   : > { %v7385_v36 = vpop.f32.mrb[236].mxu0  ;;  %v7425_v8 = vpop.f32.mrb[236].mxu1 }
 0x365   : > { %7469 = vst.msk [vmem:[%s10953_s16 + $0x130] sm:$0xff] %vm469_vm2, %v7385_v36  ;;  %7470 = vst.msk [vmem:[%s10953_s16 + $0x138] sm:$0xff] %vm469_vm2, %v7425_v8  ;;  %v9042_v44 = vpop.f32.mrb[237].mxu0  ;;  %v9048_v24 = vpop.f32.mrb[237].mxu1 }
 0x366   : > { %v7388_v45 = vpop.f32.mrb[238].mxu0  ;;  %v7428_v29 = vpop.f32.mrb[238].mxu1 }
 0x367   : > { %v9043_v46 = vpop.f32.mrb[239].mxu0  ;;  %v9049_v38 = vpop.f32.mrb[239].mxu1 }
 0x368 PF: > { %s16_s18 = sadd.s32 1, %s9266_s18  }
 0x369   : > { %p13_p4 = scmp.ge.s32.totalorder %s16_s18, 4  }
 0x36b   :  { %15 = sbr.rel (!%p13_p4) target bundleno = 1 (0x1), region = 87 }

</bundles_post_ra>
